<compile_context>
chip_gen: v7x
topology: tpu7x:2x2x1
jax: 0.10.0
libtpu: 0.0.40
codegen_flags: <defaults>
</compile_context>

<pallas_src>
import functools

import jax
import jax.numpy as jnp
from jax.experimental import pallas as pl
from jax.experimental.pallas import tpu as pltpu

LN_EPS = 1e-6            # LayerNorm2d default eps in basicsr (NAFNet-style)
_FUSE_QK_MIN_C = 48      # below this, the duplicate QK matmul is cheaper than
                         # the (W, W) transpose + shared-exp bookkeeping


# ----------------------------------------------------------------------------
# Tiling / VMEM sizing helpers
# ----------------------------------------------------------------------------
def _vmem_capacity_bytes():
    try:
        info = pltpu.get_tpu_info()
        return int(getattr(info, "vmem_capacity_bytes", 128 << 20))
    except Exception:
        return 128 << 20


def _estimate_vmem_bytes(tile_rows, W, C):
    """Rough f32/bf16 working-set estimate for one grid step."""
    thw = tile_rows * W
    f32, bf16 = 4, 2
    # Pallas double-buffers the pipelined input and output blocks (x2 each).
    io = 2 * (2 * f32 * thw * C) + 2 * (f32 * tile_rows * W)
    # LN outputs + 4 projection slabs in f32, plus their bf16 MXU copies.
    slabs = (2 + 4) * f32 * thw * C + (2 + 4) * bf16 * thw * C
    # Attention tiles: att / exp / transposed exp (f32) + bf16 prob copies.
    att = tile_rows * W * W * (3 * f32 + 2 * bf16)
    # Aggregation outputs + product (f32).
    agg = 3 * f32 * thw * C
    return io + slabs + att + agg


def _pick_tile_rows(N, H, W, C, budget_bytes):
    """Largest legal row-tile TH (divisor of H) whose working set fits budget.

    Legal TH keeps every block (8, 128)-legal: TH % 8 == 0, or TH == H (a
    full-extent block dim is exempt).  Prefers tiles that leave >= 2 grid
    steps so ("parallel", "parallel") can shard across TensorCores.
    """
    divisors = [d for d in range(1, H + 1) if H % d == 0]
    valid = [d for d in divisors if d % 8 == 0 or d == H]
    fitting = [d for d in valid if _estimate_vmem_bytes(d, W, C) <= budget_bytes]
    preferred = [d for d in fitting if N * (H // d) >= 2]
    pool = preferred or fitting or [min(valid)]
    return max(pool)


# ----------------------------------------------------------------------------
# Kernel
# ----------------------------------------------------------------------------
def _stereo_merge_kernel(xl_ref, xr_ref, wstack_ref, vstack_ref, bm_ref,
                         out_ref, *, tile_rows, width, fuse_qk_transpose):
    # xl_ref / xr_ref blocks: (1, TH*W, C) -- channels in lanes.
    xl = xl_ref[0]                      # (TH*W, C) f32
    xr = xr_ref[0]                      # (TH*W, C) f32
    C = xl.shape[-1]
    bvecs = vstack_ref[...]             # (5, C) f32: bql, bqr, bvl, bvr, merge_w

    def ln_norm(x):
        # LN affine (gamma/beta) is folded into the proj1 weights/biases in
        # the wrapper, so only the normalization remains here (f32 math).
        mu = jnp.mean(x, axis=-1, keepdims=True)
        xc = x - mu
        var = jnp.mean(xc * xc, axis=-1, keepdims=True)
        return xc * jax.lax.rsqrt(var + LN_EPS)

    ln_l = ln_norm(xl)
    ln_r = ln_norm(xr)

    def proj(x, idx):
        # 1x1 conv == per-pixel linear; weights pre-transposed to (Cin, Cout)
        # and pre-cast to bf16; accumulate in f32 on the MXU.
        y = jnp.dot(x.astype(jnp.bfloat16), wstack_ref[idx],
                    preferred_element_type=jnp.float32)
        y = y + bvecs[idx:idx + 1, :]
        # NOTE: this reshape is a free view only when W is a multiple of 8.
        return y.reshape(tile_rows, width, C)

    q_l = proj(ln_l, 0)                 # l_proj1(norm_l(x_l)), (TH, W, C) f32
    q_r = proj(ln_r, 1)                 # r_proj1(norm_r(x_r))
    v_l = proj(xl, 2)                   # l_proj2(x_l)
    v_r = proj(xr, 3)                   # r_proj2(x_r)

    q_l_b = q_l.astype(jnp.bfloat16)
    q_r_b = q_r.astype(jnp.bfloat16)
    v_l_b = v_l.astype(jnp.bfloat16)
    v_r_b = v_r.astype(jnp.bfloat16)

    # att[t, i, j] = <Q_l[t, i, :], Q_r[t, j, :]>     -> (TH, W, W) f32
    att = jnp.einsum('twc,tvc->twv', q_l_b, q_r_b,
                     preferred_element_type=jnp.float32)

    if fuse_qk_transpose:
        # Single QK matmul + single exp pass shared by both softmax
        # directions (tile-wide shift keeps the math an exact softmax);
        # the reverse direction comes from a (W, W) XLU transpose.
        m = jnp.max(att, axis=-1, keepdims=True)
        m = jnp.max(m, axis=-2, keepdims=True)              # (TH, 1, 1)
        e = jnp.exp(att - m)                                 # shared exp, f32
        e_t = jnp.swapaxes(e, -1, -2)                        # (TH, W, W)
        p_r2l = (e * pl.reciprocal(
            jnp.sum(e, axis=-1, keepdims=True), approx=True)
        ).astype(jnp.bfloat16)
        p_l2r = (e_t * pl.reciprocal(
            jnp.sum(e_t, axis=-1, keepdims=True), approx=True)
        ).astype(jnp.bfloat16)
    else:
        # Tiny-C path: the second QK matmul is cheaper than the transpose.
        att_t = jnp.einsum('twc,tvc->twv', q_r_b, q_l_b,
                           preferred_element_type=jnp.float32)

        def softmax_last(a):
            mx = jnp.max(a, axis=-1, keepdims=True)
            ex = jnp.exp(a - mx)
            den = pl.reciprocal(jnp.sum(ex, axis=-1, keepdims=True),
                                approx=True)
            return (ex * den).astype(jnp.bfloat16)

        p_r2l = softmax_last(att)
        p_l2r = softmax_last(att_t)

    f_r2l = jnp.einsum('twv,tvc->twc', p_r2l, v_r_b,
                       preferred_element_type=jnp.float32)   # (TH, W, C)
    f_l2r = jnp.einsum('twv,tvc->twc', p_l2r, v_l_b,
                       preferred_element_type=jnp.float32)   # (TH, W, C)

    prod = f_r2l * f_l2r                                     # f32

    # merge_conv: C -> 1 (1x1 conv); lane-dense (TH, W) output slab.
    merge_w = bvecs[4:5, :]                                   # (1, C)
    out = jnp.sum(prod * merge_w, axis=-1) + bm_ref[0, 0]     # scalar from SMEM
    out_ref[0] = out


# ----------------------------------------------------------------------------
# Wrapper
# ----------------------------------------------------------------------------
def stereo_info_merge(x_l, x_r, params, tile_rows=None):
    """x_l, x_r: (N, C, H, W) float32. Returns (N, 1, H, W) float32."""
    N, C, H, W = x_l.shape
    f32 = jnp.float32

    vmem_cap = _vmem_capacity_bytes()
    # ~1/3 of physical VMEM: ~21 MiB on v7x (64 MiB/TC), ~42 MiB on v5e/v6e,
    # capped so the double-buffered working set never crowds out the pipeline.
    budget = min(vmem_cap // 3, 48 << 20)
    if tile_rows is None:
        tile_rows = _pick_tile_rows(N, H, W, C, budget)
    assert H % tile_rows == 0, (H, tile_rows)
    est = _estimate_vmem_bytes(tile_rows, W, C)
    vmem_limit = int(min(0.8 * vmem_cap, max(32 << 20, 2 * est)))

    # NHWC with spatial rows flattened: (N, H*W, C), channels in lanes.
    xl_f = jnp.transpose(x_l, (0, 2, 3, 1)).reshape(N, H * W, C).astype(f32)
    xr_f = jnp.transpose(x_r, (0, 2, 3, 1)).reshape(N, H * W, C).astype(f32)

    # --- parameter prep: fold LN affine into proj1, pre-transpose, pack ----
    def fold_ln(gamma, beta, w, b):
        wt = jnp.transpose(w).astype(f32)                 # (Cin, Cout)
        w_folded = gamma.reshape(C, 1) * wt
        b_folded = beta.reshape(1, C) @ wt + b
        return w_folded, b_folded

    wql, bql = fold_ln(params["ln_l_gamma"], params["ln_l_beta"],
                       params["l_proj1_w"], params["l_proj1_b"])
    wqr, bqr = fold_ln(params["ln_r_gamma"], params["ln_r_beta"],
                       params["r_proj1_w"], params["r_proj1_b"])
    wvl, bvl = jnp.transpose(params["l_proj2_w"]).astype(f32), params["l_proj2_b"]
    wvr, bvr = jnp.transpose(params["r_proj2_w"]).astype(f32), params["r_proj2_b"]

    wstack = jnp.stack([wql, wqr, wvl, wvr]).astype(jnp.bfloat16)   # (4, C, C)
    vstack = jnp.concatenate(
        [bql, bqr, bvl, bvr, params["merge_w"]], axis=0).astype(f32)  # (5, C)
    merge_b = params["merge_b"].reshape(1, 1).astype(f32)             # SMEM

    thw = tile_rows * W
    row_spec = pl.BlockSpec((1, thw, C), lambda n, t: (n, t, 0))
    out_spec = pl.BlockSpec((1, tile_rows, W), lambda n, t: (n, t, 0))
    wstack_spec = pl.BlockSpec((4, C, C), lambda n, t: (0, 0, 0))
    vstack_spec = pl.BlockSpec((5, C), lambda n, t: (0, 0))
    smem_spec = pl.BlockSpec(memory_space=pltpu.MemorySpace.SMEM)

    kernel = functools.partial(
        _stereo_merge_kernel,
        tile_rows=tile_rows, width=W,
        fuse_qk_transpose=(C >= _FUSE_QK_MIN_C))

    out_nhw = pl.pallas_call(
        kernel,
        grid=(N, H // tile_rows),
        in_specs=[row_spec, row_spec, wstack_spec, vstack_spec, smem_spec],
        out_specs=out_spec,
        out_shape=jax.ShapeDtypeStruct((N, H, W), f32),
        compiler_params=pltpu.CompilerParams(
            dimension_semantics=("parallel", "parallel"),
            vmem_limit_bytes=vmem_limit),
    )(xl_f, xr_f, wstack, vstack, merge_b)

    # (N, H, W) -> (N, 1, H, W): pure reshape, no transpose.
    return out_nhw[:, None, :, :]


# ----------------------------------------------------------------------------
# Parameters & reference
# ----------------------------------------------------------------------------
def make_params(key, num_feat):
    """Deterministic synthetic parameters (no checkpoint load)."""
    ks = jax.random.split(key, 12)
    f32 = jnp.float32

    def w(k):  # 1x1 conv weight stored as (C_out=C, C_in=C)
        return (0.1 * jax.random.normal(k, (num_feat, num_feat))).astype(f32)

    def b(k):
        return (0.05 * jax.random.normal(k, (1, num_feat))).astype(f32)

    return {
        "ln_l_gamma": (1.0 + 0.1 * jax.random.normal(ks[0], (1, num_feat))).astype(f32),
        "ln_l_beta":  (0.1 * jax.random.normal(ks[1], (1, num_feat))).astype(f32),
        "ln_r_gamma": (1.0 + 0.1 * jax.random.normal(ks[2], (1, num_feat))).astype(f32),
        "ln_r_beta":  (0.1 * jax.random.normal(ks[3], (1, num_feat))).astype(f32),
        "l_proj1_w": w(ks[4]), "l_proj1_b": b(ks[5]),
        "r_proj1_w": w(ks[6]), "r_proj1_b": b(ks[7]),
        "l_proj2_w": w(ks[8]), "l_proj2_b": b(ks[9]),
        "merge_w": (0.1 * jax.random.normal(ks[10], (1, num_feat))).astype(f32),
        "merge_b": (0.05 * jax.random.normal(ks[11], (1, 1))).astype(f32),
        "r_proj2_w": w(jax.random.fold_in(key, 100)),
        "r_proj2_b": b(jax.random.fold_in(key, 101)),
    }


def reference_jax(x_l, x_r, p):
    """Pure-JAX f32 reference mirroring the PyTorch forward (NCHW).

    Note: like the source module, no 1/sqrt(C) attention scale is applied.
    """
    def ln(x, g, bt):  # x: (N, C, H, W), normalize over C
        mu = jnp.mean(x, axis=1, keepdims=True)
        var = jnp.mean((x - mu) ** 2, axis=1, keepdims=True)
        y = (x - mu) / jnp.sqrt(var + LN_EPS)
        return y * g.reshape(1, -1, 1, 1) + bt.reshape(1, -1, 1, 1)

    def conv1x1(x, w, b):  # w: (Cout, Cin), b: (1, Cout)
        return jnp.einsum("nchw,oc->nohw", x, w) + b.reshape(1, -1, 1, 1)

    Q_l = jnp.transpose(conv1x1(ln(x_l, p["ln_l_gamma"], p["ln_l_beta"]),
                                p["l_proj1_w"], p["l_proj1_b"]), (0, 2, 3, 1))
    Q_r_T = jnp.transpose(conv1x1(ln(x_r, p["ln_r_gamma"], p["ln_r_beta"]),
                                  p["r_proj1_w"], p["r_proj1_b"]), (0, 2, 1, 3))
    V_l = jnp.transpose(conv1x1(x_l, p["l_proj2_w"], p["l_proj2_b"]), (0, 2, 3, 1))
    V_r = jnp.transpose(conv1x1(x_r, p["r_proj2_w"], p["r_proj2_b"]), (0, 2, 3, 1))
    att = jnp.matmul(Q_l, Q_r_T)
    F_r2l = jnp.matmul(jax.nn.softmax(att, axis=-1), V_r)
    F_l2r = jnp.matmul(jax.nn.softmax(jnp.swapaxes(att, -1, -2), axis=-1), V_l)
    F_r2l = jnp.transpose(F_r2l, (0, 3, 1, 2))
    F_l2r = jnp.transpose(F_l2r, (0, 3, 1, 2))
    prod = F_r2l * F_l2r
    return jnp.einsum("nchw,oc->nohw", prod, p["merge_w"]) + p["merge_b"].reshape(1, 1, 1, 1)


if __name__ == "__main__":
    key = jax.random.PRNGKey(0)
    N, C, H, W = 2, 8, 16, 16  # num_feat = 8

    k1, k2, k3 = jax.random.split(key, 3)
    x_l = jax.random.normal(k1, (N, C, H, W), dtype=jnp.float32)
    x_r = jax.random.normal(k2, (N, C, H, W), dtype=jnp.float32)
    params = make_params(k3, C)

    fn = jax.jit(stereo_info_merge)
    out = jax.block_until_ready(fn(x_l, x_r, params))

    assert out.shape == (N, 1, H, W), out.shape

    ref = jax.block_until_ready(reference_jax(x_l, x_r, params))
    # bf16 MXU operands + approx softmax reciprocal vs. an f32 reference.
    err = float(jnp.max(jnp.abs(out - ref)))
    assert jnp.allclose(out, ref, rtol=5e-2, atol=3e-2), err

    print("KERNEL_OK")
</pallas_src>

<mosaic_0001>
module attributes {stable_mosaic.version = 11 : i64} {
  func.func @_stereo_merge_kernel(%arg0: i32, %arg1: i32, %arg2: memref<1x256x8xf32, #tpu.memory_space<vmem>>, %arg3: memref<1x256x8xf32, #tpu.memory_space<vmem>>, %arg4: memref<4x8x8xbf16, #tpu.memory_space<vmem>>, %arg5: memref<5x8xf32, #tpu.memory_space<vmem>>, %arg6: memref<1x1xf32, #tpu.memory_space<smem>>, %arg7: memref<1x16x16xf32, #tpu.memory_space<vmem>>) attributes {dimension_semantics = [#tpu.dimension_semantics<parallel>, #tpu.dimension_semantics<parallel>], iteration_bounds = array<i64: 2, 1>, scalar_prefetch = 0 : i64, scratch_operands = 0 : i64, tpu.core_type = #tpu.core_type<tc>, window_params = [{transform_indices = @transform_0, window_bounds = array<i64: 1, 256, 8>}, {transform_indices = @transform_1, window_bounds = array<i64: 1, 256, 8>}, {pipeline_mode = #tpu.pipeline_mode<synchronous>, transform_indices = @transform_2, window_bounds = array<i64: 4, 8, 8>}, {pipeline_mode = #tpu.pipeline_mode<synchronous>, transform_indices = @transform_3, window_bounds = array<i64: 5, 8>}, {transform_indices = @transform_4, window_bounds = array<i64: 1, 1>}, {transform_indices = @transform_5, window_bounds = array<i64: 1, 16, 16>}]} {
    %c0 = arith.constant 0 : index
    %c0_0 = arith.constant 0 : index
    %c0_1 = arith.constant 0 : index
    %0 = vector.load %arg2[%c0, %c0_0, %c0_1] : memref<1x256x8xf32, #tpu.memory_space<vmem>>, vector<1x256x8xf32>
    %1 = vector.shape_cast %0 : vector<1x256x8xf32> to vector<256x8xf32>
    %c0_2 = arith.constant 0 : index
    %c0_3 = arith.constant 0 : index
    %c0_4 = arith.constant 0 : index
    %2 = vector.load %arg3[%c0_2, %c0_3, %c0_4] : memref<1x256x8xf32, #tpu.memory_space<vmem>>, vector<1x256x8xf32>
    %3 = vector.shape_cast %2 : vector<1x256x8xf32> to vector<256x8xf32>
    %c0_5 = arith.constant 0 : index
    %c0_6 = arith.constant 0 : index
    %4 = vector.load %arg5[%c0_5, %c0_6] : memref<5x8xf32, #tpu.memory_space<vmem>>, vector<5x8xf32>
    %cst = arith.constant dense<0.000000e+00> : vector<256xf32>
    %5 = vector.multi_reduction <add>, %1, %cst [1] : vector<256x8xf32> to vector<256xf32>
    %6 = vector.shape_cast %5 : vector<256xf32> to vector<256x1xf32>
    %cst_7 = arith.constant 8.000000e+00 : f32
    %7 = vector.broadcast %cst_7 : f32 to vector<256x1xf32>
    %8 = arith.divf %6, %7 : vector<256x1xf32>
    %9 = vector.broadcast %8 : vector<256x1xf32> to vector<256x8xf32>
    %10 = arith.subf %1, %9 : vector<256x8xf32>
    %11 = arith.mulf %10, %10 : vector<256x8xf32>
    %cst_8 = arith.constant dense<0.000000e+00> : vector<256xf32>
    %12 = vector.multi_reduction <add>, %11, %cst_8 [1] : vector<256x8xf32> to vector<256xf32>
    %13 = vector.shape_cast %12 : vector<256xf32> to vector<256x1xf32>
    %cst_9 = arith.constant 8.000000e+00 : f32
    %14 = vector.broadcast %cst_9 : f32 to vector<256x1xf32>
    %15 = arith.divf %13, %14 : vector<256x1xf32>
    %cst_10 = arith.constant 9.99999997E-7 : f32
    %16 = vector.broadcast %cst_10 : f32 to vector<256x1xf32>
    %17 = arith.addf %15, %16 : vector<256x1xf32>
    %18 = math.rsqrt %17 : vector<256x1xf32>
    %19 = vector.broadcast %18 : vector<256x1xf32> to vector<256x8xf32>
    %20 = arith.mulf %10, %19 : vector<256x8xf32>
    %cst_11 = arith.constant dense<0.000000e+00> : vector<256xf32>
    %21 = vector.multi_reduction <add>, %3, %cst_11 [1] : vector<256x8xf32> to vector<256xf32>
    %22 = vector.shape_cast %21 : vector<256xf32> to vector<256x1xf32>
    %cst_12 = arith.constant 8.000000e+00 : f32
    %23 = vector.broadcast %cst_12 : f32 to vector<256x1xf32>
    %24 = arith.divf %22, %23 : vector<256x1xf32>
    %25 = vector.broadcast %24 : vector<256x1xf32> to vector<256x8xf32>
    %26 = arith.subf %3, %25 : vector<256x8xf32>
    %27 = arith.mulf %26, %26 : vector<256x8xf32>
    %cst_13 = arith.constant dense<0.000000e+00> : vector<256xf32>
    %28 = vector.multi_reduction <add>, %27, %cst_13 [1] : vector<256x8xf32> to vector<256xf32>
    %29 = vector.shape_cast %28 : vector<256xf32> to vector<256x1xf32>
    %cst_14 = arith.constant 8.000000e+00 : f32
    %30 = vector.broadcast %cst_14 : f32 to vector<256x1xf32>
    %31 = arith.divf %29, %30 : vector<256x1xf32>
    %cst_15 = arith.constant 9.99999997E-7 : f32
    %32 = vector.broadcast %cst_15 : f32 to vector<256x1xf32>
    %33 = arith.addf %31, %32 : vector<256x1xf32>
    %34 = math.rsqrt %33 : vector<256x1xf32>
    %35 = vector.broadcast %34 : vector<256x1xf32> to vector<256x8xf32>
    %36 = arith.mulf %26, %35 : vector<256x8xf32>
    %37 = arith.truncf %20 : vector<256x8xf32> to vector<256x8xbf16>
    %c0_16 = arith.constant 0 : index
    %c0_17 = arith.constant 0 : index
    %c0_18 = arith.constant 0 : index
    %38 = vector.load %arg4[%c0_16, %c0_17, %c0_18] : memref<4x8x8xbf16, #tpu.memory_space<vmem>>, vector<1x8x8xbf16>
    %39 = vector.shape_cast %38 : vector<1x8x8xbf16> to vector<8x8xbf16>
    %cst_19 = arith.constant dense<0.000000e+00> : vector<256x8xf32>
    %40 = tpu.matmul %37, %39, %cst_19 {dimension_numbers = #tpu.dot_dimension_numbers<[1], [0], [0], [1], [0, 0, 1, 1], [], []>} : vector<256x8xbf16>, vector<8x8xbf16>, vector<256x8xf32> -> vector<256x8xf32>
    %41 = vector.extract_strided_slice %4 {offsets = [0, 0], sizes = [1, 8], strides = [1, 1]} : vector<5x8xf32> to vector<1x8xf32>
    %42 = vector.broadcast %41 : vector<1x8xf32> to vector<256x8xf32>
    %43 = arith.addf %40, %42 : vector<256x8xf32>
    %44 = vector.shape_cast %43 : vector<256x8xf32> to vector<16x16x8xf32>
    %45 = arith.truncf %36 : vector<256x8xf32> to vector<256x8xbf16>
    %c1 = arith.constant 1 : index
    %c0_20 = arith.constant 0 : index
    %c0_21 = arith.constant 0 : index
    %46 = vector.load %arg4[%c1, %c0_20, %c0_21] : memref<4x8x8xbf16, #tpu.memory_space<vmem>>, vector<1x8x8xbf16>
    %47 = vector.shape_cast %46 : vector<1x8x8xbf16> to vector<8x8xbf16>
    %cst_22 = arith.constant dense<0.000000e+00> : vector<256x8xf32>
    %48 = tpu.matmul %45, %47, %cst_22 {dimension_numbers = #tpu.dot_dimension_numbers<[1], [0], [0], [1], [0, 0, 1, 1], [], []>} : vector<256x8xbf16>, vector<8x8xbf16>, vector<256x8xf32> -> vector<256x8xf32>
    %49 = vector.extract_strided_slice %4 {offsets = [1, 0], sizes = [1, 8], strides = [1, 1]} : vector<5x8xf32> to vector<1x8xf32>
    %50 = vector.broadcast %49 : vector<1x8xf32> to vector<256x8xf32>
    %51 = arith.addf %48, %50 : vector<256x8xf32>
    %52 = vector.shape_cast %51 : vector<256x8xf32> to vector<16x16x8xf32>
    %53 = arith.truncf %1 : vector<256x8xf32> to vector<256x8xbf16>
    %c2 = arith.constant 2 : index
    %c0_23 = arith.constant 0 : index
    %c0_24 = arith.constant 0 : index
    %54 = vector.load %arg4[%c2, %c0_23, %c0_24] : memref<4x8x8xbf16, #tpu.memory_space<vmem>>, vector<1x8x8xbf16>
    %55 = vector.shape_cast %54 : vector<1x8x8xbf16> to vector<8x8xbf16>
    %cst_25 = arith.constant dense<0.000000e+00> : vector<256x8xf32>
    %56 = tpu.matmul %53, %55, %cst_25 {dimension_numbers = #tpu.dot_dimension_numbers<[1], [0], [0], [1], [0, 0, 1, 1], [], []>} : vector<256x8xbf16>, vector<8x8xbf16>, vector<256x8xf32> -> vector<256x8xf32>
    %57 = vector.extract_strided_slice %4 {offsets = [2, 0], sizes = [1, 8], strides = [1, 1]} : vector<5x8xf32> to vector<1x8xf32>
    %58 = vector.broadcast %57 : vector<1x8xf32> to vector<256x8xf32>
    %59 = arith.addf %56, %58 : vector<256x8xf32>
    %60 = vector.shape_cast %59 : vector<256x8xf32> to vector<16x16x8xf32>
    %61 = arith.truncf %3 : vector<256x8xf32> to vector<256x8xbf16>
    %c3 = arith.constant 3 : index
    %c0_26 = arith.constant 0 : index
    %c0_27 = arith.constant 0 : index
    %62 = vector.load %arg4[%c3, %c0_26, %c0_27] : memref<4x8x8xbf16, #tpu.memory_space<vmem>>, vector<1x8x8xbf16>
    %63 = vector.shape_cast %62 : vector<1x8x8xbf16> to vector<8x8xbf16>
    %cst_28 = arith.constant dense<0.000000e+00> : vector<256x8xf32>
    %64 = tpu.matmul %61, %63, %cst_28 {dimension_numbers = #tpu.dot_dimension_numbers<[1], [0], [0], [1], [0, 0, 1, 1], [], []>} : vector<256x8xbf16>, vector<8x8xbf16>, vector<256x8xf32> -> vector<256x8xf32>
    %65 = vector.extract_strided_slice %4 {offsets = [3, 0], sizes = [1, 8], strides = [1, 1]} : vector<5x8xf32> to vector<1x8xf32>
    %66 = vector.broadcast %65 : vector<1x8xf32> to vector<256x8xf32>
    %67 = arith.addf %64, %66 : vector<256x8xf32>
    %68 = vector.shape_cast %67 : vector<256x8xf32> to vector<16x16x8xf32>
    %69 = arith.truncf %44 : vector<16x16x8xf32> to vector<16x16x8xbf16>
    %70 = arith.truncf %52 : vector<16x16x8xf32> to vector<16x16x8xbf16>
    %71 = arith.truncf %60 : vector<16x16x8xf32> to vector<16x16x8xbf16>
    %72 = arith.truncf %68 : vector<16x16x8xf32> to vector<16x16x8xbf16>
    "tpu.trace_start"() <{level = 10 : i32, message = "twc,tvc->twv"}> : () -> ()
    %cst_29 = arith.constant dense<0.000000e+00> : vector<16x16x16xf32>
    %73 = tpu.matmul %69, %70, %cst_29 {dimension_numbers = #tpu.dot_dimension_numbers<[2], [2], [1], [1], [0, 0, 0, 1, 1, 1], [0], [0]>} : vector<16x16x8xbf16>, vector<16x16x8xbf16>, vector<16x16x16xf32> -> vector<16x16x16xf32>
    %cst_30 = arith.constant dense<0.000000e+00> : vector<16x16x16xf32>
    %74 = tpu.matmul %70, %69, %cst_30 {dimension_numbers = #tpu.dot_dimension_numbers<[2], [2], [1], [1], [0, 0, 0, 1, 1, 1], [0], [0]>} : vector<16x16x8xbf16>, vector<16x16x8xbf16>, vector<16x16x16xf32> -> vector<16x16x16xf32>
    "tpu.trace_stop"() : () -> ()
    %cst_31 = arith.constant dense<0xFF800000> : vector<16x16xf32>
    %75 = vector.multi_reduction <maximumf>, %73, %cst_31 [2] : vector<16x16x16xf32> to vector<16x16xf32>
    %76 = vector.shape_cast %75 : vector<16x16xf32> to vector<16x16x1xf32>
    %77 = vector.broadcast %76 : vector<16x16x1xf32> to vector<16x16x16xf32>
    %78 = arith.subf %73, %77 : vector<16x16x16xf32>
    %79 = math.exp %78 : vector<16x16x16xf32>
    %cst_32 = arith.constant dense<0.000000e+00> : vector<16x16xf32>
    %80 = vector.multi_reduction <add>, %79, %cst_32 [2] : vector<16x16x16xf32> to vector<16x16xf32>
    %81 = vector.shape_cast %80 : vector<16x16xf32> to vector<16x16x1xf32>
    %82 = tpu.reciprocal %81 {approx = true} : vector<16x16x1xf32> -> vector<16x16x1xf32>
    %83 = vector.broadcast %82 : vector<16x16x1xf32> to vector<16x16x16xf32>
    %84 = arith.mulf %79, %83 : vector<16x16x16xf32>
    %85 = arith.truncf %84 : vector<16x16x16xf32> to vector<16x16x16xbf16>
    %cst_33 = arith.constant dense<0xFF800000> : vector<16x16xf32>
    %86 = vector.multi_reduction <maximumf>, %74, %cst_33 [2] : vector<16x16x16xf32> to vector<16x16xf32>
    %87 = vector.shape_cast %86 : vector<16x16xf32> to vector<16x16x1xf32>
    %88 = vector.broadcast %87 : vector<16x16x1xf32> to vector<16x16x16xf32>
    %89 = arith.subf %74, %88 : vector<16x16x16xf32>
    %90 = math.exp %89 : vector<16x16x16xf32>
    %cst_34 = arith.constant dense<0.000000e+00> : vector<16x16xf32>
    %91 = vector.multi_reduction <add>, %90, %cst_34 [2] : vector<16x16x16xf32> to vector<16x16xf32>
    %92 = vector.shape_cast %91 : vector<16x16xf32> to vector<16x16x1xf32>
    %93 = tpu.reciprocal %92 {approx = true} : vector<16x16x1xf32> -> vector<16x16x1xf32>
    %94 = vector.broadcast %93 : vector<16x16x1xf32> to vector<16x16x16xf32>
    %95 = arith.mulf %90, %94 : vector<16x16x16xf32>
    %96 = arith.truncf %95 : vector<16x16x16xf32> to vector<16x16x16xbf16>
    "tpu.trace_start"() <{level = 10 : i32, message = "twv,tvc->twc"}> : () -> ()
    %cst_35 = arith.constant dense<0.000000e+00> : vector<16x16x8xf32>
    %97 = tpu.matmul %85, %72, %cst_35 {dimension_numbers = #tpu.dot_dimension_numbers<[2], [1], [1], [2], [0, 0, 0, 1, 1, 2], [0], [0]>} : vector<16x16x16xbf16>, vector<16x16x8xbf16>, vector<16x16x8xf32> -> vector<16x16x8xf32>
    %cst_36 = arith.constant dense<0.000000e+00> : vector<16x16x8xf32>
    %98 = tpu.matmul %96, %71, %cst_36 {dimension_numbers = #tpu.dot_dimension_numbers<[2], [1], [1], [2], [0, 0, 0, 1, 1, 2], [0], [0]>} : vector<16x16x16xbf16>, vector<16x16x8xbf16>, vector<16x16x8xf32> -> vector<16x16x8xf32>
    "tpu.trace_stop"() : () -> ()
    %99 = arith.mulf %97, %98 : vector<16x16x8xf32>
    %100 = vector.extract_strided_slice %4 {offsets = [4, 0], sizes = [1, 8], strides = [1, 1]} : vector<5x8xf32> to vector<1x8xf32>
    %101 = vector.shape_cast %100 : vector<1x8xf32> to vector<1x1x8xf32>
    %102 = vector.broadcast %101 : vector<1x1x8xf32> to vector<16x16x8xf32>
    %103 = arith.mulf %99, %102 : vector<16x16x8xf32>
    %cst_37 = arith.constant dense<0.000000e+00> : vector<16x16xf32>
    %104 = vector.multi_reduction <add>, %103, %cst_37 [2] : vector<16x16x8xf32> to vector<16x16xf32>
    %c0_38 = arith.constant 0 : index
    %c0_39 = arith.constant 0 : index
    %105 = memref.load %arg6[%c0_38, %c0_39] : memref<1x1xf32, #tpu.memory_space<smem>>
    %106 = vector.broadcast %105 : f32 to vector<16x16xf32>
    %107 = arith.addf %104, %106 : vector<16x16xf32>
    %c0_40 = arith.constant 0 : index
    %c0_41 = arith.constant 0 : index
    %c0_42 = arith.constant 0 : index
    %108 = vector.load %arg7[%c0_40, %c0_41, %c0_42] : memref<1x16x16xf32, #tpu.memory_space<vmem>>, vector<1x16x16xf32>
    %109 = vector.shape_cast %108 : vector<1x16x16xf32> to vector<16x16xf32>
    %110 = vector.shape_cast %107 : vector<16x16xf32> to vector<1x16x16xf32>
    tpu.vector_store %arg7[%c0_40, %c0_41, %c0_42], %110 {strides = array<i32>} : memref<1x16x16xf32, #tpu.memory_space<vmem>>, vector<1x16x16xf32>,
    return
  }
  func.func @transform_0(%arg0: i32, %arg1: i32) -> (i32, i32, i32) {
    %c0_i32 = arith.constant 0 : i32
    %c0_i32_0 = arith.constant 0 : i32
    return %arg0, %arg1, %c0_i32 : i32, i32, i32
  }
  func.func @transform_1(%arg0: i32, %arg1: i32) -> (i32, i32, i32) {
    %c0_i32 = arith.constant 0 : i32
    %c0_i32_0 = arith.constant 0 : i32
    return %arg0, %arg1, %c0_i32 : i32, i32, i32
  }
  func.func @transform_2(%arg0: i32, %arg1: i32) -> (i32, i32, i32) {
    %c0_i32 = arith.constant 0 : i32
    %c0_i32_0 = arith.constant 0 : i32
    %c0_i32_1 = arith.constant 0 : i32
    %c0_i32_2 = arith.constant 0 : i32
    return %c0_i32, %c0_i32_0, %c0_i32_1 : i32, i32, i32
  }
  func.func @transform_3(%arg0: i32, %arg1: i32) -> (i32, i32) {
    %c0_i32 = arith.constant 0 : i32
    %c0_i32_0 = arith.constant 0 : i32
    %c0_i32_1 = arith.constant 0 : i32
    return %c0_i32, %c0_i32_0 : i32, i32
  }
  func.func @transform_4(%arg0: i32, %arg1: i32) -> (i32, i32) {
    %c0_i32 = arith.constant 0 : i32
    %c0_i32_0 = arith.constant 0 : i32
    %c0_i32_1 = arith.constant 0 : i32
    return %c0_i32, %c0_i32_0 : i32, i32
  }
  func.func @transform_5(%arg0: i32, %arg1: i32) -> (i32, i32, i32) {
    %c0_i32 = arith.constant 0 : i32
    %c0_i32_0 = arith.constant 0 : i32
    return %arg0, %arg1, %c0_i32 : i32, i32, i32
  }
}

</mosaic_0001>

<bundles_post_ra>
// kernel: stereo_info_merge.1
= control target key start
LH: loop header
LB: loop body
LE: loop exit
PB: predicated region body
PF: predicated region fallthrough
CT: control target
= control target key end

     0   :  { %s10570_s0 = inlined_call_operand.vmem [shape: f32[2,256,8], index: 0, kind: input, shape index: {}]   ;;  %s10571_s1 = inlined_call_operand.vmem [shape: f32[2,256,8], index: 1, kind: input, shape index: {}]   ;;  %s10572_s2 = inlined_call_operand.vmem [shape: bf16[4,8,8], index: 2, kind: input, shape index: {}]   ;;  %s10573_s3 = inlined_call_operand.vmem [shape: f32[5,8], index: 3, kind: input, shape index: {}]   ;;  %s10574_s4 = inlined_call_operand.<no memory space> [shape: f32[1,1], index: 4, kind: input, shape index: {}]   ;;  %s10575_s5 = inlined_call_operand.hbm [shape: f32[2,16,16], index: 5, kind: output, shape index: {}]  }
   0x1   :  { %10 = sst [smem:[#allocation2]] %s10574_s4 }
   0x2   :  { %11 = vsyncpa [#allocation4], 0 }
   0x3   :  { %13 = vsyncpa [#allocation4 + $0x1], 0  ;;  %s7755_s20 = smov 0   ;;  %s7757_s21 = smov 0  }
   0x4   :  { %s7759_s22 = smov 0   ;;  %s7761_s23 = smov 0  }
   0x5   :  { %s7763_s24 = smov 0   ;;  %s7765_s25 = smov 0  }
   0x6 LB: > { %s6260_s4 = sadd.s32 4294967295, %s7715_s25   ;;  %s6261_s26 = sadd.s32 4294967294, %s7715_s25   ;;  %s7715_s25 = sphi %s7765_s25, %s19_s25   ;;  %s7711_s24 = sphi %s7763_s24, %s10967_s24   ;;  %s7707_s23 = sphi %s7761_s23, %s10966_s23   ;;  %s7703_s22 = sphi %s7759_s22, %s10965_s22   ;;  %s7699_s21 = sphi %s7757_s21, %s10964_s21   ;;  %s7695_s20 = sphi %s7755_s20, %s10963_s20  }
   0x7   : > { %s31_s27 = sadd.s32 1, %s7711_s24  ;;  %s159_s28 = sadd.s32 1, %s7703_s22 }
   0x8   : > { %p33_p0 = scmp.ge.s32.totalorder %s31_s27, 2  ;;  %p169_p1 = scmp.ne.s32.totalorder %s7703_s22, %s7699_s21 }
   0x9   : > { %p170_p2 = scmp.eq.s32.totalorder %s6260_s4, 1  ;;  %p175_p3 = scmp.ne.s32.totalorder %s7699_s21, %s7695_s20 }
   0xa   : > { %s10969_s27 = smov (%p33_p0, %s31_s27), 0  ;;  %p176_p5 = scmp.eq.s32.totalorder %s6261_s26, 1 }
   0xb   : > { %p7795_p4 = por %p170_p2, %p169_p1  ;;  %s154_s30 = ssub.s32 %s7711_s24, %s10969_s27 }
   0xc   : > { %p6264_p6 = scmp.ge.s32.totalorder %s7715_s25, 1  ;;  %p157_p7 = scmp.eq.s32.totalorder %s154_s30, 0 }
   0xd   : > { %p7802_p8 = por %p176_p5, %p175_p3  ;;  %p229_p9 = scmp.lt.s32.totalorder %s7715_s25, 3 }
   0xe   : > { %s7808_s7 = scalar_select %p157_p7, %s7703_s22, %s159_s28  }
   0xf   : > { %p230_p10 = pnand %p6264_p6, %p229_p9 }
  0x11   : > { %233 = sbr.rel (%p230_p10) target bundleno = 1722 (0x6ba), region = 40 }
  0x18   : > { %p271_p11 = scmp.lt.s32.totalorder %s7707_s23, 1  ;;  %vm357_vm0 = vcmask 64512   ;;  %vm1260_vm1 = vcmask 1043456   ;;  %vm7718_vm2 = vmmov 0   ;;  %vm3599_vm3 = vcmask 130048   ;;  %s267_s13 = sand.u32 1, %s7699_s21  }
  0x19   : > { %vm5985_vm4 = vcmask 130112   ;;  %vm6122_vm5 = vcmask 1041409   ;;  %vm6124_vm6 = vcmask 1042434   ;;  %vm6126_vm7 = vcmask 1043459   ;;  %s6265_s14 = sshll.u32 %s267_s13, 4  ;;  %s6408_s16 = sshll.u32 %s7707_s23, 8 }
  0x1a   : > { %s272_s8 = scalar_select %p271_p11, %s7707_s23, 1  ;;  %vm6128_vm8 = vcmask 1044484   ;;  %vm6130_vm9 = vcmask 1045509   ;;  %vm6132_vm10 = vcmask 1046534   ;;  %vm6134_vm11 = vcmask 1047559  }
  0x1b   : > { %s10514_s4 = scalar_lea.hbm %s10575_s5, %s6408_s16  ;;  %s10524_s23 = scalar_lea.sflag [#allocation4], %s267_s13 }
  0x1c   : > { %s6406_s9 = sshll.u32 %s272_s8, 8  ;;  %s7719_s28 = smov [#allocation3]  }
  0x1d   : > { %s7815_s12 = scalar_lea.vmem %s10571_s1, %s6406_s9  ;;  %s7836_s15 = scalar_lea.vmem %s10570_s0, %s6406_s9 }
  0x1e   : > { %v7818_v0 = vld [vmem:[%s7815_s12] sm:$0xff]  ;;  %v7821_v1 = vld [vmem:[%s7815_s12 + $0x10] sm:$0xff]  ;;  %v7824_v2 = vld [vmem:[%s7815_s12 + $0x8] sm:$0xff]  ;;  %s7641_s30 = sshll.u32 %s7719_s28, 4  ;;  %s7642_s30 = int_to_ptr.vmem [resolvable:$false] %s7641_s30 }
  0x1f   : > { %v775_v3 = vsel %vm357_vm0, %v7818_v0, 0.0  ;;  %v781_v4 = vsel %vm357_vm0, %v7821_v1, 0.0  ;;  %v7831_v5 = vld [vmem:[%s7815_s12 + $0x18] sm:$0xff]  ;;  %v778_v6 = vsel %vm357_vm0, %v7824_v2, 0.0  ;;  %v7843_v8 = vld [vmem:[%s7836_s15] sm:$0xff]  ;;  %v7846_v9 = vld [vmem:[%s7836_s15 + $0x8] sm:$0xff] }
  0x20   : > { %776 = vadd.xlane.f32.xlu0 %v775_v3  ;;  %782 = vadd.xlane.f32.xlu1 %v781_v4  ;;  %v784_v7 = vsel %vm357_vm0, %v7831_v5, 0.0  ;;  %v358_v10 = vsel %vm357_vm0, %v7843_v8, 0.0  ;;  %v361_v11 = vsel %vm357_vm0, %v7846_v9, 0.0  ;;  %v7853_v12 = vld [vmem:[%s7815_s12 + $0x20] sm:$0xff]  ;;  %v7856_v13 = vld [vmem:[%s7815_s12 + $0x28] sm:$0xff]  ;;  %v7863_v16 = vld [vmem:[%s7836_s15 + $0x10] sm:$0xff] }
  0x21   : > { %v787_v14 = vsel %vm357_vm0, %v7853_v12, 0.0  ;;  %v790_v15 = vsel %vm357_vm0, %v7856_v13, 0.0  ;;  %v7866_v17 = vld [vmem:[%s7836_s15 + $0x18] sm:$0xff]  ;;  %v364_v18 = vsel %vm357_vm0, %v7863_v16, 0.0  ;;  %v7873_v20 = vld [vmem:[%s7815_s12 + $0x30] sm:$0xff]  ;;  %v7883_v24 = vld [vmem:[%s7836_s15 + $0x20] sm:$0xff] }
  0x22   : > { %v367_v19 = vsel %vm357_vm0, %v7866_v17, 0.0  ;;  %v7876_v21 = vld [vmem:[%s7815_s12 + $0x38] sm:$0xff]  ;;  %v793_v22 = vsel %vm357_vm0, %v7873_v20, 0.0  ;;  %v7886_v25 = vld [vmem:[%s7836_s15 + $0x28] sm:$0xff]  ;;  %v370_v26 = vsel %vm357_vm0, %v7883_v24, 0.0  ;;  %v7893_v28 = vld [vmem:[%s7815_s12 + $0x40] sm:$0xff] }
  0x23   : > { %v796_v23 = vsel %vm357_vm0, %v7876_v21, 0.0  ;;  %v373_v27 = vsel %vm357_vm0, %v7886_v25, 0.0  ;;  %v7896_v29 = vld [vmem:[%s7815_s12 + $0x48] sm:$0xff]  ;;  %v799_v30 = vsel %vm357_vm0, %v7893_v28, 0.0  ;;  %v7903_v32 = vld [vmem:[%s7836_s15 + $0x30] sm:$0xff]  ;;  %v7906_v33 = vld [vmem:[%s7836_s15 + $0x38] sm:$0xff] }
  0x24   : > { %779 = vadd.xlane.f32.xlu0 %v778_v6  ;;  %785 = vadd.xlane.f32.xlu1 %v784_v7  ;;  %v802_v31 = vsel %vm357_vm0, %v7896_v29, 0.0  ;;  %v376_v34 = vsel %vm357_vm0, %v7903_v32, 0.0  ;;  %v379_v35 = vsel %vm357_vm0, %v7906_v33, 0.0  ;;  %v7913_v36 = vld [vmem:[%s7815_s12 + $0x50] sm:$0xff]  ;;  %v7916_v37 = vld [vmem:[%s7815_s12 + $0x58] sm:$0xff]  ;;  %v7923_v40 = vld [vmem:[%s7836_s15 + $0x40] sm:$0xff] }
  0x25   : > { %v805_v38 = vsel %vm357_vm0, %v7913_v36, 0.0  ;;  %v808_v39 = vsel %vm357_vm0, %v7916_v37, 0.0  ;;  %v7926_v41 = vld [vmem:[%s7836_s15 + $0x48] sm:$0xff]  ;;  %v382_v42 = vsel %vm357_vm0, %v7923_v40, 0.0  ;;  %v7933_v44 = vld [vmem:[%s7815_s12 + $0x60] sm:$0xff]  ;;  %v7943_v48 = vld [vmem:[%s7836_s15 + $0x50] sm:$0xff] }
  0x26   : > { %v385_v43 = vsel %vm357_vm0, %v7926_v41, 0.0  ;;  %v7936_v45 = vld [vmem:[%s7815_s12 + $0x68] sm:$0xff]  ;;  %v811_v46 = vsel %vm357_vm0, %v7933_v44, 0.0  ;;  %v7946_v49 = vld [vmem:[%s7836_s15 + $0x58] sm:$0xff]  ;;  %v388_v50 = vsel %vm357_vm0, %v7943_v48, 0.0  ;;  %v7953_v52 = vld [vmem:[%s7815_s12 + $0x70] sm:$0xff] }
  0x27   : > { %v814_v47 = vsel %vm357_vm0, %v7936_v45, 0.0  ;;  %v391_v51 = vsel %vm357_vm0, %v7946_v49, 0.0  ;;  %v7956_v53 = vld [vmem:[%s7815_s12 + $0x78] sm:$0xff]  ;;  %v817_v54 = vsel %vm357_vm0, %v7953_v52, 0.0  ;;  %v7963_v56 = vld [vmem:[%s7836_s15 + $0x60] sm:$0xff]  ;;  %v7966_v57 = vld [vmem:[%s7836_s15 + $0x68] sm:$0xff] }
  0x28   : > { %359 = vadd.xlane.f32.xlu0 %v358_v10  ;;  %362 = vadd.xlane.f32.xlu1 %v361_v11  ;;  %v820_v55 = vsel %vm357_vm0, %v7956_v53, 0.0  ;;  %v394_v58 = vsel %vm357_vm0, %v7963_v56, 0.0  ;;  %v397_v59 = vsel %vm357_vm0, %v7966_v57, 0.0  ;;  %v7973_v60 = vld [vmem:[%s7815_s12 + $0x80] sm:$0xff]  ;;  %v7976_v61 = vld [vmem:[%s7815_s12 + $0x88] sm:$0xff]  ;;  %v7983_v3 = vld [vmem:[%s7836_s15 + $0x70] sm:$0xff] }
  0x29   : > { %v823_v62 = vsel %vm357_vm0, %v7973_v60, 0.0  ;;  %v826_v63 = vsel %vm357_vm0, %v7976_v61, 0.0  ;;  %v7986_v4 = vld [vmem:[%s7836_s15 + $0x78] sm:$0xff]  ;;  %v400_v6 = vsel %vm357_vm0, %v7983_v3, 0.0  ;;  %v7993_v10 = vld [vmem:[%s7815_s12 + $0x90] sm:$0xff]  ;;  %s7643_s8 = scalar_lea.vmem %s7642_s30, 512 }
  0x2a   : > { %v403_v7 = vsel %vm357_vm0, %v7986_v4, 0.0  ;;  %v7996_v11 = vld [vmem:[%s7815_s12 + $0x98] sm:$0xff] }
  0x2c   : > { %788 = vadd.xlane.f32.xlu0 %v787_v14  ;;  %791 = vadd.xlane.f32.xlu1 %v790_v15  ;;  %v829_v14 = vsel %vm357_vm0, %v7993_v10, 0.0  ;;  %v832_v15 = vsel %vm357_vm0, %v7996_v11, 0.0 }
  0x30   : > { %365 = vadd.xlane.f32.xlu0 %v364_v18  ;;  %368 = vadd.xlane.f32.xlu1 %v367_v19  ;;  %v8003_v18 = vld [vmem:[%s7836_s15 + $0x80] sm:$0xff]  ;;  %v8006_v19 = vld [vmem:[%s7836_s15 + $0x88] sm:$0xff] }
  0x34   : > { %794 = vadd.xlane.f32.xlu0 %v793_v22  ;;  %797 = vadd.xlane.f32.xlu1 %v796_v23  ;;  %v406_v22 = vsel %vm357_vm0, %v8003_v18, 0.0  ;;  %v409_v23 = vsel %vm357_vm0, %v8006_v19, 0.0 }
  0x38   : > { %371 = vadd.xlane.f32.xlu0 %v370_v26  ;;  %374 = vadd.xlane.f32.xlu1 %v373_v27  ;;  %v8013_v26 = vld [vmem:[%s7815_s12 + $0xa0] sm:$0xff]  ;;  %v8016_v27 = vld [vmem:[%s7815_s12 + $0xa8] sm:$0xff] }
  0x3c   : > { %800 = vadd.xlane.f32.xlu0 %v799_v30  ;;  %803 = vadd.xlane.f32.xlu1 %v802_v31  ;;  %v835_v30 = vsel %vm357_vm0, %v8013_v26, 0.0  ;;  %v838_v31 = vsel %vm357_vm0, %v8016_v27, 0.0 }
  0x40   : > { %377 = vadd.xlane.f32.xlu0 %v376_v34  ;;  %380 = vadd.xlane.f32.xlu1 %v379_v35  ;;  %v8023_v34 = vld [vmem:[%s7836_s15 + $0x90] sm:$0xff]  ;;  %v8026_v35 = vld [vmem:[%s7836_s15 + $0x98] sm:$0xff] }
  0x44   : > { %806 = vadd.xlane.f32.xlu0 %v805_v38  ;;  %809 = vadd.xlane.f32.xlu1 %v808_v39  ;;  %v412_v38 = vsel %vm357_vm0, %v8023_v34, 0.0  ;;  %v415_v39 = vsel %vm357_vm0, %v8026_v35, 0.0 }
  0x48   : > { %383 = vadd.xlane.f32.xlu0 %v382_v42  ;;  %386 = vadd.xlane.f32.xlu1 %v385_v43  ;;  %v8033_v42 = vld [vmem:[%s7815_s12 + $0xb0] sm:$0xff]  ;;  %v8036_v43 = vld [vmem:[%s7815_s12 + $0xb8] sm:$0xff] }
  0x4c   : > { %812 = vadd.xlane.f32.xlu0 %v811_v46  ;;  %815 = vadd.xlane.f32.xlu1 %v814_v47  ;;  %v841_v46 = vsel %vm357_vm0, %v8033_v42, 0.0  ;;  %v844_v47 = vsel %vm357_vm0, %v8036_v43, 0.0 }
  0x50   : > { %389 = vadd.xlane.f32.xlu0 %v388_v50  ;;  %392 = vadd.xlane.f32.xlu1 %v391_v51  ;;  %v8043_v50 = vld [vmem:[%s7836_s15 + $0xa0] sm:$0xff]  ;;  %v8046_v51 = vld [vmem:[%s7836_s15 + $0xa8] sm:$0xff] }
  0x54   : > { %818 = vadd.xlane.f32.xlu0 %v817_v54  ;;  %821 = vadd.xlane.f32.xlu1 %v820_v55  ;;  %v418_v54 = vsel %vm357_vm0, %v8043_v50, 0.0  ;;  %v421_v55 = vsel %vm357_vm0, %v8046_v51, 0.0 }
  0x58   : > { %395 = vadd.xlane.f32.xlu0 %v394_v58  ;;  %398 = vadd.xlane.f32.xlu1 %v397_v59  ;;  %v8053_v58 = vld [vmem:[%s7815_s12 + $0xc0] sm:$0xff]  ;;  %v8056_v59 = vld [vmem:[%s7815_s12 + $0xc8] sm:$0xff] }
  0x5c   : > { %824 = vadd.xlane.f32.xlu0 %v823_v62  ;;  %827 = vadd.xlane.f32.xlu1 %v826_v63  ;;  %v847_v62 = vsel %vm357_vm0, %v8053_v58, 0.0  ;;  %v850_v63 = vsel %vm357_vm0, %v8056_v59, 0.0 }
  0x60   : > { %401 = vadd.xlane.f32.xlu0 %v400_v6  ;;  %404 = vadd.xlane.f32.xlu1 %v403_v7  ;;  %v8063_v6 = vld [vmem:[%s7836_s15 + $0xb0] sm:$0xff]  ;;  %v8066_v7 = vld [vmem:[%s7836_s15 + $0xb8] sm:$0xff] }
  0x64   : > { %830 = vadd.xlane.f32.xlu0 %v829_v14  ;;  %833 = vadd.xlane.f32.xlu1 %v832_v15  ;;  %v424_v14 = vsel %vm357_vm0, %v8063_v6, 0.0  ;;  %v427_v15 = vsel %vm357_vm0, %v8066_v7, 0.0 }
  0x68   : > { %407 = vadd.xlane.f32.xlu0 %v406_v22  ;;  %410 = vadd.xlane.f32.xlu1 %v409_v23  ;;  %v8073_v22 = vld [vmem:[%s7815_s12 + $0xd0] sm:$0xff]  ;;  %v8076_v23 = vld [vmem:[%s7815_s12 + $0xd8] sm:$0xff] }
  0x69   : > { %10698 = vst [vmem:[#allocation6_spill] sm:$0xff] %v8073_v22  ;;  %10699 = vst [vmem:[#allocation7_spill] sm:$0xff] %v8076_v23 }
  0x6c   : > { %836 = vadd.xlane.f32.xlu0 %v835_v30  ;;  %839 = vadd.xlane.f32.xlu1 %v838_v31  ;;  %v853_v30 = vsel %vm357_vm0, %v8073_v22, 0.0  ;;  %v856_v31 = vsel %vm357_vm0, %v8076_v23, 0.0 }
  0x70   : > { %413 = vadd.xlane.f32.xlu0 %v412_v38  ;;  %416 = vadd.xlane.f32.xlu1 %v415_v39  ;;  %v8083_v38 = vld [vmem:[%s7836_s15 + $0xc0] sm:$0xff]  ;;  %v8086_v39 = vld [vmem:[%s7836_s15 + $0xc8] sm:$0xff] }
  0x71   : > { %10700 = vst [vmem:[#allocation8_spill] sm:$0xff] %v8083_v38  ;;  %10701 = vst [vmem:[#allocation9_spill] sm:$0xff] %v8086_v39 }
  0x74   : > { %842 = vadd.xlane.f32.xlu0 %v841_v46  ;;  %845 = vadd.xlane.f32.xlu1 %v844_v47  ;;  %v430_v46 = vsel %vm357_vm0, %v8083_v38, 0.0  ;;  %v433_v47 = vsel %vm357_vm0, %v8086_v39, 0.0 }
  0x78   : > { %419 = vadd.xlane.f32.xlu0 %v418_v54  ;;  %422 = vadd.xlane.f32.xlu1 %v421_v55  ;;  %v8093_v54 = vld [vmem:[%s7815_s12 + $0xe0] sm:$0xff]  ;;  %v8096_v55 = vld [vmem:[%s7815_s12 + $0xe8] sm:$0xff] }
  0x79   : > { %10702 = vst [vmem:[#allocation10_spill] sm:$0xff] %v8093_v54  ;;  %10703 = vst [vmem:[#allocation11_spill] sm:$0xff] %v8096_v55 }
  0x7c   : > { %848 = vadd.xlane.f32.xlu0 %v847_v62  ;;  %851 = vadd.xlane.f32.xlu1 %v850_v63  ;;  %v859_v62 = vsel %vm357_vm0, %v8093_v54, 0.0  ;;  %v862_v63 = vsel %vm357_vm0, %v8096_v55, 0.0  ;;  %v8126_v54 = vld [vmem:[%s7836_s15 + $0xe8] sm:$0xff] }
  0x7d   : > { %10709 = vst [vmem:[#allocation17_spill] sm:$0xff] %v8126_v54 }
  0x80   : > { %425 = vadd.xlane.f32.xlu0 %v424_v14  ;;  %428 = vadd.xlane.f32.xlu1 %v427_v15  ;;  %v8103_v14 = vld [vmem:[%s7836_s15 + $0xd0] sm:$0xff]  ;;  %v8106_v15 = vld [vmem:[%s7836_s15 + $0xd8] sm:$0xff] }
  0x81   : > { %10704 = vst [vmem:[#allocation12_spill] sm:$0xff] %v8103_v14  ;;  %10705 = vst [vmem:[#allocation13_spill] sm:$0xff] %v8106_v15 }
  0x84   : > { %854 = vadd.xlane.f32.xlu0 %v853_v30  ;;  %857 = vadd.xlane.f32.xlu1 %v856_v31  ;;  %v436_v30 = vsel %vm357_vm0, %v8103_v14, 0.0  ;;  %v439_v31 = vsel %vm357_vm0, %v8106_v15, 0.0  ;;  %v445_v14 = vsel %vm357_vm0, %v8126_v54, 0.0 }
  0x88   : > { %431 = vadd.xlane.f32.xlu0 %v430_v46  ;;  %434 = vadd.xlane.f32.xlu1 %v433_v47  ;;  %v8113_v46 = vld [vmem:[%s7815_s12 + $0xf0] sm:$0xff]  ;;  %v8116_v47 = vld [vmem:[%s7815_s12 + $0xf8] sm:$0xff] }
  0x89   : > { %10706 = vst [vmem:[#allocation14_spill] sm:$0xff] %v8113_v46  ;;  %10707 = vst [vmem:[#allocation15_spill] sm:$0xff] %v8116_v47  ;;  %v865_v55 = vsel %vm357_vm0, %v8113_v46, 0.0 }
  0x8c   : > { %860 = vadd.xlane.f32.xlu0 %v859_v62  ;;  %863 = vadd.xlane.f32.xlu1 %v862_v63  ;;  %v868_v62 = vsel %vm357_vm0, %v8116_v47, 0.0  ;;  %v8123_v63 = vld [vmem:[%s7836_s15 + $0xe0] sm:$0xff] }
  0x8d   : > { %10708 = vst [vmem:[#allocation16_spill] sm:$0xff] %v8123_v63  ;;  %v442_v15 = vsel %vm357_vm0, %v8123_v63, 0.0 }
  0x90   : > { %437 = vadd.xlane.f32.xlu0 %v436_v30  ;;  %440 = vadd.xlane.f32.xlu1 %v439_v31  ;;  %v8133_v30 = vld [vmem:[%s7836_s15 + $0xf0] sm:$0xff]  ;;  %v8136_v31 = vld [vmem:[%s7836_s15 + $0xf8] sm:$0xff] }
  0x91   : > { %10710 = vst [vmem:[#allocation18_spill] sm:$0xff] %v8133_v30  ;;  %v448_v47 = vsel %vm357_vm0, %v8133_v30, 0.0  ;;  %v451_v46 = vsel %vm357_vm0, %v8136_v31, 0.0 }
  0x94   : > { %866 = vadd.xlane.f32.xlu0 %v865_v55  ;;  %869 = vadd.xlane.f32.xlu1 %v868_v62 }
  0x98   : > { %443 = vadd.xlane.f32.xlu0 %v442_v15  ;;  %446 = vadd.xlane.f32.xlu1 %v445_v14 }
  0x9c   : > { %449 = vadd.xlane.f32.xlu0 %v448_v47  ;;  %452 = vadd.xlane.f32.xlu1 %v451_v46 }
  0xad   : > { %v777_v55 = vpop.xlane.xlu0 %776  ;;  %v783_v62 = vpop.xlane.xlu1 %782 }
  0xae   : > { %v871_v63 = vmul.f32 0.125, %v777_v55  ;;  %v873_v39 = vmul.f32 0.125, %v783_v62 }
  0xb0   : > { %v8143_v54 = vsub.f32 %v7818_v0, %v871_v63  ;;  %v8146_v38 = vsub.f32 %v7821_v1, %v873_v39 }
  0xb1   : > { %v780_v15 = vpop.xlane.xlu0 %779  ;;  %v786_v14 = vpop.xlane.xlu1 %785 }
  0xb2   : > { %10711 = vst [vmem:[#allocation19_spill] sm:$0xff] %v8146_v38  ;;  %v872_v23 = vmul.f32 0.125, %v780_v15  ;;  %v874_v22 = vmul.f32 0.125, %v786_v14  ;;  %v935_v30 = vmul.f32 %v8143_v54, %v8143_v54  ;;  %v937_v46 = vmul.f32 %v8146_v38, %v8146_v38 }
  0xb4   : > { %v8153_v47 = vsub.f32 %v7824_v2, %v872_v23  ;;  %v8156_v55 = vsub.f32 %v7831_v5, %v874_v22  ;;  %v967_v0 = vsel %vm357_vm0, %v935_v30, 0.0  ;;  %v973_v63 = vsel %vm357_vm0, %v937_v46, 0.0 }
  0xb5   : > { %968 = vadd.xlane.f32.xlu0 %v967_v0  ;;  %v360_v1 = vpop.xlane.xlu0 %359  ;;  %v363_v39 = vpop.xlane.xlu1 %362 }
  0xb6   : > { %v455_v62 = vmul.f32 0.125, %v360_v1  ;;  %v936_v15 = vmul.f32 %v8153_v47, %v8153_v47  ;;  %v456_v14 = vmul.f32 0.125, %v363_v39  ;;  %v938_v38 = vmul.f32 %v8156_v55, %v8156_v55 }
  0xb8   : > { %v8165_v2 = vsub.f32 %v7843_v8, %v455_v62  ;;  %v970_v5 = vsel %vm357_vm0, %v936_v15, 0.0  ;;  %v8169_v22 = vsub.f32 %v7846_v9, %v456_v14  ;;  %v976_v30 = vsel %vm357_vm0, %v938_v38, 0.0 }
  0xb9   : > { %971 = vadd.xlane.f32.xlu1 %v970_v5  ;;  %974 = vadd.xlane.f32.xlu0 %v973_v63  ;;  %v789_v23 = vpop.xlane.xlu0 %788  ;;  %v792_v46 = vpop.xlane.xlu1 %791 }
  0xba   : > { %v875_v0 = vmul.f32 0.125, %v789_v23  ;;  %v876_v1 = vmul.f32 0.125, %v792_v46  ;;  %v519_v39 = vmul.f32 %v8165_v2, %v8165_v2  ;;  %v520_v8 = vmul.f32 %v8169_v22, %v8169_v22 }
  0xbc   : > { %v8177_v62 = vsub.f32 %v7853_v12, %v875_v0  ;;  %v8180_v9 = vsub.f32 %v7856_v13, %v876_v1  ;;  %v551_v63 = vsel %vm357_vm0, %v519_v39, 0.0  ;;  %v554_v15 = vsel %vm357_vm0, %v520_v8, 0.0 }
  0xbd   : > { %977 = vadd.xlane.f32.xlu1 %v976_v30  ;;  %552 = vadd.xlane.f32.xlu0 %v551_v63  ;;  %v366_v38 = vpop.xlane.xlu0 %365  ;;  %v369_v14 = vpop.xlane.xlu1 %368 }
  0xbe   : > { %v457_v5 = vmul.f32 0.125, %v366_v38  ;;  %v458_v23 = vmul.f32 0.125, %v369_v14  ;;  %v939_v46 = vmul.f32 %v8177_v62, %v8177_v62  ;;  %v940_v12 = vmul.f32 %v8180_v9, %v8180_v9 }
  0xc0   : > { %v8189_v0 = vsub.f32 %v7863_v16, %v457_v5  ;;  %v8192_v13 = vsub.f32 %v7866_v17, %v458_v23  ;;  %v979_v30 = vsel %vm357_vm0, %v939_v46, 0.0  ;;  %v982_v39 = vsel %vm357_vm0, %v940_v12, 0.0 }
  0xc1   : > { %555 = vadd.xlane.f32.xlu1 %v554_v15  ;;  %980 = vadd.xlane.f32.xlu0 %v979_v30  ;;  %v795_v1 = vpop.xlane.xlu0 %794  ;;  %v798_v8 = vpop.xlane.xlu1 %797 }
  0xc2   : > { %v877_v63 = vmul.f32 0.125, %v795_v1  ;;  %v878_v38 = vmul.f32 0.125, %v798_v8  ;;  %v521_v14 = vmul.f32 %v8189_v0, %v8189_v0  ;;  %v522_v16 = vmul.f32 %v8192_v13, %v8192_v13 }
  0xc4   : > { %v8201_v5 = vsub.f32 %v7873_v20, %v877_v63  ;;  %v8204_v17 = vsub.f32 %v7876_v21, %v878_v38  ;;  %v557_v15 = vsel %vm357_vm0, %v521_v14, 0.0  ;;  %v560_v46 = vsel %vm357_vm0, %v522_v16, 0.0 }
  0xc5   : > { %983 = vadd.xlane.f32.xlu1 %v982_v39  ;;  %558 = vadd.xlane.f32.xlu0 %v557_v15  ;;  %v372_v23 = vpop.xlane.xlu0 %371  ;;  %v375_v12 = vpop.xlane.xlu1 %374 }
  0xc6   : > { %v459_v30 = vmul.f32 0.125, %v372_v23  ;;  %v460_v1 = vmul.f32 0.125, %v375_v12  ;;  %v941_v8 = vmul.f32 %v8201_v5, %v8201_v5  ;;  %v942_v20 = vmul.f32 %v8204_v17, %v8204_v17 }
  0xc8   : > { %v8213_v63 = vsub.f32 %v7883_v24, %v459_v30  ;;  %v8216_v21 = vsub.f32 %v7886_v25, %v460_v1  ;;  %v985_v39 = vsel %vm357_vm0, %v941_v8, 0.0  ;;  %v988_v14 = vsel %vm357_vm0, %v942_v20, 0.0 }
  0xc9   : > { %561 = vadd.xlane.f32.xlu1 %v560_v46  ;;  %986 = vadd.xlane.f32.xlu0 %v985_v39  ;;  %v801_v38 = vpop.xlane.xlu0 %800  ;;  %v804_v16 = vpop.xlane.xlu1 %803 }
  0xca   : > { %v879_v15 = vmul.f32 0.125, %v801_v38  ;;  %v880_v23 = vmul.f32 0.125, %v804_v16  ;;  %v523_v12 = vmul.f32 %v8213_v63, %v8213_v63  ;;  %v524_v24 = vmul.f32 %v8216_v21, %v8216_v21 }
  0xcc   : > { %v8225_v30 = vsub.f32 %v7893_v28, %v879_v15  ;;  %v8228_v25 = vsub.f32 %v7896_v29, %v880_v23  ;;  %v563_v46 = vsel %vm357_vm0, %v523_v12, 0.0  ;;  %v566_v8 = vsel %vm357_vm0, %v524_v24, 0.0 }
  0xcd   : > { %989 = vadd.xlane.f32.xlu1 %v988_v14  ;;  %564 = vadd.xlane.f32.xlu0 %v563_v46  ;;  %v378_v1 = vpop.xlane.xlu0 %377  ;;  %v381_v20 = vpop.xlane.xlu1 %380 }
  0xce   : > { %v461_v39 = vmul.f32 0.125, %v378_v1  ;;  %v462_v38 = vmul.f32 0.125, %v381_v20  ;;  %v943_v16 = vmul.f32 %v8225_v30, %v8225_v30  ;;  %v944_v28 = vmul.f32 %v8228_v25, %v8228_v25 }
  0xd0   : > { %v8237_v15 = vsub.f32 %v7903_v32, %v461_v39  ;;  %v8240_v29 = vsub.f32 %v7906_v33, %v462_v38  ;;  %v991_v14 = vsel %vm357_vm0, %v943_v16, 0.0  ;;  %v994_v12 = vsel %vm357_vm0, %v944_v28, 0.0 }
  0xd1   : > { %567 = vadd.xlane.f32.xlu1 %v566_v8  ;;  %992 = vadd.xlane.f32.xlu0 %v991_v14  ;;  %v807_v23 = vpop.xlane.xlu0 %806  ;;  %v810_v24 = vpop.xlane.xlu1 %809 }
  0xd2   : > { %v881_v46 = vmul.f32 0.125, %v807_v23  ;;  %v882_v1 = vmul.f32 0.125, %v810_v24  ;;  %v525_v20 = vmul.f32 %v8237_v15, %v8237_v15  ;;  %v526_v32 = vmul.f32 %v8240_v29, %v8240_v29 }
  0xd4   : > { %v8249_v39 = vsub.f32 %v7913_v36, %v881_v46  ;;  %v8252_v33 = vsub.f32 %v7916_v37, %v882_v1  ;;  %v569_v8 = vsel %vm357_vm0, %v525_v20, 0.0  ;;  %v572_v16 = vsel %vm357_vm0, %v526_v32, 0.0 }
  0xd5   : > { %995 = vadd.xlane.f32.xlu1 %v994_v12  ;;  %570 = vadd.xlane.f32.xlu0 %v569_v8  ;;  %v384_v38 = vpop.xlane.xlu0 %383  ;;  %v387_v28 = vpop.xlane.xlu1 %386 }
  0xd6   : > { %v463_v14 = vmul.f32 0.125, %v384_v38  ;;  %v464_v23 = vmul.f32 0.125, %v387_v28  ;;  %v945_v24 = vmul.f32 %v8249_v39, %v8249_v39  ;;  %v946_v36 = vmul.f32 %v8252_v33, %v8252_v33 }
  0xd8   : > { %v8261_v46 = vsub.f32 %v7923_v40, %v463_v14  ;;  %v8264_v37 = vsub.f32 %v7926_v41, %v464_v23  ;;  %v997_v12 = vsel %vm357_vm0, %v945_v24, 0.0  ;;  %v1000_v20 = vsel %vm357_vm0, %v946_v36, 0.0  ;;  %v6286_v41 = vld [vmem:[%s10572_s2 + $0x4] sm:$0xf] }
  0xd9   : > { %573 = vadd.xlane.f32.xlu1 %v572_v16  ;;  %998 = vadd.xlane.f32.xlu0 %v997_v12  ;;  %v813_v1 = vpop.xlane.xlu0 %812  ;;  %v816_v32 = vpop.xlane.xlu1 %815 }
  0xda   : > { %10712 = vst [vmem:[#allocation20_spill] sm:$0xff] %v8264_v37  ;;  %v883_v8 = vmul.f32 0.125, %v813_v1  ;;  %v884_v38 = vmul.f32 0.125, %v816_v32  ;;  %v527_v28 = vmul.f32 %v8261_v46, %v8261_v46  ;;  %v528_v40 = vmul.f32 %v8264_v37, %v8264_v37  ;;  %7126 = vmatprep.subr.msk.bf16.mxu1 %vm1260_vm1, %v6286_v41 }
  0xdb   : > { %v1496_v1 = vsel %vm1260_vm1, %v6286_v41, 0 }
  0xdc   : > { %v8276_v16 = vsub.f32 %v7933_v44, %v883_v8  ;;  %v8279_v14 = vsub.f32 %v7936_v45, %v884_v38  ;;  %v575_v23 = vsel %vm357_vm0, %v527_v28, 0.0  ;;  %v578_v36 = vsel %vm357_vm0, %v528_v40, 0.0  ;;  %6640 = vmatpush3.bf16.msra.mxu1 %v1496_v1 }
  0xdd   : > { %1001 = vadd.xlane.f32.xlu1 %v1000_v20  ;;  %576 = vadd.xlane.f32.xlu0 %v575_v23  ;;  %v390_v24 = vpop.xlane.xlu0 %389  ;;  %v393_v12 = vpop.xlane.xlu1 %392 }
  0xde   : > { %v465_v32 = vmul.f32 0.125, %v390_v24  ;;  %v466_v37 = vmul.f32 0.125, %v393_v12  ;;  %v947_v44 = vmul.f32 %v8276_v16, %v8276_v16  ;;  %v948_v45 = vmul.f32 %v8279_v14, %v8279_v14 }
  0xe0   : > { %v8290_v8 = vsub.f32 %v7943_v48, %v465_v32  ;;  %v8293_v20 = vsub.f32 %v7946_v49, %v466_v37  ;;  %v1003_v38 = vsel %vm357_vm0, %v947_v44, 0.0  ;;  %v1006_v40 = vsel %vm357_vm0, %v948_v45, 0.0 }
  0xe1   : > { %579 = vadd.xlane.f32.xlu1 %v578_v36  ;;  %1004 = vadd.xlane.f32.xlu0 %v1003_v38  ;;  %v819_v28 = vpop.xlane.xlu0 %818  ;;  %v822_v41 = vpop.xlane.xlu1 %821 }
  0xe2   : > { %v885_v23 = vmul.f32 0.125, %v819_v28  ;;  %v886_v24 = vmul.f32 0.125, %v822_v41  ;;  %v529_v12 = vmul.f32 %v8290_v8, %v8290_v8  ;;  %v530_v48 = vmul.f32 %v8293_v20, %v8293_v20 }
  0xe4   : > { %v8302_v1 = vsub.f32 %v7953_v52, %v885_v23  ;;  %v8305_v49 = vsub.f32 %v7956_v53, %v886_v24  ;;  %v581_v37 = vsel %vm357_vm0, %v529_v12, 0.0  ;;  %v584_v32 = vsel %vm357_vm0, %v530_v48, 0.0  ;;  %v1207_v53 = vld [vmem:[%s10572_s2] sm:$0xf] }
  0xe5   : > { %1007 = vadd.xlane.f32.xlu1 %v1006_v40  ;;  %582 = vadd.xlane.f32.xlu0 %v581_v37  ;;  %v396_v36 = vpop.xlane.xlu0 %395  ;;  %v399_v44 = vpop.xlane.xlu1 %398  ;;  %v1262_v40 = vsel %vm1260_vm1, %v1207_v53, 0 }
  0xe6   : > { %v467_v45 = vmul.f32 0.125, %v396_v36  ;;  %v468_v38 = vmul.f32 0.125, %v399_v44  ;;  %v949_v28 = vmul.f32 %v8302_v1, %v8302_v1  ;;  %v950_v52 = vmul.f32 %v8305_v49, %v8305_v49  ;;  %7125 = vmatprep.subr.msk.bf16.mxu0 %vm1260_vm1, %v1207_v53 }
  0xe7   : > { %6606 = vmatpush3.bf16.msra.mxu0 %v1262_v40 }
  0xe8   : > { %v8319_v41 = vsub.f32 %v7963_v56, %v467_v45  ;;  %v8322_v23 = vsub.f32 %v7966_v57, %v468_v38  ;;  %v1009_v24 = vsel %vm357_vm0, %v949_v28, 0.0  ;;  %v1012_v48 = vsel %vm357_vm0, %v950_v52, 0.0 }
  0xe9   : > { %585 = vadd.xlane.f32.xlu1 %v584_v32  ;;  %1010 = vadd.xlane.f32.xlu0 %v1009_v24  ;;  %v825_v12 = vpop.xlane.xlu0 %824  ;;  %v828_v37 = vpop.xlane.xlu1 %827 }
  0xea   : > { %v887_v36 = vmul.f32 0.125, %v825_v12  ;;  %v888_v44 = vmul.f32 0.125, %v828_v37  ;;  %v531_v53 = vmul.f32 %v8319_v41, %v8319_v41  ;;  %v532_v56 = vmul.f32 %v8322_v23, %v8322_v23 }
  0xec   : > { %v8331_v57 = vsub.f32 %v7973_v60, %v887_v36  ;;  %v8334_v45 = vsub.f32 %v7976_v61, %v888_v44  ;;  %v587_v32 = vsel %vm357_vm0, %v531_v53, 0.0  ;;  %v590_v28 = vsel %vm357_vm0, %v532_v56, 0.0 }
  0xed   : > { %1013 = vadd.xlane.f32.xlu1 %v1012_v48  ;;  %588 = vadd.xlane.f32.xlu0 %v587_v32  ;;  %v402_v38 = vpop.xlane.xlu0 %401  ;;  %v405_v52 = vpop.xlane.xlu1 %404 }
  0xee   : > { %v469_v40 = vmul.f32 0.125, %v402_v38  ;;  %v470_v24 = vmul.f32 0.125, %v405_v52  ;;  %v951_v12 = vmul.f32 %v8331_v57, %v8331_v57  ;;  %v952_v60 = vmul.f32 %v8334_v45, %v8334_v45 }
  0xf0   : > { %v8343_v37 = vsub.f32 %v7983_v3, %v469_v40  ;;  %v8346_v61 = vsub.f32 %v7986_v4, %v470_v24  ;;  %v1015_v48 = vsel %vm357_vm0, %v951_v12, 0.0  ;;  %v1018_v44 = vsel %vm357_vm0, %v952_v60, 0.0 }
  0xf1   : > { %591 = vadd.xlane.f32.xlu1 %v590_v28  ;;  %1016 = vadd.xlane.f32.xlu0 %v1015_v48  ;;  %v831_v36 = vpop.xlane.xlu0 %830  ;;  %v834_v53 = vpop.xlane.xlu1 %833 }
  0xf2   : > { %v889_v56 = vmul.f32 0.125, %v831_v36  ;;  %v890_v32 = vmul.f32 0.125, %v834_v53  ;;  %v533_v38 = vmul.f32 %v8343_v37, %v8343_v37  ;;  %v534_v3 = vmul.f32 %v8346_v61, %v8346_v61 }
  0xf4   : > { %v8355_v52 = vsub.f32 %v7993_v10, %v889_v56  ;;  %v8358_v4 = vsub.f32 %v7996_v11, %v890_v32  ;;  %v593_v28 = vsel %vm357_vm0, %v533_v38, 0.0  ;;  %v596_v24 = vsel %vm357_vm0, %v534_v3, 0.0 }
  0xf5   : > { %1019 = vadd.xlane.f32.xlu1 %v1018_v44  ;;  %594 = vadd.xlane.f32.xlu0 %v593_v28  ;;  %v408_v40 = vpop.xlane.xlu0 %407  ;;  %v411_v12 = vpop.xlane.xlu1 %410 }
  0xf6   : > { %v471_v60 = vmul.f32 0.125, %v408_v40  ;;  %v472_v48 = vmul.f32 0.125, %v411_v12  ;;  %v953_v36 = vmul.f32 %v8355_v52, %v8355_v52  ;;  %v954_v10 = vmul.f32 %v8358_v4, %v8358_v4 }
  0xf8   : > { %v8367_v53 = vsub.f32 %v8003_v18, %v471_v60  ;;  %v8370_v11 = vsub.f32 %v8006_v19, %v472_v48  ;;  %v1021_v44 = vsel %vm357_vm0, %v953_v36, 0.0  ;;  %v1024_v32 = vsel %vm357_vm0, %v954_v10, 0.0 }
  0xf9   : > { %597 = vadd.xlane.f32.xlu1 %v596_v24  ;;  %1022 = vadd.xlane.f32.xlu0 %v1021_v44  ;;  %v837_v56 = vpop.xlane.xlu0 %836  ;;  %v840_v38 = vpop.xlane.xlu1 %839 }
  0xfa   : > { %v891_v3 = vmul.f32 0.125, %v837_v56  ;;  %v892_v28 = vmul.f32 0.125, %v840_v38  ;;  %v535_v40 = vmul.f32 %v8367_v53, %v8367_v53  ;;  %v536_v18 = vmul.f32 %v8370_v11, %v8370_v11 }
  0xfc   : > { %v8379_v12 = vsub.f32 %v8013_v26, %v891_v3  ;;  %v8382_v19 = vsub.f32 %v8016_v27, %v892_v28  ;;  %v599_v24 = vsel %vm357_vm0, %v535_v40, 0.0  ;;  %v602_v48 = vsel %vm357_vm0, %v536_v18, 0.0 }
  0xfd   : > { %1025 = vadd.xlane.f32.xlu1 %v1024_v32  ;;  %600 = vadd.xlane.f32.xlu0 %v599_v24  ;;  %v414_v60 = vpop.xlane.xlu0 %413  ;;  %v417_v36 = vpop.xlane.xlu1 %416 }
  0xfe   : > { %v473_v10 = vmul.f32 0.125, %v414_v60  ;;  %v474_v44 = vmul.f32 0.125, %v417_v36  ;;  %v955_v56 = vmul.f32 %v8379_v12, %v8379_v12  ;;  %v956_v26 = vmul.f32 %v8382_v19, %v8382_v19 }
 0x100   : > { %v8391_v38 = vsub.f32 %v8023_v34, %v473_v10  ;;  %v8394_v27 = vsub.f32 %v8026_v35, %v474_v44  ;;  %v1027_v32 = vsel %vm357_vm0, %v955_v56, 0.0  ;;  %v1030_v28 = vsel %vm357_vm0, %v956_v26, 0.0 }
 0x101   : > { %603 = vadd.xlane.f32.xlu1 %v602_v48  ;;  %1028 = vadd.xlane.f32.xlu0 %v1027_v32  ;;  %v843_v3 = vpop.xlane.xlu0 %842  ;;  %v846_v40 = vpop.xlane.xlu1 %845 }
 0x102   : > { %v893_v18 = vmul.f32 0.125, %v843_v3  ;;  %v894_v24 = vmul.f32 0.125, %v846_v40  ;;  %v537_v60 = vmul.f32 %v8391_v38, %v8391_v38  ;;  %v538_v34 = vmul.f32 %v8394_v27, %v8394_v27 }
 0x104   : > { %v8403_v36 = vsub.f32 %v8033_v42, %v893_v18  ;;  %v8406_v35 = vsub.f32 %v8036_v43, %v894_v24  ;;  %v605_v48 = vsel %vm357_vm0, %v537_v60, 0.0  ;;  %v608_v44 = vsel %vm357_vm0, %v538_v34, 0.0 }
 0x105   : > { %1031 = vadd.xlane.f32.xlu1 %v1030_v28  ;;  %606 = vadd.xlane.f32.xlu0 %v605_v48  ;;  %v420_v10 = vpop.xlane.xlu0 %419  ;;  %v423_v56 = vpop.xlane.xlu1 %422 }
 0x106   : > { %v475_v26 = vmul.f32 0.125, %v420_v10  ;;  %v476_v32 = vmul.f32 0.125, %v423_v56  ;;  %v957_v3 = vmul.f32 %v8403_v36, %v8403_v36  ;;  %v958_v42 = vmul.f32 %v8406_v35, %v8406_v35 }
 0x108   : > { %v8415_v40 = vsub.f32 %v8043_v50, %v475_v26  ;;  %v8418_v43 = vsub.f32 %v8046_v51, %v476_v32  ;;  %v1033_v28 = vsel %vm357_vm0, %v957_v3, 0.0  ;;  %v1036_v24 = vsel %vm357_vm0, %v958_v42, 0.0 }
 0x109   : > { %609 = vadd.xlane.f32.xlu1 %v608_v44  ;;  %1034 = vadd.xlane.f32.xlu0 %v1033_v28  ;;  %v849_v18 = vpop.xlane.xlu0 %848  ;;  %v852_v60 = vpop.xlane.xlu1 %851 }
 0x10a   : > { %v895_v34 = vmul.f32 0.125, %v849_v18  ;;  %v896_v48 = vmul.f32 0.125, %v852_v60  ;;  %v539_v10 = vmul.f32 %v8415_v40, %v8415_v40  ;;  %v540_v50 = vmul.f32 %v8418_v43, %v8418_v43 }
 0x10c   : > { %v8427_v56 = vsub.f32 %v8053_v58, %v895_v34  ;;  %v8430_v51 = vsub.f32 %v8056_v59, %v896_v48  ;;  %v611_v44 = vsel %vm357_vm0, %v539_v10, 0.0  ;;  %v614_v32 = vsel %vm357_vm0, %v540_v50, 0.0 }
 0x10d   : > { %1037 = vadd.xlane.f32.xlu1 %v1036_v24  ;;  %612 = vadd.xlane.f32.xlu0 %v611_v44  ;;  %v426_v26 = vpop.xlane.xlu0 %425  ;;  %v429_v3 = vpop.xlane.xlu1 %428 }
 0x10e   : > { %10713 = vst [vmem:[#allocation21_spill] sm:$0xff] %v8427_v56  ;;  %10714 = vst [vmem:[#allocation22_spill] sm:$0xff] %v8430_v51  ;;  %v477_v42 = vmul.f32 0.125, %v426_v26  ;;  %v478_v28 = vmul.f32 0.125, %v429_v3  ;;  %v959_v18 = vmul.f32 %v8427_v56, %v8427_v56  ;;  %v960_v58 = vmul.f32 %v8430_v51, %v8430_v51  ;;  %v10717_v3 = vld [vmem:[#allocation6_spill] sm:$0xff] }
 0x110   : > { %v8439_v60 = vsub.f32 %v8063_v6, %v477_v42  ;;  %v8442_v59 = vsub.f32 %v8066_v7, %v478_v28  ;;  %v1039_v24 = vsel %vm357_vm0, %v959_v18, 0.0  ;;  %v1042_v48 = vsel %vm357_vm0, %v960_v58, 0.0  ;;  %v10719_v7 = vld [vmem:[#allocation7_spill] sm:$0xff] }
 0x111   : > { %615 = vadd.xlane.f32.xlu1 %v614_v32  ;;  %1040 = vadd.xlane.f32.xlu0 %v1039_v24  ;;  %v855_v34 = vpop.xlane.xlu0 %854  ;;  %v858_v10 = vpop.xlane.xlu1 %857 }
 0x112   : > { %10715 = vst [vmem:[#allocation23_spill] sm:$0xff] %v8439_v60  ;;  %10716 = vst [vmem:[#allocation24_spill] sm:$0xff] %v8442_v59  ;;  %v897_v50 = vmul.f32 0.125, %v855_v34  ;;  %v898_v44 = vmul.f32 0.125, %v858_v10  ;;  %v541_v26 = vmul.f32 %v8439_v60, %v8439_v60  ;;  %v542_v6 = vmul.f32 %v8442_v59, %v8442_v59 }
 0x114   : > { %v8451_v42 = vsub.f32 %v10717_v3, %v897_v50  ;;  %v8454_v28 = vsub.f32 %v10719_v7, %v898_v44  ;;  %v617_v32 = vsel %vm357_vm0, %v541_v26, 0.0  ;;  %v620_v58 = vsel %vm357_vm0, %v542_v6, 0.0  ;;  %v10721_v3 = vld [vmem:[#allocation8_spill] sm:$0xff]  ;;  %v10723_v44 = vld [vmem:[#allocation9_spill] sm:$0xff] }
 0x115   : > { %1043 = vadd.xlane.f32.xlu1 %v1042_v48  ;;  %618 = vadd.xlane.f32.xlu0 %v617_v32  ;;  %v432_v18 = vpop.xlane.xlu0 %431  ;;  %v435_v24 = vpop.xlane.xlu1 %434 }
 0x116   : > { %10718 = vst [vmem:[#allocation6_spill] sm:$0xff] %v8451_v42  ;;  %10720 = vst [vmem:[#allocation7_spill] sm:$0xff] %v8454_v28  ;;  %v479_v34 = vmul.f32 0.125, %v432_v18  ;;  %v480_v10 = vmul.f32 0.125, %v435_v24  ;;  %v961_v60 = vmul.f32 %v8451_v42, %v8451_v42  ;;  %v962_v50 = vmul.f32 %v8454_v28, %v8454_v28 }
 0x118   : > { %v8463_v59 = vsub.f32 %v10721_v3, %v479_v34  ;;  %v8466_v7 = vsub.f32 %v10723_v44, %v480_v10  ;;  %v1045_v48 = vsel %vm357_vm0, %v961_v60, 0.0  ;;  %v1048_v6 = vsel %vm357_vm0, %v962_v50, 0.0  ;;  %v10725_v3 = vld [vmem:[#allocation10_spill] sm:$0xff]  ;;  %v10727_v10 = vld [vmem:[#allocation11_spill] sm:$0xff] }
 0x119   : > { %621 = vadd.xlane.f32.xlu1 %v620_v58  ;;  %1046 = vadd.xlane.f32.xlu0 %v1045_v48  ;;  %v861_v26 = vpop.xlane.xlu0 %860  ;;  %v864_v32 = vpop.xlane.xlu1 %863 }
 0x11a   : > { %10722 = vst [vmem:[#allocation8_spill] sm:$0xff] %v8463_v59  ;;  %10724 = vst [vmem:[#allocation9_spill] sm:$0xff] %v8466_v7  ;;  %v899_v18 = vmul.f32 0.125, %v861_v26  ;;  %v900_v24 = vmul.f32 0.125, %v864_v32  ;;  %v543_v42 = vmul.f32 %v8463_v59, %v8463_v59  ;;  %v544_v34 = vmul.f32 %v8466_v7, %v8466_v7 }
 0x11c   : > { %v8475_v28 = vsub.f32 %v10725_v3, %v899_v18  ;;  %v8478_v44 = vsub.f32 %v10727_v10, %v900_v24  ;;  %v623_v60 = vsel %vm357_vm0, %v543_v42, 0.0  ;;  %v626_v50 = vsel %vm357_vm0, %v544_v34, 0.0  ;;  %v10729_v3 = vld [vmem:[#allocation12_spill] sm:$0xff]  ;;  %v10731_v24 = vld [vmem:[#allocation13_spill] sm:$0xff] }
 0x11d   : > { %1049 = vadd.xlane.f32.xlu1 %v1048_v6  ;;  %624 = vadd.xlane.f32.xlu0 %v623_v60  ;;  %v438_v58 = vpop.xlane.xlu0 %437  ;;  %v441_v48 = vpop.xlane.xlu1 %440 }
 0x11e   : > { %10726 = vst [vmem:[#allocation10_spill] sm:$0xff] %v8475_v28  ;;  %10728 = vst [vmem:[#allocation11_spill] sm:$0xff] %v8478_v44  ;;  %v481_v26 = vmul.f32 0.125, %v438_v58  ;;  %v482_v32 = vmul.f32 0.125, %v441_v48  ;;  %v963_v59 = vmul.f32 %v8475_v28, %v8475_v28  ;;  %v964_v18 = vmul.f32 %v8478_v44, %v8478_v44 }
 0x120   : > { %v8487_v7 = vsub.f32 %v10729_v3, %v481_v26  ;;  %v8490_v10 = vsub.f32 %v10731_v24, %v482_v32  ;;  %v1051_v42 = vsel %vm357_vm0, %v963_v59, 0.0  ;;  %v1054_v34 = vsel %vm357_vm0, %v964_v18, 0.0  ;;  %v10733_v3 = vld [vmem:[#allocation14_spill] sm:$0xff]  ;;  %v10735_v32 = vld [vmem:[#allocation15_spill] sm:$0xff] }
 0x121   : > { %627 = vadd.xlane.f32.xlu1 %v626_v50  ;;  %1052 = vadd.xlane.f32.xlu0 %v1051_v42  ;;  %v867_v6 = vpop.xlane.xlu0 %866  ;;  %v870_v60 = vpop.xlane.xlu1 %869 }
 0x122   : > { %10730 = vst [vmem:[#allocation12_spill] sm:$0xff] %v8487_v7  ;;  %10732 = vst [vmem:[#allocation13_spill] sm:$0xff] %v8490_v10  ;;  %v901_v58 = vmul.f32 0.125, %v867_v6  ;;  %v902_v48 = vmul.f32 0.125, %v870_v60  ;;  %v545_v28 = vmul.f32 %v8487_v7, %v8487_v7  ;;  %v546_v26 = vmul.f32 %v8490_v10, %v8490_v10 }
 0x124   : > { %v8499_v44 = vsub.f32 %v10733_v3, %v901_v58  ;;  %v8502_v24 = vsub.f32 %v10735_v32, %v902_v48  ;;  %v629_v59 = vsel %vm357_vm0, %v545_v28, 0.0  ;;  %v632_v18 = vsel %vm357_vm0, %v546_v26, 0.0  ;;  %v10737_v3 = vld [vmem:[#allocation16_spill] sm:$0xff]  ;;  %v10739_v48 = vld [vmem:[#allocation17_spill] sm:$0xff] }
 0x125   : > { %1055 = vadd.xlane.f32.xlu1 %v1054_v34  ;;  %630 = vadd.xlane.f32.xlu0 %v629_v59  ;;  %v444_v50 = vpop.xlane.xlu0 %443  ;;  %v447_v42 = vpop.xlane.xlu1 %446 }
 0x126   : > { %10734 = vst [vmem:[#allocation14_spill] sm:$0xff] %v8499_v44  ;;  %10736 = vst [vmem:[#allocation15_spill] sm:$0xff] %v8502_v24  ;;  %v483_v6 = vmul.f32 0.125, %v444_v50  ;;  %v484_v60 = vmul.f32 0.125, %v447_v42  ;;  %v965_v7 = vmul.f32 %v8499_v44, %v8499_v44  ;;  %v966_v58 = vmul.f32 %v8502_v24, %v8502_v24 }
 0x128   : > { %v8511_v10 = vsub.f32 %v10737_v3, %v483_v6  ;;  %v8514_v32 = vsub.f32 %v10739_v48, %v484_v60  ;;  %v1057_v28 = vsel %vm357_vm0, %v965_v7, 0.0  ;;  %v1060_v26 = vsel %vm357_vm0, %v966_v58, 0.0  ;;  %v10741_v3 = vld [vmem:[#allocation18_spill] sm:$0xff] }
 0x129   : > { %633 = vadd.xlane.f32.xlu1 %v632_v18  ;;  %1058 = vadd.xlane.f32.xlu0 %v1057_v28  ;;  %v450_v34 = vpop.xlane.xlu0 %449  ;;  %v453_v59 = vpop.xlane.xlu1 %452 }
 0x12a   : > { %10738 = vst [vmem:[#allocation16_spill] sm:$0xff] %v8511_v10  ;;  %10740 = vst [vmem:[#allocation17_spill] sm:$0xff] %v8514_v32  ;;  %v485_v50 = vmul.f32 0.125, %v450_v34  ;;  %v486_v42 = vmul.f32 0.125, %v453_v59  ;;  %v547_v44 = vmul.f32 %v8511_v10, %v8511_v10  ;;  %v548_v6 = vmul.f32 %v8514_v32, %v8514_v32 }
 0x12c   : > { %v8523_v24 = vsub.f32 %v10741_v3, %v485_v50  ;;  %v8526_v60 = vsub.f32 %v8136_v31, %v486_v42  ;;  %v635_v7 = vsel %vm357_vm0, %v547_v44, 0.0  ;;  %v638_v18 = vsel %vm357_vm0, %v548_v6, 0.0 }
 0x12d   : > { %1061 = vadd.xlane.f32.xlu1 %v1060_v26  ;;  %636 = vadd.xlane.f32.xlu0 %v635_v7 }
 0x12e   : > { %10742 = vst [vmem:[#allocation18_spill] sm:$0xff] %v8523_v24  ;;  %10743 = vst [vmem:[#allocation25_spill] sm:$0xff] %v8526_v60  ;;  %v549_v58 = vmul.f32 %v8523_v24, %v8523_v24  ;;  %v550_v48 = vmul.f32 %v8526_v60, %v8526_v60 }
 0x130   : > { %v641_v28 = vsel %vm357_vm0, %v549_v58, 0.0  ;;  %v644_v34 = vsel %vm357_vm0, %v550_v48, 0.0 }
 0x131   : > { %639 = vadd.xlane.f32.xlu1 %v638_v18  ;;  %642 = vadd.xlane.f32.xlu0 %v641_v28 }
 0x135   : > { %645 = vadd.xlane.f32.xlu1 %v644_v34 }
 0x142   : > { %v969_v31 = vpop.xlane.xlu0 %968 }
 0x143   : > { %v1063_v59 = vmul.f32 0.125, %v969_v31 }
 0x145   : > { %v1095_v44 = vadd.f32 1e-06, %v1063_v59 }
 0x146   : > { %v972_v26 = vpop.xlane.xlu1 %971  ;;  %v975_v50 = vpop.xlane.xlu0 %974 }
 0x147   : > { %v1064_v42 = vmul.f32 0.125, %v972_v26  ;;  %v1065_v6 = vmul.f32 0.125, %v975_v50  ;;  %7188 = vrsqrt.f32 %v1095_v44 }
 0x149   : > { %v1096_v3 = vadd.f32 1e-06, %v1064_v42  ;;  %v1097_v7 = vadd.f32 1e-06, %v1065_v6 }
 0x14a   : > { %v978_v24 = vpop.xlane.xlu1 %977  ;;  %v553_v32 = vpop.xlane.xlu0 %552 }
 0x14b   : > { %7190 = vrsqrt.f32 %v1096_v3  ;;  %v1066_v60 = vmul.f32 0.125, %v978_v24  ;;  %v647_v58 = vmul.f32 0.125, %v553_v32 }
 0x14c   : > { %7192 = vrsqrt.f32 %v1097_v7 }
 0x14d   : > { %v1098_v18 = vadd.f32 1e-06, %v1066_v60  ;;  %v679_v28 = vadd.f32 1e-06, %v647_v58 }
 0x14e   : > { %v556_v48 = vpop.xlane.xlu1 %555  ;;  %v981_v34 = vpop.xlane.xlu0 %980 }
 0x14f   : > { %7194 = vrsqrt.f32 %v1098_v18  ;;  %v648_v31 = vmul.f32 0.125, %v556_v48  ;;  %v1067_v59 = vmul.f32 0.125, %v981_v34 }
 0x150   : > { %7196 = vrsqrt.f32 %v679_v28  ;;  %v6320_v28 = vld [vmem:[%s10572_s2 + $0xc] sm:$0xf] }
 0x151   : > { %v680_v10 = vadd.f32 1e-06, %v648_v31  ;;  %v1099_v26 = vadd.f32 1e-06, %v1067_v59  ;;  %v7189_v42 = vpop.eup %7188  ;;  %7128 = vmatprep.subr.msk.bf16.mxu1 %vm1260_vm1, %v6320_v28  ;;  %v1964_v56 = vsel %vm1260_vm1, %v6320_v28, 0 }
 0x152   : > { %v984_v50 = vpop.xlane.xlu1 %983  ;;  %v559_v44 = vpop.xlane.xlu0 %558  ;;  %v1159_v58 = vmul.f32 %v7189_v42, %v8143_v54 }
 0x153   : > { %7198 = vrsqrt.f32 %v680_v10  ;;  %v1068_v6 = vmul.f32 0.125, %v984_v50  ;;  %v649_v51 = vmul.f32 0.125, %v559_v44  ;;  %v8544_v10 = vld [vmem:[%s10572_s2 + $0x8] sm:$0xf] }
 0x154   : > { %7200 = vrsqrt.f32 %v1099_v26  ;;  %7127 = vmatprep.subr.msk.bf16.mxu0 %vm1260_vm1, %v8544_v10  ;;  %v10744_v44 = vld [vmem:[#allocation19_spill] sm:$0xff] }
 0x155   : > { %v7191_v3 = vpop.eup %7190  ;;  %v1100_v24 = vadd.f32 1e-06, %v1068_v6  ;;  %v681_v32 = vadd.f32 1e-06, %v649_v51 }
 0x156   : > { %v562_v60 = vpop.xlane.xlu1 %561  ;;  %v987_v7 = vpop.xlane.xlu0 %986  ;;  %v1160_v18 = vmul.f32 %v7191_v3, %v8153_v47 }
 0x157   : > { %v7193_v48 = vpop.eup %7192  ;;  %7202 = vrsqrt.f32 %v1100_v24  ;;  %v650_v34 = vmul.f32 0.125, %v562_v60  ;;  %v1069_v31 = vmul.f32 0.125, %v987_v7 }
 0x158   : > { %v1425_v54 = vpack.c.bf16 %v1160_v18, %v1159_v58  ;;  %7204 = vrsqrt.f32 %v681_v32  ;;  %v1161_v42 = vmul.f32 %v7193_v48, %v10744_v44 }
 0x159   : > { %v7195_v47 = vpop.eup %7194  ;;  %v682_v51 = vadd.f32 1e-06, %v650_v34  ;;  %v1101_v59 = vadd.f32 1e-06, %v1069_v31 }
 0x15a   : > { %v990_v26 = vpop.xlane.xlu1 %989  ;;  %6641 = vmatprep.mubr.msk.bf16.mxu1 %vm357_vm0, %v1425_v54  ;;  %v565_v50 = vpop.xlane.xlu0 %564  ;;  %v1162_v6 = vmul.f32 %v7195_v47, %v8156_v55 }
 0x15b   : > { %v7197_v3 = vpop.eup %7196  ;;  %7206 = vrsqrt.f32 %v682_v51  ;;  %v1070_v24 = vmul.f32 0.125, %v990_v26  ;;  %v651_v60 = vmul.f32 0.125, %v565_v50 }
 0x15c   : > { %v1426_v7 = vpack.c.bf16 %v1162_v6, %v1161_v42  ;;  %7208 = vrsqrt.f32 %v1101_v59  ;;  %v743_v54 = vmul.f32 %v7197_v3, %v8165_v2 }
 0x15d   : > { %v7199_v58 = vpop.eup %7198  ;;  %v1102_v32 = vadd.f32 1e-06, %v1070_v24  ;;  %v683_v18 = vadd.f32 1e-06, %v651_v60 }
 0x15e   : > { %v568_v34 = vpop.xlane.xlu1 %567  ;;  %6642 = vmatmul.mubr.msk.bf16.vlgmr.msra.gmra.mrb[0].mxu1 %vm357_vm0, %v1426_v7  ;;  %v993_v31 = vpop.xlane.xlu0 %992  ;;  %v744_v48 = vmul.f32 %v7199_v58, %v8169_v22 }
 0x15f   : > { %v7201_v55 = vpop.eup %7200  ;;  %7210 = vrsqrt.f32 %v1102_v32  ;;  %v652_v47 = vmul.f32 0.125, %v568_v34  ;;  %v1071_v51 = vmul.f32 0.125, %v993_v31  ;;  %6708 = vmatpush3.bf16.msra.mxu1 %v1964_v56 }
 0x160   : > { %v1191_v26 = vpack.c.bf16 %v744_v48, %v743_v54  ;;  %7212 = vrsqrt.f32 %v683_v18  ;;  %v1163_v6 = vmul.f32 %v7201_v55, %v8177_v62  ;;  %v1730_v55 = vsel %vm1260_vm1, %v8544_v10, 0 }
 0x161   : > { %v7203_v50 = vpop.eup %7202  ;;  %v684_v28 = vadd.f32 1e-06, %v652_v47  ;;  %v1103_v59 = vadd.f32 1e-06, %v1071_v51 }
 0x162   : > { %v996_v44 = vpop.xlane.xlu1 %995  ;;  %6607 = vmatprep.mubr.msk.bf16.mxu0 %vm357_vm0, %v1191_v26  ;;  %v571_v42 = vpop.xlane.xlu0 %570  ;;  %v1164_v2 = vmul.f32 %v7203_v50, %v8180_v9 }
 0x163   : > { %v7205_v3 = vpop.eup %7204  ;;  %7214 = vrsqrt.f32 %v684_v28  ;;  %v1072_v22 = vmul.f32 0.125, %v996_v44  ;;  %v653_v24 = vmul.f32 0.125, %v571_v42 }
 0x164   : > { %v1427_v60 = vpack.c.bf16 %v1164_v2, %v1163_v6  ;;  %7216 = vrsqrt.f32 %v1103_v59  ;;  %v745_v34 = vmul.f32 %v7205_v3, %v8189_v0 }
 0x165   : > { %v7207_v7 = vpop.eup %7206  ;;  %v1104_v56 = vadd.f32 1e-06, %v1072_v22  ;;  %v685_v58 = vadd.f32 1e-06, %v653_v24 }
 0x166   : > { %v574_v32 = vpop.xlane.xlu1 %573  ;;  %6645 = vmatprep.mubr.msk.bf16.mxu1 %vm357_vm0, %v1427_v60  ;;  %v999_v18 = vpop.xlane.xlu0 %998  ;;  %v746_v31 = vmul.f32 %v7207_v7, %v8192_v13 }
 0x167   : > { %v7209_v62 = vpop.eup %7208  ;;  %7218 = vrsqrt.f32 %v1104_v56  ;;  %v654_v9 = vmul.f32 0.125, %v574_v32  ;;  %v1073_v54 = vmul.f32 0.125, %v999_v18 }
 0x168   : > { %v1192_v48 = vpack.c.bf16 %v746_v31, %v745_v34  ;;  %7220 = vrsqrt.f32 %v685_v58  ;;  %v1165_v0 = vmul.f32 %v7209_v62, %v8201_v5 }
 0x169   : > { %v7211_v47 = vpop.eup %7210  ;;  %v686_v51 = vadd.f32 1e-06, %v654_v9  ;;  %v1105_v26 = vadd.f32 1e-06, %v1073_v54 }
 0x16a   : > { %v1002_v50 = vpop.xlane.xlu1 %1001  ;;  %6608 = vmatmul.mubr.msk.bf16.vlgmr.msra.gmra.mrb[0].mxu0 %vm357_vm0, %v1192_v48  ;;  %v577_v28 = vpop.xlane.xlu0 %576  ;;  %v1166_v13 = vmul.f32 %v7211_v47, %v8204_v17 }
 0x16b   : > { %v7213_v59 = vpop.eup %7212  ;;  %7222 = vrsqrt.f32 %v686_v51  ;;  %v1074_v44 = vmul.f32 0.125, %v1002_v50  ;;  %v655_v42 = vmul.f32 0.125, %v577_v28  ;;  %6674 = vmatpush3.bf16.msra.mxu0 %v1730_v55 }
 0x16c   : > { %v1428_v6 = vpack.c.bf16 %v1166_v13, %v1165_v0  ;;  %7224 = vrsqrt.f32 %v1105_v26  ;;  %v747_v60 = vmul.f32 %v7213_v59, %v8213_v63 }
 0x16d   : > { %v7215_v2 = vpop.eup %7214  ;;  %v1106_v10 = vadd.f32 1e-06, %v1074_v44  ;;  %v687_v3 = vadd.f32 1e-06, %v655_v42 }
 0x16e   : > { %v580_v22 = vpop.xlane.xlu1 %579  ;;  %6646 = vmatmul.mubr.msk.bf16.gmra.mrb[4].mxu1 %vm357_vm0, %v1428_v6  ;;  %v1005_v24 = vpop.xlane.xlu0 %1004  ;;  %v748_v5 = vmul.f32 %v7215_v2, %v8216_v21 }
 0x16f   : > { %v7217_v7 = vpop.eup %7216  ;;  %7226 = vrsqrt.f32 %v1106_v10  ;;  %v656_v17 = vmul.f32 0.125, %v580_v22  ;;  %v1075_v56 = vmul.f32 0.125, %v1005_v24 }
 0x170   : > { %v1193_v58 = vpack.c.bf16 %v748_v5, %v747_v60  ;;  %7228 = vrsqrt.f32 %v687_v3  ;;  %v1167_v9 = vmul.f32 %v7217_v7, %v8225_v30 }
 0x171   : > { %v7219_v32 = vpop.eup %7218  ;;  %v688_v18 = vadd.f32 1e-06, %v656_v17  ;;  %v1107_v34 = vadd.f32 1e-06, %v1075_v56 }
 0x172   : > { %v1008_v31 = vpop.xlane.xlu1 %1007  ;;  %6611 = vmatprep.mubr.msk.bf16.mxu0 %vm357_vm0, %v1193_v58  ;;  %v583_v62 = vpop.xlane.xlu0 %582  ;;  %v1168_v54 = vmul.f32 %v7219_v32, %v8228_v25 }
 0x173   : > { %v7221_v63 = vpop.eup %7220  ;;  %7230 = vrsqrt.f32 %v688_v18  ;;  %v1076_v21 = vmul.f32 0.125, %v1008_v31  ;;  %v657_v48 = vmul.f32 0.125, %v583_v62 }
 0x174   : > { %v1429_v55 = vpack.c.bf16 %v1168_v54, %v1167_v9  ;;  %7232 = vrsqrt.f32 %v1107_v34  ;;  %v749_v0 = vmul.f32 %v7221_v63, %v8237_v15  ;;  %v10745_v34 = vld [vmem:[#allocation20_spill] sm:$0xff] }
 0x175   : > { %v7223_v47 = vpop.eup %7222  ;;  %v1108_v51 = vadd.f32 1e-06, %v1076_v21  ;;  %v689_v26 = vadd.f32 1e-06, %v657_v48 }
 0x176   : > { %v586_v50 = vpop.xlane.xlu1 %585  ;;  %6649 = vmatprep.mubr.msk.bf16.mxu1 %vm357_vm0, %v1429_v55  ;;  %v1011_v28 = vpop.xlane.xlu0 %1010  ;;  %v750_v13 = vmul.f32 %v7223_v47, %v8240_v29 }
 0x177   : > { %v7225_v30 = vpop.eup %7224  ;;  %7234 = vrsqrt.f32 %v1108_v51  ;;  %v658_v25 = vmul.f32 0.125, %v586_v50  ;;  %v1077_v59 = vmul.f32 0.125, %v1011_v28 }
 0x178   : > { %v1194_v44 = vpack.c.bf16 %v750_v13, %v749_v0  ;;  %7236 = vrsqrt.f32 %v689_v26  ;;  %v1169_v22 = vmul.f32 %v7225_v30, %v8249_v39 }
 0x179   : > { %v7227_v42 = vpop.eup %7226  ;;  %v690_v6 = vadd.f32 1e-06, %v658_v25  ;;  %v1109_v2 = vadd.f32 1e-06, %v1077_v59 }
 0x17a   : > { %v1014_v10 = vpop.xlane.xlu1 %1013  ;;  %6612 = vmatmul.mubr.msk.bf16.gmra.mrb[4].mxu0 %vm357_vm0, %v1194_v44  ;;  %v589_v3 = vpop.xlane.xlu0 %588  ;;  %v1170_v24 = vmul.f32 %v7227_v42, %v8252_v33 }
 0x17b   : > { %v7229_v15 = vpop.eup %7228  ;;  %7238 = vrsqrt.f32 %v690_v6  ;;  %v1078_v29 = vmul.f32 0.125, %v1014_v10  ;;  %v659_v60 = vmul.f32 0.125, %v589_v3 }
 0x17c   : > { %v1430_v5 = vpack.c.bf16 %v1170_v24, %v1169_v22  ;;  %7240 = vrsqrt.f32 %v1109_v2  ;;  %v751_v18 = vmul.f32 %v7229_v15, %v8261_v46 }
 0x17d   : > { %v7231_v7 = vpop.eup %7230  ;;  %v1110_v17 = vadd.f32 1e-06, %v1078_v29  ;;  %v691_v56 = vadd.f32 1e-06, %v659_v60 }
 0x17e   : > { %v592_v58 = vpop.xlane.xlu1 %591  ;;  %6650 = vmatmul.mubr.msk.bf16.gmra.mrb[8].mxu1 %vm357_vm0, %v1430_v5  ;;  %v1017_v32 = vpop.xlane.xlu0 %1016  ;;  %v752_v31 = vmul.f32 %v7231_v7, %v10745_v34 }
 0x17f   : > { %v7233_v39 = vpop.eup %7232  ;;  %7242 = vrsqrt.f32 %v1110_v17  ;;  %v660_v33 = vmul.f32 0.125, %v592_v58  ;;  %v1079_v62 = vmul.f32 0.125, %v1017_v32 }
 0x180   : > { %v1195_v9 = vpack.c.bf16 %v752_v31, %v751_v18  ;;  %7244 = vrsqrt.f32 %v691_v56  ;;  %v1171_v47 = vmul.f32 %v7233_v39, %v8276_v16 }
 0x181   : > { %v7235_v54 = vpop.eup %7234  ;;  %v692_v63 = vadd.f32 1e-06, %v660_v33  ;;  %v1111_v21 = vadd.f32 1e-06, %v1079_v62 }
 0x182   : > { %v1020_v48 = vpop.xlane.xlu1 %1019  ;;  %6615 = vmatprep.mubr.msk.bf16.mxu0 %vm357_vm0, %v1195_v9  ;;  %v595_v55 = vpop.xlane.xlu0 %594  ;;  %v1172_v51 = vmul.f32 %v7235_v54, %v8279_v14 }
 0x183   : > { %v7237_v46 = vpop.eup %7236  ;;  %7246 = vrsqrt.f32 %v692_v63  ;;  %v1080_v26 = vmul.f32 0.125, %v1020_v48  ;;  %v661_v50 = vmul.f32 0.125, %v595_v55 }
 0x184   : > { %v1431_v28 = vpack.c.bf16 %v1172_v51, %v1171_v47  ;;  %7248 = vrsqrt.f32 %v1111_v21  ;;  %v753_v44 = vmul.f32 %v7237_v46, %v8290_v8 }
 0x185   : > { %v7239_v0 = vpop.eup %7238  ;;  %v1112_v13 = vadd.f32 1e-06, %v1080_v26  ;;  %v693_v30 = vadd.f32 1e-06, %v661_v50 }
 0x186   : > { %v598_v25 = vpop.xlane.xlu1 %597  ;;  %6653 = vmatprep.mubr.msk.bf16.mxu1 %vm357_vm0, %v1431_v28  ;;  %v1023_v59 = vpop.xlane.xlu0 %1022  ;;  %v754_v42 = vmul.f32 %v7239_v0, %v8293_v20 }
 0x187   : > { %v7241_v16 = vpop.eup %7240  ;;  %7250 = vrsqrt.f32 %v1112_v13  ;;  %v662_v14 = vmul.f32 0.125, %v598_v25  ;;  %v1081_v6 = vmul.f32 0.125, %v1023_v59 }
 0x188   : > { %v1196_v2 = vpack.c.bf16 %v754_v42, %v753_v44  ;;  %7252 = vrsqrt.f32 %v693_v30  ;;  %v1173_v29 = vmul.f32 %v7241_v16, %v8302_v1 }
 0x189   : > { %v7243_v10 = vpop.eup %7242  ;;  %v694_v3 = vadd.f32 1e-06, %v662_v14  ;;  %v1113_v22 = vadd.f32 1e-06, %v1081_v6 }
 0x18a   : > { %v1026_v24 = vpop.xlane.xlu1 %1025  ;;  %6616 = vmatmul.mubr.msk.bf16.gmra.mrb[8].mxu0 %vm357_vm0, %v1196_v2  ;;  %v601_v15 = vpop.xlane.xlu0 %600  ;;  %v1174_v60 = vmul.f32 %v7243_v10, %v8305_v49 }
 0x18b   : > { %v7245_v8 = vpop.eup %7244  ;;  %7254 = vrsqrt.f32 %v694_v3  ;;  %v1082_v20 = vmul.f32 0.125, %v1026_v24  ;;  %v663_v5 = vmul.f32 0.125, %v601_v15 }
 0x18c   : > { %v1432_v7 = vpack.c.bf16 %v1174_v60, %v1173_v29  ;;  %7256 = vrsqrt.f32 %v1113_v22  ;;  %v755_v34 = vmul.f32 %v7245_v8, %v8319_v41 }
 0x18d   : > { %v7247_v17 = vpop.eup %7246  ;;  %v1114_v56 = vadd.f32 1e-06, %v1082_v20  ;;  %v695_v58 = vadd.f32 1e-06, %v663_v5 }
 0x18e   : > { %v604_v32 = vpop.xlane.xlu1 %603  ;;  %6654 = vmatmul.mubr.msk.bf16.gmra.mrb[12].mxu1 %vm357_vm0, %v1432_v7  ;;  %v1029_v18 = vpop.xlane.xlu0 %1028  ;;  %v756_v31 = vmul.f32 %v7247_v17, %v8322_v23 }
 0x18f   : > { %v7249_v1 = vpop.eup %7248  ;;  %7258 = vrsqrt.f32 %v1114_v56  ;;  %v664_v49 = vmul.f32 0.125, %v604_v32  ;;  %v1083_v39 = vmul.f32 0.125, %v1029_v18 }
 0x190   : > { %v1197_v33 = vpack.c.bf16 %v756_v31, %v755_v34  ;;  %7260 = vrsqrt.f32 %v695_v58  ;;  %v1175_v48 = vmul.f32 %v7249_v1, %v8331_v57 }
 0x191   : > { %v7251_v62 = vpop.eup %7250  ;;  %v696_v9 = vadd.f32 1e-06, %v664_v49  ;;  %v1115_v54 = vadd.f32 1e-06, %v1083_v39 }
 0x192   : > { %v1032_v63 = vpop.xlane.xlu1 %1031  ;;  %6619 = vmatprep.mubr.msk.bf16.mxu0 %vm357_vm0, %v1197_v33  ;;  %v607_v21 = vpop.xlane.xlu0 %606  ;;  %v1176_v55 = vmul.f32 %v7251_v62, %v8334_v45 }
 0x193   : > { %v7253_v41 = vpop.eup %7252  ;;  %7262 = vrsqrt.f32 %v696_v9  ;;  %v1084_v23 = vmul.f32 0.125, %v1032_v63  ;;  %v665_v47 = vmul.f32 0.125, %v607_v21 }
 0x194   : > { %v1433_v51 = vpack.c.bf16 %v1176_v55, %v1175_v48  ;;  %7264 = vrsqrt.f32 %v1115_v54  ;;  %v757_v13 = vmul.f32 %v7253_v41, %v8343_v37 }
 0x195   : > { %v7255_v46 = vpop.eup %7254  ;;  %v1116_v26 = vadd.f32 1e-06, %v1084_v23  ;;  %v697_v50 = vadd.f32 1e-06, %v665_v47 }
 0x196   : > { %v610_v28 = vpop.xlane.xlu1 %609  ;;  %6657 = vmatprep.mubr.msk.bf16.mxu1 %vm357_vm0, %v1433_v51  ;;  %v1035_v0 = vpop.xlane.xlu0 %1034  ;;  %v758_v30 = vmul.f32 %v7255_v46, %v8346_v61 }
 0x197   : > { %v7257_v57 = vpop.eup %7256  ;;  %7266 = vrsqrt.f32 %v1116_v26  ;;  %v666_v45 = vmul.f32 0.125, %v610_v28  ;;  %v1085_v25 = vmul.f32 0.125, %v1035_v0 }
 0x198   : > { %v1198_v59 = vpack.c.bf16 %v758_v30, %v757_v13  ;;  %7268 = vrsqrt.f32 %v697_v50  ;;  %v1177_v2 = vmul.f32 %v7257_v57, %v8355_v52 }
 0x199   : > { %v7259_v44 = vpop.eup %7258  ;;  %v698_v42 = vadd.f32 1e-06, %v666_v45  ;;  %v1117_v16 = vadd.f32 1e-06, %v1085_v25 }
 0x19a   : > { %v1038_v14 = vpop.xlane.xlu1 %1037  ;;  %6620 = vmatmul.mubr.msk.bf16.gmra.mrb[12].mxu0 %vm357_vm0, %v1198_v59  ;;  %v613_v6 = vpop.xlane.xlu0 %612  ;;  %v1178_v10 = vmul.f32 %v7259_v44, %v8358_v4 }
 0x19b   : > { %v7261_v37 = vpop.eup %7260  ;;  %7270 = vrsqrt.f32 %v698_v42  ;;  %v1086_v61 = vmul.f32 0.125, %v1038_v14  ;;  %v667_v3 = vmul.f32 0.125, %v613_v6 }
 0x19c   : > { %v1434_v22 = vpack.c.bf16 %v1178_v10, %v1177_v2  ;;  %7272 = vrsqrt.f32 %v1117_v16  ;;  %v759_v20 = vmul.f32 %v7261_v37, %v8367_v53 }
 0x19d   : > { %v7263_v24 = vpop.eup %7262  ;;  %v1118_v15 = vadd.f32 1e-06, %v1086_v61  ;;  %v699_v29 = vadd.f32 1e-06, %v667_v3  ;;  %v10746_v3 = vld [vmem:[#allocation21_spill] sm:$0xff] }
 0x19e   : > { %v616_v60 = vpop.xlane.xlu1 %615  ;;  %6658 = vmatmul.mubr.msk.bf16.gmra.mrb[16].mxu1 %vm357_vm0, %v1434_v22  ;;  %v1041_v8 = vpop.xlane.xlu0 %1040  ;;  %v760_v5 = vmul.f32 %v7263_v24, %v8370_v11  ;;  %v10747_v24 = vld [vmem:[#allocation22_spill] sm:$0xff] }
 0x19f   : > { %v7265_v52 = vpop.eup %7264  ;;  %7274 = vrsqrt.f32 %v1118_v15  ;;  %v668_v4 = vmul.f32 0.125, %v616_v60  ;;  %v1087_v7 = vmul.f32 0.125, %v1041_v8 }
 0x1a0   : > { %v1199_v17 = vpack.c.bf16 %v760_v5, %v759_v20  ;;  %7276 = vrsqrt.f32 %v699_v29  ;;  %v1179_v31 = vmul.f32 %v7265_v52, %v8379_v12 }
 0x1a1   : > { %v7267_v56 = vpop.eup %7266  ;;  %v700_v58 = vadd.f32 1e-06, %v668_v4  ;;  %v1119_v32 = vadd.f32 1e-06, %v1087_v7  ;;  %v10748_v7 = vld [vmem:[#allocation23_spill] sm:$0xff] }
 0x1a2   : > { %v1044_v18 = vpop.xlane.xlu1 %1043  ;;  %6623 = vmatprep.mubr.msk.bf16.mxu0 %vm357_vm0, %v1199_v17  ;;  %v619_v34 = vpop.xlane.xlu0 %618  ;;  %v1180_v1 = vmul.f32 %v7267_v56, %v8382_v19  ;;  %v10749_v56 = vld [vmem:[#allocation24_spill] sm:$0xff] }
 0x1a3   : > { %v7269_v53 = vpop.eup %7268  ;;  %7278 = vrsqrt.f32 %v700_v58  ;;  %v1088_v11 = vmul.f32 0.125, %v1044_v18  ;;  %v669_v49 = vmul.f32 0.125, %v619_v34 }
 0x1a4   : > { %v1435_v39 = vpack.c.bf16 %v1180_v1, %v1179_v31  ;;  %7280 = vrsqrt.f32 %v1119_v32  ;;  %v761_v21 = vmul.f32 %v7269_v53, %v8391_v38 }
 0x1a5   : > { %v7271_v33 = vpop.eup %7270  ;;  %v1120_v62 = vadd.f32 1e-06, %v1088_v11  ;;  %v701_v9 = vadd.f32 1e-06, %v669_v49  ;;  %v10614_v49 = vmov 0.0  }
 0x1a6   : > { %v622_v54 = vpop.xlane.xlu1 %621  ;;  %6661 = vmatprep.mubr.msk.bf16.mxu1 %vm357_vm0, %v1435_v39  ;;  %v1047_v63 = vpop.xlane.xlu0 %1046  ;;  %v762_v48 = vmul.f32 %v7271_v33, %v8394_v27  ;;  %6747 = vmatprep.subr.bf16.mxu1 %v10614_v49 }
 0x1a7   : > { %v7273_v12 = vpop.eup %7272  ;;  %7282 = vrsqrt.f32 %v1120_v62  ;;  %v670_v19 = vmul.f32 0.125, %v622_v54  ;;  %v1089_v55 = vmul.f32 0.125, %v1047_v63  ;;  %6741 = vmatprep.subr.bf16.mxu0 %v10614_v49  ;;  %v10750_v62 = vld [vmem:[#allocation6_spill] sm:$0xff]  ;;  %v10751_v54 = vld [vmem:[#allocation7_spill] sm:$0xff] }
 0x1a8   : > { %v1200_v41 = vpack.c.bf16 %v762_v48, %v761_v21  ;;  %7284 = vrsqrt.f32 %v701_v9  ;;  %v1181_v50 = vmul.f32 %v7273_v12, %v8403_v36 }
 0x1a9   : > { %v7275_v23 = vpop.eup %7274  ;;  %v702_v47 = vadd.f32 1e-06, %v670_v19  ;;  %v1121_v51 = vadd.f32 1e-06, %v1089_v55 }
 0x1aa   : > { %v1050_v46 = vpop.xlane.xlu1 %1049  ;;  %6624 = vmatmul.mubr.msk.bf16.gmra.mrb[16].mxu0 %vm357_vm0, %v1200_v41  ;;  %v625_v26 = vpop.xlane.xlu0 %624  ;;  %v1182_v28 = vmul.f32 %v7275_v23, %v8406_v35 }
 0x1ab   : > { %v7277_v38 = vpop.eup %7276  ;;  %7286 = vrsqrt.f32 %v702_v47  ;;  %v1090_v27 = vmul.f32 0.125, %v1050_v46  ;;  %v671_v0 = vmul.f32 0.125, %v625_v26  ;;  %v10752_v46 = vld [vmem:[#allocation8_spill] sm:$0xff] }
 0x1ac   : > { %v1436_v13 = vpack.c.bf16 %v1182_v28, %v1181_v50  ;;  %7288 = vrsqrt.f32 %v1121_v51  ;;  %v763_v44 = vmul.f32 %v7277_v38, %v8415_v40  ;;  %v10753_v50 = vld [vmem:[#allocation9_spill] sm:$0xff] }
 0x1ad   : > { %v7279_v30 = vpop.eup %7278  ;;  %v1122_v57 = vadd.f32 1e-06, %v1090_v27  ;;  %v703_v45 = vadd.f32 1e-06, %v671_v0 }
 0x1ae   : > { %v628_v25 = vpop.xlane.xlu1 %627  ;;  %6662 = vmatmul.mubr.msk.bf16.gmra.mrb[20].mxu1 %vm357_vm0, %v1436_v13  ;;  %v1053_v59 = vpop.xlane.xlu0 %1052  ;;  %v764_v42 = vmul.f32 %v7279_v30, %v8418_v43 }
 0x1af   : > { %v7281_v36 = vpop.eup %7280  ;;  %7290 = vrsqrt.f32 %v1122_v57  ;;  %v672_v35 = vmul.f32 0.125, %v628_v25  ;;  %v1091_v16 = vmul.f32 0.125, %v1053_v59  ;;  %v10754_v59 = vld [vmem:[#allocation10_spill] sm:$0xff] }
 0x1b0   : > { %v1201_v14 = vpack.c.bf16 %v764_v42, %v763_v44  ;;  %7292 = vrsqrt.f32 %v703_v45  ;;  %v1183_v22 = vmul.f32 %v7281_v36, %v10746_v3  ;;  %v10755_v42 = vld [vmem:[#allocation11_spill] sm:$0xff] }
 0x1b1   : > { %v7283_v6 = vpop.eup %7282  ;;  %v704_v2 = vadd.f32 1e-06, %v672_v35  ;;  %v1123_v10 = vadd.f32 1e-06, %v1091_v16 }
 0x1b2   : > { %v1056_v37 = vpop.xlane.xlu1 %1055  ;;  %6627 = vmatprep.mubr.msk.bf16.mxu0 %vm357_vm0, %v1201_v14  ;;  %v631_v61 = vpop.xlane.xlu0 %630  ;;  %v1184_v15 = vmul.f32 %v7283_v6, %v10747_v24 }
 0x1b3   : > { %v7285_v40 = vpop.eup %7284  ;;  %7294 = vrsqrt.f32 %v704_v2  ;;  %v1092_v43 = vmul.f32 0.125, %v1056_v37  ;;  %v673_v29 = vmul.f32 0.125, %v631_v61  ;;  %v10757_v61 = vld [vmem:[#allocation13_spill] sm:$0xff] }
 0x1b4   : > { %v1437_v60 = vpack.c.bf16 %v1184_v15, %v1183_v22  ;;  %7296 = vrsqrt.f32 %v1123_v10  ;;  %v765_v17 = vmul.f32 %v7285_v40, %v10748_v7  ;;  %v10756_v10 = vld [vmem:[#allocation12_spill] sm:$0xff]  ;;  %v10758_v40 = vld [vmem:[#allocation14_spill] sm:$0xff] }
 0x1b5   : > { %v7287_v8 = vpop.eup %7286  ;;  %v1124_v20 = vadd.f32 1e-06, %v1092_v43  ;;  %v705_v5 = vadd.f32 1e-06, %v673_v29  ;;  %v10759_v29 = vld [vmem:[#allocation15_spill] sm:$0xff] }
 0x1b6   : > { %v634_v52 = vpop.xlane.xlu1 %633  ;;  %6665 = vmatprep.mubr.msk.bf16.mxu1 %vm357_vm0, %v1437_v60  ;;  %v1059_v4 = vpop.xlane.xlu0 %1058  ;;  %v766_v58 = vmul.f32 %v7287_v8, %v10749_v56 }
 0x1b7   : > { %v7289_v32 = vpop.eup %7288  ;;  %7298 = vrsqrt.f32 %v1124_v20  ;;  %v674_v18 = vmul.f32 0.125, %v634_v52  ;;  %v1093_v34 = vmul.f32 0.125, %v1059_v4  ;;  %v7572_v20 = vld [vmem:[%s7815_s12] sm:$0xff] }
 0x1b8   : > { %v1202_v31 = vpack.c.bf16 %v766_v58, %v765_v17  ;;  %7300 = vrsqrt.f32 %v705_v5  ;;  %v1185_v9 = vmul.f32 %v7289_v32, %v10750_v62  ;;  %v7573_v5 = vld [vmem:[%s7815_s12 + $0x8] sm:$0xff]  ;;  %v10760_v17 = vld [vmem:[#allocation16_spill] sm:$0xff]  ;;  %v10761_v58 = vld [vmem:[#allocation17_spill] sm:$0xff] }
 0x1b9   : > { %v7291_v1 = vpop.eup %7290  ;;  %v706_v53 = vadd.f32 1e-06, %v674_v18  ;;  %v1125_v11 = vadd.f32 1e-06, %v1093_v34  ;;  %v1893_v52 = vpack.c.bf16 %v7573_v5, %v7572_v20  ;;  %v10763_v62 = vld [vmem:[#allocation25_spill] sm:$0xff] }
 0x1ba   : > { %v1062_v39 = vpop.xlane.xlu1 %1061  ;;  %6628 = vmatmul.mubr.msk.bf16.gmra.mrb[20].mxu0 %vm357_vm0, %v1202_v31  ;;  %v637_v33 = vpop.xlane.xlu0 %636  ;;  %v1186_v63 = vmul.f32 %v7291_v1, %v10751_v54  ;;  %v7574_v1 = vld [vmem:[%s7815_s12 + $0x10] sm:$0xff]  ;;  %v7576_v54 = vld [vmem:[%s7836_s15] sm:$0xff]  ;;  %v7605_v20 = vld [vmem:[%s7836_s15 + $0x78] sm:$0xff] }
 0x1bb   : > { %v7293_v21 = vpop.eup %7292  ;;  %7302 = vrsqrt.f32 %v706_v53  ;;  %v1094_v48 = vmul.f32 0.125, %v1062_v39  ;;  %v675_v12 = vmul.f32 0.125, %v637_v33  ;;  %v7575_v53 = vld [vmem:[%s7815_s12 + $0x18] sm:$0xff]  ;;  %v10762_v39 = vld [vmem:[#allocation18_spill] sm:$0xff] }
 0x1bc   : > { %v1438_v19 = vpack.c.bf16 %v1186_v63, %v1185_v9  ;;  %7304 = vrsqrt.f32 %v1125_v11  ;;  %v767_v26 = vmul.f32 %v7293_v21, %v10752_v46  ;;  %v1894_v11 = vpack.c.bf16 %v7575_v53, %v7574_v1  ;;  %v7577_v63 = vld [vmem:[%s7836_s15 + $0x8] sm:$0xff]  ;;  %v7583_v46 = vld [vmem:[%s7815_s12 + $0x38] sm:$0xff] }
 0x1bd   : > { %v7295_v55 = vpop.eup %7294  ;;  %v1126_v41 = vadd.f32 1e-06, %v1094_v48  ;;  %v707_v23 = vadd.f32 1e-06, %v675_v12  ;;  %v1659_v21 = vpack.c.bf16 %v7577_v63, %v7576_v54  ;;  %v7578_v48 = vld [vmem:[%s7815_s12 + $0x20] sm:$0xff]  ;;  %v7579_v12 = vld [vmem:[%s7815_s12 + $0x28] sm:$0xff] }
 0x1be   : > { %v640_v47 = vpop.xlane.xlu1 %639  ;;  %6666 = vmatmul.mubr.msk.bf16.gmra.mrb[24].mxu1 %vm357_vm0, %v1438_v19  ;;  %v643_v51 = vpop.xlane.xlu0 %642  ;;  %v768_v28 = vmul.f32 %v7295_v55, %v10753_v50  ;;  %v1895_v19 = vpack.c.bf16 %v7579_v12, %v7578_v48  ;;  %v7584_v50 = vld [vmem:[%s7836_s15 + $0x20] sm:$0xff]  ;;  %v7613_v1 = vld [vmem:[%s7836_s15 + $0x98] sm:$0xff]  ;;  %v7620_v12 = vld [vmem:[%s7836_s15 + $0xb0] sm:$0xff] }
 0x1bf   : > { %v7297_v38 = vpop.eup %7296  ;;  %7306 = vrsqrt.f32 %v1126_v41  ;;  %v676_v27 = vmul.f32 0.125, %v640_v47  ;;  %v677_v0 = vmul.f32 0.125, %v643_v51  ;;  %v7580_v41 = vld [vmem:[%s7836_s15 + $0x10] sm:$0xff]  ;;  %v7618_v63 = vld [vmem:[%s7815_s12 + $0xc0] sm:$0xff] }
 0x1c0   : > { %v1203_v13 = vpack.c.bf16 %v768_v28, %v767_v26  ;;  %7308 = vrsqrt.f32 %v707_v23  ;;  %v1187_v44 = vmul.f32 %v7297_v38, %v10754_v59  ;;  %v7581_v23 = vld [vmem:[%s7836_s15 + $0x18] sm:$0xff]  ;;  %v7582_v51 = vld [vmem:[%s7815_s12 + $0x30] sm:$0xff]  ;;  %v7585_v28 = vld [vmem:[%s7836_s15 + $0x28] sm:$0xff] }
 0x1c1   : > { %v7299_v30 = vpop.eup %7298  ;;  %v708_v57 = vadd.f32 1e-06, %v676_v27  ;;  %v709_v45 = vadd.f32 1e-06, %v677_v0  ;;  %v1660_v47 = vpack.c.bf16 %v7581_v23, %v7580_v41  ;;  %v1896_v26 = vpack.c.bf16 %v7583_v46, %v7582_v51  ;;  %v7586_v27 = vld [vmem:[%s7815_s12 + $0x40] sm:$0xff]  ;;  %v7587_v0 = vld [vmem:[%s7815_s12 + $0x48] sm:$0xff] }
 0x1c2   : > { %v646_v25 = vpop.xlane.xlu1 %645  ;;  %6631 = vmatprep.mubr.msk.bf16.mxu0 %vm357_vm0, %v1203_v13  ;;  %v1188_v36 = vmul.f32 %v7299_v30, %v10755_v42  ;;  %v7301_v35 = vpop.eup %7300  ;;  %v1661_v38 = vpack.c.bf16 %v7585_v28, %v7584_v50  ;;  %v1897_v13 = vpack.c.bf16 %v7587_v0, %v7586_v27  ;;  %v7588_v30 = vld [vmem:[%s7836_s15 + $0x30] sm:$0xff]  ;;  %v7591_v59 = vld [vmem:[%s7815_s12 + $0x58] sm:$0xff]  ;;  %v7592_v42 = vld [vmem:[%s7836_s15 + $0x40] sm:$0xff] }
 0x1c3   : > { %7310 = vrsqrt.f32 %v708_v57  ;;  %v678_v16 = vmul.f32 0.125, %v646_v25  ;;  %v769_v37 = vmul.f32 %v7301_v35, %v10756_v10  ;;  %v7589_v57 = vld [vmem:[%s7836_s15 + $0x38] sm:$0xff]  ;;  %v7590_v25 = vld [vmem:[%s7815_s12 + $0x50] sm:$0xff]  ;;  %v7624_v51 = vld [vmem:[%s7836_s15 + $0xc0] sm:$0xff] }
 0x1c4   : > { %v1439_v14 = vpack.c.bf16 %v1188_v36, %v1187_v44  ;;  %7312 = vrsqrt.f32 %v709_v45  ;;  %v1662_v45 = vpack.c.bf16 %v7589_v57, %v7588_v30  ;;  %v1898_v44 = vpack.c.bf16 %v7591_v59, %v7590_v25  ;;  %v7593_v36 = vld [vmem:[%s7836_s15 + $0x48] sm:$0xff]  ;;  %v7597_v10 = vld [vmem:[%s7836_s15 + $0x58] sm:$0xff]  ;;  %v7622_v41 = vld [vmem:[%s7815_s12 + $0xd0] sm:$0xff] }
 0x1c5   : > { %v7303_v6 = vpop.eup %7302  ;;  %v710_v2 = vadd.f32 1e-06, %v678_v16  ;;  %v1663_v35 = vpack.c.bf16 %v7593_v36, %v7592_v42  ;;  %v7594_v16 = vld [vmem:[%s7815_s12 + $0x60] sm:$0xff]  ;;  %v7623_v23 = vld [vmem:[%s7815_s12 + $0xd8] sm:$0xff]  ;;  %v7625_v46 = vld [vmem:[%s7836_s15 + $0xc8] sm:$0xff] }
 0x1c6   : > { %6669 = vmatprep.mubr.msk.bf16.mxu1 %vm357_vm0, %v1439_v14  ;;  %v770_v3 = vmul.f32 %v7303_v6, %v10757_v61  ;;  %v7305_v22 = vpop.eup %7304  ;;  %v7595_v14 = vld [vmem:[%s7815_s12 + $0x68] sm:$0xff]  ;;  %v7598_v61 = vld [vmem:[%s7815_s12 + $0x70] sm:$0xff]  ;;  %v7626_v50 = vld [vmem:[%s7815_s12 + $0xe0] sm:$0xff] }
 0x1c7   : > { %7314 = vrsqrt.f32 %v710_v2  ;;  %v1189_v43 = vmul.f32 %v7305_v22, %v10758_v40  ;;  %v1899_v6 = vpack.c.bf16 %v7595_v14, %v7594_v16  ;;  %v7596_v2 = vld [vmem:[%s7836_s15 + $0x50] sm:$0xff]  ;;  %v7627_v28 = vld [vmem:[%s7815_s12 + $0xe8] sm:$0xff]  ;;  %v7629_v0 = vld [vmem:[%s7836_s15 + $0xd8] sm:$0xff]  ;;  %v10609_v16 = vlaneseq }
 0x1c8   : > { %v1204_v24 = vpack.c.bf16 %v770_v3, %v769_v37  ;;  %v1664_v37 = vpack.c.bf16 %v7597_v10, %v7596_v2  ;;  %v7599_v3 = vld [vmem:[%s7815_s12 + $0x78] sm:$0xff]  ;;  %v7628_v27 = vld [vmem:[%s7836_s15 + $0xd0] sm:$0xff]  ;;  %v7632_v25 = vld [vmem:[%s7836_s15 + $0xe0] sm:$0xff] }
 0x1c9   : > { %v7307_v15 = vpop.eup %7306  ;;  %v1900_v22 = vpack.c.bf16 %v7599_v3, %v7598_v61  ;;  %v7630_v30 = vld [vmem:[%s7815_s12 + $0xf0] sm:$0xff]  ;;  %v7631_v57 = vld [vmem:[%s7815_s12 + $0xf8] sm:$0xff]  ;;  %v7633_v59 = vld [vmem:[%s7836_s15 + $0xe8] sm:$0xff]  ;;  %v8749_v14 = vshrl.u32 %v10609_v16, 7 }
 0x1ca   : > { %6632 = vmatmul.mubr.msk.bf16.gmra.mrb[24].mxu0 %vm357_vm0, %v1204_v24  ;;  %v1190_v60 = vmul.f32 %v7307_v15, %v10759_v29  ;;  %v7309_v8 = vpop.eup %7308  ;;  %v7600_v24 = vld [vmem:[%s7836_s15 + $0x60] sm:$0xff]  ;;  %v7601_v15 = vld [vmem:[%s7836_s15 + $0x68] sm:$0xff]  ;;  %v7634_v42 = vld [vmem:[%s7836_s15 + $0xf0] sm:$0xff] }
 0x1cb   : > { %v771_v56 = vmul.f32 %v7309_v8, %v10760_v17  ;;  %v1665_v40 = vpack.c.bf16 %v7601_v15, %v7600_v24  ;;  %v7603_v29 = vld [vmem:[%s7815_s12 + $0x88] sm:$0xff]  ;;  %v7604_v8 = vld [vmem:[%s7836_s15 + $0x70] sm:$0xff]  ;;  %v7608_v17 = vld [vmem:[%s7836_s15 + $0x80] sm:$0xff]  ;;  %10764 = vst [vmem:[#allocation19_spill] sm:$0xff] %v8749_v14 }
 0x1cc   : > { %v1440_v4 = vpack.c.bf16 %v1190_v60, %v1189_v43  ;;  %v7602_v43 = vld [vmem:[%s7815_s12 + $0x80] sm:$0xff]  ;;  %v1666_v5 = vpack.c.bf16 %v7605_v20, %v7604_v8  ;;  %v7635_v36 = vld [vmem:[%s7836_s15 + $0xf8] sm:$0xff]  ;;  %v1210_v20 = vsub.s32 0, %v8749_v14 }
 0x1cd   : > { %v7311_v7 = vpop.eup %7310  ;;  %v1901_v60 = vpack.c.bf16 %v7603_v29, %v7602_v43  ;;  %v8755_v2 = vld [vmem:[%s10573_s3] sm:$0x1f] }
 0x1ce   : > { %6670 = vmatmul.mubr.msk.bf16.gmra.mrb[28].mxu1 %vm357_vm0, %v1440_v4  ;;  %v772_v32 = vmul.f32 %v7311_v7, %v10761_v58  ;;  %v7313_v18 = vpop.eup %7312  ;;  %v7607_v4 = vld [vmem:[%s7815_s12 + $0x98] sm:$0xff] }
 0x1cf   : > { %6709 = vmatprep.mubr.msk.bf16.mxu1 %vm357_vm0, %v1893_v52  ;;  %v773_v33 = vmul.f32 %v7313_v18, %v10762_v39  ;;  %v7606_v52 = vld [vmem:[%s7815_s12 + $0x90] sm:$0xff]  ;;  %v7611_v18 = vld [vmem:[%s7815_s12 + $0xa8] sm:$0xff]  ;;  %v7615_v39 = vld [vmem:[%s7815_s12 + $0xb8] sm:$0xff] }
 0x1d0   : > { %v1205_v34 = vpack.c.bf16 %v772_v32, %v771_v56  ;;  %v1902_v7 = vpack.c.bf16 %v7607_v4, %v7606_v52  ;;  %v7609_v56 = vld [vmem:[%s7836_s15 + $0x88] sm:$0xff]  ;;  %v7610_v32 = vld [vmem:[%s7815_s12 + $0xa0] sm:$0xff]  ;;  %v8776_v52 = vrot.slane %v8755_v2, %v1210_v20 }
 0x1d1   : > { %v7315_v31 = vpop.eup %7314  ;;  %v1667_v58 = vpack.c.bf16 %v7609_v56, %v7608_v17 }
 0x1d2   : > { %6635 = vmatprep.mubr.msk.bf16.mxu0 %vm357_vm0, %v1205_v34  ;;  %v774_v9 = vmul.f32 %v7315_v31, %v10763_v62  ;;  %v1903_v34 = vpack.c.bf16 %v7611_v18, %v7610_v32  ;;  %v7612_v31 = vld [vmem:[%s7836_s15 + $0x90] sm:$0xff]  ;;  %v7616_v62 = vld [vmem:[%s7836_s15 + $0xa0] sm:$0xff] }
 0x1d3   : > { %v1668_v53 = vpack.c.bf16 %v7613_v1, %v7612_v31 }
 0x1d4   : > { %v1206_v55 = vpack.c.bf16 %v774_v9, %v773_v33  ;;  %v7617_v9 = vld [vmem:[%s7836_s15 + $0xa8] sm:$0xff] }
 0x1d5   : > { %v1669_v54 = vpack.c.bf16 %v7617_v9, %v7616_v62 }
 0x1d6   : > { %6636 = vmatmul.mubr.msk.bf16.gmra.mrb[28].mxu0 %vm357_vm0, %v1206_v55  ;;  %6710 = vmatmul.mubr.msk.bf16.vlgmr.msra.gmra.mrb[32].mxu1 %vm357_vm0, %v1894_v11  ;;  %v7614_v11 = vld [vmem:[%s7815_s12 + $0xb0] sm:$0xff] }
 0x1d7   : > { %6675 = vmatprep.mubr.msk.bf16.mxu0 %vm357_vm0, %v1659_v21  ;;  %6713 = vmatprep.mubr.msk.bf16.mxu1 %vm357_vm0, %v1895_v19  ;;  %v1904_v33 = vpack.c.bf16 %v7615_v39, %v7614_v11  ;;  %v7619_v21 = vld [vmem:[%s7815_s12 + $0xc8] sm:$0xff]  ;;  %v7621_v19 = vld [vmem:[%s7836_s15 + $0xb8] sm:$0xff]  ;;  %s5908_s12 = sld [smem:[#allocation2]]  ;;  %s10460_s15 = scalar_lea.vmem [#allocation3], %s6265_s14 }
 0x1d8   : > { %v1905_v48 = vpack.c.bf16 %v7619_v21, %v7618_v63  ;;  %v1670_v55 = vpack.c.bf16 %v7621_v19, %v7620_v12  ;;  %s6163_s17 = sshll.u32 %s10460_s15, 4  ;;  %s10516_s17 = int_to_ptr.vmem [resolvable:$true] %s6163_s17 }
 0x1d9   : > { %s7637_s26 = scalar_lea.vmem %s10516_s17, 256  ;;  %p7644_p1 = scmp.lt.s32.totalorder %s10516_s17, %s7642_s30 }
 0x1da   : > { %p7638_p12 = scmp.ne.s32.totalorder %s10516_s17, %s7637_s26  ;;  %p7645_p2 = scmp.lt.s32.totalorder %s7643_s8, %s7637_s26 }
 0x1dc   : > { %p7639_p13 = pnand %p7638_p12, %p7795_p4  ;;  %p7646_p3 = por %p7645_p2, %p7644_p1 }
 0x1de   : > { %6676 = vmatmul.mubr.msk.bf16.vlgmr.msra.gmra.mrb[32].mxu0 %vm357_vm0, %v1660_v47  ;;  %6714 = vmatmul.mubr.msk.bf16.gmra.mrb[36].mxu1 %vm357_vm0, %v1896_v26  ;;  %v1906_v47 = vpack.c.bf16 %v7623_v23, %v7622_v41  ;;  %v1671_v26 = vpack.c.bf16 %v7625_v46, %v7624_v51  ;;  %p7640_p0 = pneg %p7639_p13 }
 0x1df   : > { %6679 = vmatprep.mubr.msk.bf16.mxu0 %vm357_vm0, %v1661_v38  ;;  %6717 = vmatprep.mubr.msk.bf16.mxu1 %vm357_vm0, %v1897_v13  ;;  %v1907_v38 = vpack.c.bf16 %v7627_v28, %v7626_v50  ;;  %v1672_v13 = vpack.c.bf16 %v7629_v0, %v7628_v27 }
 0x1e0   : > { %p7647_p5 = pnand %p7646_p3, %p7640_p0 }
 0x1e6   : > { %6680 = vmatmul.mubr.msk.bf16.gmra.mrb[36].mxu0 %vm357_vm0, %v1662_v45  ;;  %6718 = vmatmul.mubr.msk.bf16.gmra.mrb[40].mxu1 %vm357_vm0, %v1898_v44  ;;  %v1908_v45 = vpack.c.bf16 %v7631_v57, %v7630_v30  ;;  %v1673_v44 = vpack.c.bf16 %v7633_v59, %v7632_v25 }
 0x1e7   : > { %6683 = vmatprep.mubr.msk.bf16.mxu0 %vm357_vm0, %v1663_v35  ;;  %6721 = vmatprep.mubr.msk.bf16.mxu1 %vm357_vm0, %v1899_v6  ;;  %v1674_v35 = vpack.c.bf16 %v7635_v36, %v7634_v42  ;;  %v1445_v6 = vsub.s32 1, %v8749_v14 }
 0x1e9   : > { %v8758_v10 = vrot.slane %v8755_v2, %v1445_v6 }
 0x1ee   : > { %6684 = vmatmul.mubr.msk.bf16.gmra.mrb[40].mxu0 %vm357_vm0, %v1664_v37  ;;  %6722 = vmatmul.mubr.msk.bf16.gmra.mrb[44].mxu1 %vm357_vm0, %v1900_v22 }
 0x1ef   : > { %6687 = vmatprep.mubr.msk.bf16.mxu0 %vm357_vm0, %v1665_v40  ;;  %6725 = vmatprep.mubr.msk.bf16.mxu1 %vm357_vm0, %v1901_v60 }
 0x1f6   : > { %6688 = vmatmul.mubr.msk.bf16.gmra.mrb[44].mxu0 %vm357_vm0, %v1666_v5  ;;  %6726 = vmatmul.mubr.msk.bf16.gmra.mrb[48].mxu1 %vm357_vm0, %v1902_v7 }
 0x1f7   : > { %6691 = vmatprep.mubr.msk.bf16.mxu0 %vm357_vm0, %v1667_v58  ;;  %6729 = vmatprep.mubr.msk.bf16.mxu1 %vm357_vm0, %v1903_v34 }
 0x1fe   : > { %6692 = vmatmul.mubr.msk.bf16.gmra.mrb[48].mxu0 %vm357_vm0, %v1668_v53  ;;  %6730 = vmatmul.mubr.msk.bf16.gmra.mrb[52].mxu1 %vm357_vm0, %v1904_v33 }
 0x1ff   : > { %6695 = vmatprep.mubr.msk.bf16.mxu0 %vm357_vm0, %v1669_v54  ;;  %6733 = vmatprep.mubr.msk.bf16.mxu1 %vm357_vm0, %v1905_v48 }
 0x206   : > { %6696 = vmatmul.mubr.msk.bf16.gmra.mrb[52].mxu0 %vm357_vm0, %v1670_v55  ;;  %6734 = vmatmul.mubr.msk.bf16.gmra.mrb[56].mxu1 %vm357_vm0, %v1906_v47 }
 0x207   : > { %6699 = vmatprep.mubr.msk.bf16.mxu0 %vm357_vm0, %v1671_v26  ;;  %6737 = vmatprep.mubr.msk.bf16.mxu1 %vm357_vm0, %v1907_v38 }
 0x20e   : > { %6700 = vmatmul.mubr.msk.bf16.gmra.mrb[56].mxu0 %vm357_vm0, %v1672_v13  ;;  %6738 = vmatmul.mubr.msk.bf16.gmra.mrb[60].mxu1 %vm357_vm0, %v1908_v45 }
 0x20f   : > { %6703 = vmatprep.mubr.msk.bf16.mxu0 %vm357_vm0, %v1673_v44  ;;  %6749 = vmatprep.mubr.msk.bf16.mxu1 %vm7718_vm2, %v10614_v49 }
 0x216   : > { %6704 = vmatmul.mubr.msk.bf16.gmra.mrb[60].mxu0 %vm357_vm0, %v1674_v35 }
 0x217   : > { %6743 = vmatprep.mubr.msk.bf16.mxu0 %vm7718_vm2, %v10614_v49 }
 0x231   : > { %v6643_v37 = vpop.f32.mrb[0].mxu1 }
 0x232   : > { %v1532_v61 = vpop.f32.mrb[1].mxu1  ;;  %v1541_v22 = vadd.f32 %v6643_v37, %v8758_v10 }
 0x233   : > { %v6644_v3 = vpop.f32.mrb[2].mxu1  ;;  %v1533_v40 = vadd.f32 %v1532_v61, %v8758_v10 }
 0x234   : > { %v1544_v24 = vadd.f32 %v6644_v3, %v8758_v10  ;;  %v1535_v15 = vpop.f32.mrb[3].mxu1 }
 0x235   : > { %v1536_v43 = vadd.f32 %v1535_v15, %v8758_v10 }
 0x236   : > { %v8764_v29 = vpack.c.bf16 %v1544_v24, %v1541_v22 }
 0x237   : > { %v8766_v60 = vpack.c.bf16 %v1536_v43, %v1533_v40 }
 0x238   : > { %v2242_v8 = vsel %vm357_vm0, %v8764_v29, 0 }
 0x239   : > { %6748 = vmatpush3.bf16.xpose.msra.mxu1 %v2242_v8  ;;  %v2195_v5 = vsel %vm357_vm0, %v8766_v60, 0 }
 0x23a   : > { %6742 = vmatpush3.bf16.xpose.msra.mxu0 %v2195_v5  ;;  %6759 = vmatprep.subr.bf16.mxu1 %v10614_v49 }
 0x23b   : > { %6753 = vmatprep.subr.bf16.mxu0 %v10614_v49 }
 0x23d   : > { %v6609_v4 = vpop.f32.mrb[0].mxu0 }
 0x23e   : > { %v1298_v7 = vpop.f32.mrb[1].mxu0  ;;  %v1307_v56 = vadd.f32 %v6609_v4, %v8776_v52 }
 0x23f   : > { %v6610_v17 = vpop.f32.mrb[2].mxu0  ;;  %v1299_v18 = vadd.f32 %v1298_v7, %v8776_v52 }
 0x240   : > { %v1310_v58 = vadd.f32 %v6610_v17, %v8776_v52  ;;  %v1301_v32 = vpop.f32.mrb[3].mxu0 }
 0x241   : > { %v1302_v34 = vadd.f32 %v1301_v32, %v8776_v52  ;;  %v6647_v31 = vpop.f32.mrb[4].mxu1 }
 0x242   : > { %v8782_v1 = vpack.c.bf16 %v1310_v58, %v1307_v56  ;;  %v1548_v53 = vpop.f32.mrb[5].mxu1  ;;  %v1557_v33 = vadd.f32 %v6647_v31, %v8758_v10 }
 0x243   : > { %v8784_v11 = vpack.c.bf16 %v1302_v34, %v1299_v18  ;;  %v6648_v39 = vpop.f32.mrb[6].mxu1  ;;  %v1549_v54 = vadd.f32 %v1548_v53, %v8758_v10 }
 0x244   : > { %v1560_v62 = vadd.f32 %v6648_v39, %v8758_v10  ;;  %v1551_v9 = vpop.f32.mrb[7].mxu1  ;;  %6750 = vmatmul.mubr.msk.bf16.vlgmr.msra.gmra.mrb[64].mxu1 %vm357_vm0, %v8782_v1 }
 0x245   : > { %v1552_v63 = vadd.f32 %v1551_v9, %v8758_v10  ;;  %6744 = vmatmul.mubr.msk.bf16.vlgmr.msra.gmra.mrb[64].mxu0 %vm357_vm0, %v8784_v11  ;;  %6761 = vmatprep.mubr.msk.bf16.mxu1 %vm7718_vm2, %v10614_v49 }
 0x246   : > { %v8796_v21 = vpack.c.bf16 %v1560_v62, %v1557_v33  ;;  %6755 = vmatprep.mubr.msk.bf16.mxu0 %vm7718_vm2, %v10614_v49 }
 0x247   : > { %v8800_v48 = vpack.c.bf16 %v1552_v63, %v1549_v54 }
 0x248   : > { %v2336_v12 = vsel %vm357_vm0, %v8796_v21, 0 }
 0x249   : > { %6760 = vmatpush3.bf16.xpose.msra.mxu1 %v2336_v12  ;;  %v2289_v19 = vsel %vm357_vm0, %v8800_v48, 0 }
 0x24a   : > { %6754 = vmatpush3.bf16.xpose.msra.mxu0 %v2289_v19  ;;  %6771 = vmatprep.subr.bf16.mxu1 %v10614_v49 }
 0x24b   : > { %6765 = vmatprep.subr.bf16.mxu0 %v10614_v49 }
 0x24d   : > { %v6613_v55 = vpop.f32.mrb[4].mxu0 }
 0x24e   : > { %v1314_v41 = vpop.f32.mrb[5].mxu0  ;;  %v1323_v47 = vadd.f32 %v6613_v55, %v8776_v52 }
 0x24f   : > { %v6614_v23 = vpop.f32.mrb[6].mxu0  ;;  %v1315_v26 = vadd.f32 %v1314_v41, %v8776_v52 }
 0x250   : > { %v1326_v51 = vadd.f32 %v6614_v23, %v8776_v52  ;;  %v1317_v46 = vpop.f32.mrb[7].mxu0 }
 0x251   : > { %v1318_v50 = vadd.f32 %v1317_v46, %v8776_v52  ;;  %v6651_v28 = vpop.f32.mrb[8].mxu1 }
 0x252   : > { %v8812_v38 = vpack.c.bf16 %v1326_v51, %v1323_v47  ;;  %v1564_v27 = vpop.f32.mrb[9].mxu1  ;;  %v1573_v30 = vadd.f32 %v6651_v28, %v8758_v10 }
 0x253   : > { %v8814_v0 = vpack.c.bf16 %v1318_v50, %v1315_v26  ;;  %v6652_v13 = vpop.f32.mrb[10].mxu1  ;;  %v1565_v25 = vadd.f32 %v1564_v27, %v8758_v10 }
 0x254   : > { %v1576_v57 = vadd.f32 %v6652_v13, %v8758_v10  ;;  %v1567_v45 = vpop.f32.mrb[11].mxu1  ;;  %6762 = vmatmul.mubr.msk.bf16.vlgmr.msra.gmra.mrb[68].mxu1 %vm357_vm0, %v8812_v38 }
 0x255   : > { %v1568_v59 = vadd.f32 %v1567_v45, %v8758_v10  ;;  %6756 = vmatmul.mubr.msk.bf16.vlgmr.msra.gmra.mrb[68].mxu0 %vm357_vm0, %v8814_v0  ;;  %6773 = vmatprep.mubr.msk.bf16.mxu1 %vm7718_vm2, %v10614_v49 }
 0x256   : > { %v8826_v44 = vpack.c.bf16 %v1576_v57, %v1573_v30  ;;  %6767 = vmatprep.mubr.msk.bf16.mxu0 %vm7718_vm2, %v10614_v49 }
 0x257   : > { %v8830_v42 = vpack.c.bf16 %v1568_v59, %v1565_v25 }
 0x258   : > { %v2430_v36 = vsel %vm357_vm0, %v8826_v44, 0 }
 0x259   : > { %6772 = vmatpush3.bf16.xpose.msra.mxu1 %v2430_v36  ;;  %v2383_v35 = vsel %vm357_vm0, %v8830_v42, 0 }
 0x25a   : > { %6766 = vmatpush3.bf16.xpose.msra.mxu0 %v2383_v35  ;;  %6783 = vmatprep.subr.bf16.mxu1 %v10614_v49 }
 0x25b   : > { %6777 = vmatprep.subr.bf16.mxu0 %v10614_v49 }
 0x25d   : > { %v6617_v6 = vpop.f32.mrb[8].mxu0 }
 0x25e   : > { %v1330_v37 = vpop.f32.mrb[9].mxu0  ;;  %v1339_v3 = vadd.f32 %v6617_v6, %v8776_v52 }
 0x25f   : > { %v6618_v61 = vpop.f32.mrb[10].mxu0  ;;  %v1331_v15 = vadd.f32 %v1330_v37, %v8776_v52 }
 0x260   : > { %v1342_v22 = vadd.f32 %v6618_v61, %v8776_v52  ;;  %v1333_v24 = vpop.f32.mrb[11].mxu0 }
 0x261   : > { %v1334_v40 = vadd.f32 %v1333_v24, %v8776_v52  ;;  %v6655_v43 = vpop.f32.mrb[12].mxu1 }
 0x262   : > { %v8842_v8 = vpack.c.bf16 %v1342_v22, %v1339_v3  ;;  %v1580_v20 = vpop.f32.mrb[13].mxu1  ;;  %v1589_v7 = vadd.f32 %v6655_v43, %v8758_v10 }
 0x263   : > { %v8844_v5 = vpack.c.bf16 %v1334_v40, %v1331_v15  ;;  %v6656_v4 = vpop.f32.mrb[14].mxu1  ;;  %v1581_v58 = vadd.f32 %v1580_v20, %v8758_v10 }
 0x264   : > { %v1592_v17 = vadd.f32 %v6656_v4, %v8758_v10  ;;  %v1583_v56 = vpop.f32.mrb[15].mxu1  ;;  %6774 = vmatmul.mubr.msk.bf16.vlgmr.msra.gmra.mrb[72].mxu1 %vm357_vm0, %v8842_v8 }
 0x265   : > { %v1584_v32 = vadd.f32 %v1583_v56, %v8758_v10  ;;  %6768 = vmatmul.mubr.msk.bf16.vlgmr.msra.gmra.mrb[72].mxu0 %vm357_vm0, %v8844_v5  ;;  %6785 = vmatprep.mubr.msk.bf16.mxu1 %vm7718_vm2, %v10614_v49 }
 0x266   : > { %v8856_v18 = vpack.c.bf16 %v1592_v17, %v1589_v7  ;;  %6779 = vmatprep.mubr.msk.bf16.mxu0 %vm7718_vm2, %v10614_v49 }
 0x267   : > { %v8860_v34 = vpack.c.bf16 %v1584_v32, %v1581_v58 }
 0x268   : > { %v2524_v31 = vsel %vm357_vm0, %v8856_v18, 0 }
 0x269   : > { %6784 = vmatpush3.bf16.xpose.msra.mxu1 %v2524_v31  ;;  %v2477_v53 = vsel %vm357_vm0, %v8860_v34, 0 }
 0x26a   : > { %6778 = vmatpush3.bf16.xpose.msra.mxu0 %v2477_v53  ;;  %6795 = vmatprep.subr.bf16.mxu1 %v10614_v49 }
 0x26b   : > { %6789 = vmatprep.subr.bf16.mxu0 %v10614_v49 }
 0x26d   : > { %v6621_v39 = vpop.f32.mrb[12].mxu0 }
 0x26e   : > { %v1346_v33 = vpop.f32.mrb[13].mxu0  ;;  %v1355_v9 = vadd.f32 %v6621_v39, %v8776_v52 }
 0x26f   : > { %v6622_v62 = vpop.f32.mrb[14].mxu0  ;;  %v1347_v12 = vadd.f32 %v1346_v33, %v8776_v52 }
 0x270   : > { %v1358_v54 = vadd.f32 %v6622_v62, %v8776_v52  ;;  %v1349_v63 = vpop.f32.mrb[15].mxu0 }
 0x271   : > { %v1350_v19 = vadd.f32 %v1349_v63, %v8776_v52  ;;  %v6659_v55 = vpop.f32.mrb[16].mxu1 }
 0x272   : > { %v8872_v41 = vpack.c.bf16 %v1358_v54, %v1355_v9  ;;  %v1596_v23 = vpop.f32.mrb[17].mxu1  ;;  %v1605_v46 = vadd.f32 %v6659_v55, %v8758_v10 }
 0x273   : > { %v8874_v47 = vpack.c.bf16 %v1350_v19, %v1347_v12  ;;  %v6660_v51 = vpop.f32.mrb[18].mxu1  ;;  %v1597_v28 = vadd.f32 %v1596_v23, %v8758_v10 }
 0x274   : > { %v1608_v26 = vadd.f32 %v6660_v51, %v8758_v10  ;;  %v1599_v50 = vpop.f32.mrb[19].mxu1  ;;  %6786 = vmatmul.mubr.msk.bf16.vlgmr.msra.gmra.mrb[76].mxu1 %vm357_vm0, %v8872_v41 }
 0x275   : > { %v1600_v27 = vadd.f32 %v1599_v50, %v8758_v10  ;;  %6780 = vmatmul.mubr.msk.bf16.vlgmr.msra.gmra.mrb[76].mxu0 %vm357_vm0, %v8874_v47  ;;  %6797 = vmatprep.mubr.msk.bf16.mxu1 %vm7718_vm2, %v10614_v49 }
 0x276   : > { %v8886_v13 = vpack.c.bf16 %v1608_v26, %v1605_v46  ;;  %6791 = vmatprep.mubr.msk.bf16.mxu0 %vm7718_vm2, %v10614_v49 }
 0x277   : > { %v8890_v30 = vpack.c.bf16 %v1600_v27, %v1597_v28 }
 0x278   : > { %v2618_v57 = vsel %vm357_vm0, %v8886_v13, 0 }
 0x279   : > { %6796 = vmatpush3.bf16.xpose.msra.mxu1 %v2618_v57  ;;  %v2571_v45 = vsel %vm357_vm0, %v8890_v30, 0 }
 0x27a   : > { %6790 = vmatpush3.bf16.xpose.msra.mxu0 %v2571_v45  ;;  %6807 = vmatprep.subr.bf16.mxu1 %v10614_v49 }
 0x27b   : > { %6801 = vmatprep.subr.bf16.mxu0 %v10614_v49 }
 0x27d   : > { %v6625_v25 = vpop.f32.mrb[16].mxu0 }
 0x27e   : > { %v1362_v59 = vpop.f32.mrb[17].mxu0  ;;  %v1371_v35 = vadd.f32 %v6625_v25, %v8776_v52 }
 0x27f   : > { %v6626_v36 = vpop.f32.mrb[18].mxu0  ;;  %v1363_v61 = vadd.f32 %v1362_v59, %v8776_v52 }
 0x280   : > { %v1374_v6 = vadd.f32 %v6626_v36, %v8776_v52  ;;  %v1365_v37 = vpop.f32.mrb[19].mxu0 }
 0x281   : > { %v1366_v3 = vadd.f32 %v1365_v37, %v8776_v52  ;;  %v6663_v22 = vpop.f32.mrb[20].mxu1 }
 0x282   : > { %v8902_v24 = vpack.c.bf16 %v1374_v6, %v1371_v35  ;;  %v1612_v15 = vpop.f32.mrb[21].mxu1  ;;  %v1621_v20 = vadd.f32 %v6663_v22, %v8758_v10 }
 0x283   : > { %v8904_v40 = vpack.c.bf16 %v1366_v3, %v1363_v61  ;;  %v6664_v43 = vpop.f32.mrb[22].mxu1  ;;  %v1613_v17 = vadd.f32 %v1612_v15, %v8758_v10 }
 0x284   : > { %v1624_v4 = vadd.f32 %v6664_v43, %v8758_v10  ;;  %v1615_v7 = vpop.f32.mrb[23].mxu1  ;;  %6798 = vmatmul.mubr.msk.bf16.vlgmr.msra.gmra.mrb[80].mxu1 %vm357_vm0, %v8902_v24 }
 0x285   : > { %v1616_v56 = vadd.f32 %v1615_v7, %v8758_v10  ;;  %6792 = vmatmul.mubr.msk.bf16.vlgmr.msra.gmra.mrb[80].mxu0 %vm357_vm0, %v8904_v40  ;;  %6809 = vmatprep.mubr.msk.bf16.mxu1 %vm7718_vm2, %v10614_v49 }
 0x286   : > { %v8916_v58 = vpack.c.bf16 %v1624_v4, %v1621_v20  ;;  %6803 = vmatprep.mubr.msk.bf16.mxu0 %vm7718_vm2, %v10614_v49 }
 0x287   : > { %v8920_v32 = vpack.c.bf16 %v1616_v56, %v1613_v17  ;;  %v1913_v56 = vsub.s32 3, %v8749_v14 }
 0x288   : > { %v2712_v31 = vsel %vm357_vm0, %v8916_v58, 0 }
 0x289   : > { %6808 = vmatpush3.bf16.xpose.msra.mxu1 %v2712_v31  ;;  %v2665_v53 = vsel %vm357_vm0, %v8920_v32, 0 }
 0x28a   : > { %6802 = vmatpush3.bf16.xpose.msra.mxu0 %v2665_v53  ;;  %6819 = vmatprep.subr.bf16.mxu1 %v10614_v49 }
 0x28b   : > { %6813 = vmatprep.subr.bf16.mxu0 %v10614_v49 }
 0x28d   : > { %v6629_v39 = vpop.f32.mrb[20].mxu0 }
 0x28e   : > { %v1378_v33 = vpop.f32.mrb[21].mxu0  ;;  %v1387_v9 = vadd.f32 %v6629_v39, %v8776_v52 }
 0x28f   : > { %v6630_v62 = vpop.f32.mrb[22].mxu0  ;;  %v1379_v12 = vadd.f32 %v1378_v33, %v8776_v52 }
 0x290   : > { %v1390_v54 = vadd.f32 %v6630_v62, %v8776_v52  ;;  %v1381_v63 = vpop.f32.mrb[23].mxu0 }
 0x291   : > { %v1382_v19 = vadd.f32 %v1381_v63, %v8776_v52  ;;  %v6667_v55 = vpop.f32.mrb[24].mxu1 }
 0x292   : > { %v8932_v23 = vpack.c.bf16 %v1390_v54, %v1387_v9  ;;  %v1628_v51 = vpop.f32.mrb[25].mxu1  ;;  %v1637_v50 = vadd.f32 %v6667_v55, %v8758_v10 }
 0x293   : > { %v8934_v46 = vpack.c.bf16 %v1382_v19, %v1379_v12  ;;  %v6668_v26 = vpop.f32.mrb[26].mxu1  ;;  %v1629_v57 = vadd.f32 %v1628_v51, %v8758_v10  ;;  %v8982_v12 = vrot.slane %v8755_v2, %v1913_v56 }
 0x294   : > { %v1640_v28 = vadd.f32 %v6668_v26, %v8758_v10  ;;  %v1631_v27 = vpop.f32.mrb[27].mxu1  ;;  %6810 = vmatmul.mubr.msk.bf16.vlgmr.msra.gmra.mrb[84].mxu1 %vm357_vm0, %v8932_v23 }
 0x295   : > { %v1632_v45 = vadd.f32 %v1631_v27, %v8758_v10  ;;  %6804 = vmatmul.mubr.msk.bf16.vlgmr.msra.gmra.mrb[84].mxu0 %vm357_vm0, %v8934_v46  ;;  %6821 = vmatprep.mubr.msk.bf16.mxu1 %vm7718_vm2, %v10614_v49  ;;  %v1679_v27 = vsub.s32 2, %v8749_v14 }
 0x296   : > { %v8946_v25 = vpack.c.bf16 %v1640_v28, %v1637_v50  ;;  %6815 = vmatprep.mubr.msk.bf16.mxu0 %vm7718_vm2, %v10614_v49 }
 0x297   : > { %v8950_v59 = vpack.c.bf16 %v1632_v45, %v1629_v57 }
 0x298   : > { %v2806_v36 = vsel %vm357_vm0, %v8946_v25, 0 }
 0x299   : > { %6820 = vmatpush3.bf16.xpose.msra.mxu1 %v2806_v36  ;;  %v2759_v35 = vsel %vm357_vm0, %v8950_v59, 0 }
 0x29a   : > { %6814 = vmatpush3.bf16.xpose.msra.mxu0 %v2759_v35  ;;  %6831 = vmatprep.subr.bf16.mxu1 %v10614_v49 }
 0x29b   : > { %6825 = vmatprep.subr.bf16.mxu0 %v10614_v49 }
 0x29d   : > { %v6633_v6 = vpop.f32.mrb[24].mxu0 }
 0x29e   : > { %v1394_v37 = vpop.f32.mrb[25].mxu0  ;;  %v1403_v3 = vadd.f32 %v6633_v6, %v8776_v52 }
 0x29f   : > { %v6634_v61 = vpop.f32.mrb[26].mxu0  ;;  %v1395_v43 = vadd.f32 %v1394_v37, %v8776_v52 }
 0x2a0   : > { %v1406_v22 = vadd.f32 %v6634_v61, %v8776_v52  ;;  %v1397_v15 = vpop.f32.mrb[27].mxu0 }
 0x2a1   : > { %v1398_v20 = vadd.f32 %v1397_v15, %v8776_v52  ;;  %v6671_v4 = vpop.f32.mrb[28].mxu1 }
 0x2a2   : > { %v8962_v7 = vpack.c.bf16 %v1406_v22, %v1403_v3  ;;  %v1644_v17 = vpop.f32.mrb[29].mxu1  ;;  %v1653_v39 = vadd.f32 %v6671_v4, %v8758_v10 }
 0x2a3   : > { %v8965_v31 = vpack.c.bf16 %v1398_v20, %v1395_v43  ;;  %v6672_v53 = vpop.f32.mrb[30].mxu1  ;;  %v1645_v9 = vadd.f32 %v1644_v17, %v8758_v10  ;;  %v9012_v17 = vrot.slane %v8755_v2, %v1679_v27  ;;  %v2192_v2 = vsel %vm357_vm0, %v8784_v11, 0 }
 0x2a4   : > { %v1656_v33 = vadd.f32 %v6672_v53, %v8758_v10  ;;  %v1647_v62 = vpop.f32.mrb[31].mxu1  ;;  %6822 = vmatmul.mubr.msk.bf16.vlgmr.msra.gmra.mrb[88].mxu1 %vm357_vm0, %v8962_v7 }
 0x2a5   : > { %v1648_v54 = vadd.f32 %v1647_v62, %v8758_v10  ;;  %6816 = vmatmul.mubr.msk.bf16.vlgmr.msra.gmra.mrb[88].mxu0 %vm357_vm0, %v8965_v31  ;;  %6833 = vmatprep.mubr.msk.bf16.mxu1 %vm7718_vm2, %v10614_v49 }
 0x2a6   : > { %v8977_v63 = vpack.c.bf16 %v1656_v33, %v1653_v39  ;;  %6827 = vmatprep.mubr.msk.bf16.mxu0 %vm7718_vm2, %v10614_v49 }
 0x2a7   : > { %v8984_v19 = vpack.c.bf16 %v1648_v54, %v1645_v9 }
 0x2a8   : > { %v2900_v55 = vsel %vm357_vm0, %v8977_v63, 0 }
 0x2a9   : > { %v6637_v10 = vpop.f32.mrb[28].mxu0  ;;  %6832 = vmatpush3.bf16.xpose.msra.mxu1 %v2900_v55  ;;  %v2853_v51 = vsel %vm357_vm0, %v8984_v19, 0  ;;  %v6711_v26 = vpop.f32.mrb[32].mxu1 }
 0x2aa   : > { %v1410_v50 = vpop.f32.mrb[29].mxu0  ;;  %6826 = vmatpush3.bf16.xpose.msra.mxu0 %v2853_v51  ;;  %6843 = vmatprep.subr.bf16.mxu1 %v10614_v49  ;;  %v8992_v28 = vadd.f32 %v6711_v26, %v8982_v12  ;;  %v2000_v57 = vpop.f32.mrb[33].mxu1  ;;  %v1419_v6 = vadd.f32 %v6637_v10, %v8776_v52 }
 0x2ab   : > { %v6638_v45 = vpop.f32.mrb[30].mxu0  ;;  %6837 = vmatprep.subr.bf16.mxu0 %v10614_v49  ;;  %v8997_v36 = vadd.f32 %v2000_v57, %v8982_v12  ;;  %v6712_v35 = vpop.f32.mrb[34].mxu1  ;;  %v1411_v15 = vadd.f32 %v1410_v50, %v8776_v52 }
 0x2ac   : > { %v1422_v37 = vadd.f32 %v6638_v45, %v8776_v52  ;;  %v1413_v61 = vpop.f32.mrb[31].mxu0  ;;  %v9002_v3 = vadd.f32 %v6712_v35, %v8982_v12  ;;  %v2003_v22 = vpop.f32.mrb[35].mxu1 }
 0x2ad   : > { %v1414_v43 = vadd.f32 %v1413_v61, %v8776_v52  ;;  %v9007_v20 = vadd.f32 %v2003_v22, %v8982_v12  ;;  %v2239_v52 = vsel %vm357_vm0, %v8782_v1, 0 }
 0x2ae   : > { %v9009_v4 = vpack.c.bf16 %v1422_v37, %v1419_v6 }
 0x2af   : > { %v9016_v53 = vpack.c.bf16 %v1414_v43, %v1411_v15  ;;  %v2333_v43 = vsel %vm357_vm0, %v8812_v38, 0 }
 0x2b0   : > { %6834 = vmatmul.mubr.msk.bf16.vlgmr.msra.gmra.mrb[92].mxu1 %vm357_vm0, %v9009_v4 }
 0x2b1   : > { %6828 = vmatmul.mubr.msk.bf16.vlgmr.msra.gmra.mrb[92].mxu0 %vm357_vm0, %v9016_v53  ;;  %6844 = vmatpush3.bf16.xpose.msra.mxu1 %v2239_v52  ;;  %v6677_v33 = vpop.f32.mrb[32].mxu0  ;;  %v6715_v62 = vpop.f32.mrb[36].mxu1  ;;  %v2286_v52 = vsel %vm357_vm0, %v8814_v0, 0 }
 0x2b2   : > { %6838 = vmatpush3.bf16.xpose.msra.mxu0 %v2192_v2  ;;  %6845 = vmatprep.mubr.msk.bf16.mxu1 %vm7718_vm2, %v10614_v49  ;;  %v9031_v9 = vadd.f32 %v6677_v33, %v9012_v17  ;;  %v1766_v54 = vpop.f32.mrb[33].mxu0  ;;  %v9034_v55 = vadd.f32 %v6715_v62, %v8982_v12  ;;  %v2016_v1 = vpop.f32.mrb[37].mxu1 }
 0x2b3   : > { %6839 = vmatprep.mubr.msk.bf16.mxu0 %vm7718_vm2, %v10614_v49  ;;  %6855 = vmatprep.subr.bf16.mxu1 %v10614_v49  ;;  %v9040_v11 = vadd.f32 %v1766_v54, %v9012_v17  ;;  %v6678_v10 = vpop.f32.mrb[34].mxu0  ;;  %v9043_v51 = vadd.f32 %v2016_v1, %v8982_v12  ;;  %v6716_v26 = vpop.f32.mrb[38].mxu1 }
 0x2b4   : > { %10765 = vst [vmem:[#allocation20_spill] sm:$0xff] %v9031_v9  ;;  %10766 = vst [vmem:[#allocation21_spill] sm:$0xff] %v9034_v55  ;;  %6849 = vmatprep.subr.bf16.mxu0 %v10614_v49  ;;  %v9047_v50 = vadd.f32 %v6678_v10, %v9012_v17  ;;  %v1769_v27 = vpop.f32.mrb[35].mxu0  ;;  %v9050_v57 = vadd.f32 %v6716_v26, %v8982_v12  ;;  %v2019_v45 = vpop.f32.mrb[39].mxu1 }
 0x2b5   : > { %10767 = vst [vmem:[#allocation22_spill] sm:$0xff] %v9040_v11  ;;  %10768 = vst [vmem:[#allocation23_spill] sm:$0xff] %v9043_v51  ;;  %v9053_v35 = vadd.f32 %v1769_v27, %v9012_v17  ;;  %v9056_v6 = vadd.f32 %v2019_v45, %v8982_v12 }
 0x2b6   : > { %10769 = vst [vmem:[#allocation24_spill] sm:$0xff] %v9047_v50  ;;  %10770 = vst [vmem:[#allocation6_spill] sm:$0xff] %v9050_v57 }
 0x2b7   : > { %10771 = vst [vmem:[#allocation7_spill] sm:$0xff] %v9053_v35  ;;  %10772 = vst [vmem:[#allocation8_spill] sm:$0xff] %v9056_v6 }
 0x2b8   : > { %6846 = vmatmul.mubr.msk.bf16.vlgmr.msra.gmra.mrb[96].mxu1 %vm357_vm0, %v8764_v29 }
 0x2b9   : > { %6840 = vmatmul.mubr.msk.bf16.vlgmr.msra.gmra.mrb[96].mxu0 %vm357_vm0, %v8766_v60  ;;  %6856 = vmatpush3.bf16.xpose.msra.mxu1 %v2333_v43  ;;  %v6681_v2 = vpop.f32.mrb[36].mxu0  ;;  %v6719_v33 = vpop.f32.mrb[40].mxu1 }
 0x2ba   : > { %6850 = vmatpush3.bf16.xpose.msra.mxu0 %v2286_v52  ;;  %6857 = vmatprep.mubr.msk.bf16.mxu1 %vm7718_vm2, %v10614_v49  ;;  %v9077_v62 = vadd.f32 %v6681_v2, %v9012_v17  ;;  %v1782_v29 = vpop.f32.mrb[37].mxu0  ;;  %v9080_v54 = vadd.f32 %v6719_v33, %v8982_v12  ;;  %v2032_v38 = vpop.f32.mrb[41].mxu1 }
 0x2bb   : > { %6851 = vmatprep.mubr.msk.bf16.mxu0 %vm7718_vm2, %v10614_v49  ;;  %6867 = vmatprep.subr.bf16.mxu1 %v10614_v49  ;;  %v9086_v60 = vadd.f32 %v1782_v29, %v9012_v17  ;;  %v6682_v0 = vpop.f32.mrb[38].mxu0  ;;  %v9089_v1 = vadd.f32 %v2032_v38, %v8982_v12  ;;  %v6720_v10 = vpop.f32.mrb[42].mxu1 }
 0x2bc   : > { %10773 = vst [vmem:[#allocation9_spill] sm:$0xff] %v9077_v62  ;;  %10774 = vst [vmem:[#allocation10_spill] sm:$0xff] %v9080_v54  ;;  %6861 = vmatprep.subr.bf16.mxu0 %v10614_v49  ;;  %v9093_v26 = vadd.f32 %v6682_v0, %v9012_v17  ;;  %v1785_v27 = vpop.f32.mrb[39].mxu0  ;;  %v9096_v45 = vadd.f32 %v6720_v10, %v8982_v12  ;;  %v2035_v43 = vpop.f32.mrb[43].mxu1  ;;  %v2427_v10 = vsel %vm357_vm0, %v8842_v8, 0 }
 0x2bd   : > { %10775 = vst [vmem:[#allocation11_spill] sm:$0xff] %v9086_v60  ;;  %10776 = vst [vmem:[#allocation12_spill] sm:$0xff] %v9089_v1  ;;  %v9099_v52 = vadd.f32 %v1785_v27, %v9012_v17  ;;  %v9102_v2 = vadd.f32 %v2035_v43, %v8982_v12  ;;  %v2380_v27 = vsel %vm357_vm0, %v8844_v5, 0 }
 0x2be   : > { %10777 = vst [vmem:[#allocation13_spill] sm:$0xff] %v9093_v26  ;;  %10778 = vst [vmem:[#allocation14_spill] sm:$0xff] %v9096_v45 }
 0x2bf   : > { %10779 = vst [vmem:[#allocation15_spill] sm:$0xff] %v9099_v52  ;;  %10780 = vst [vmem:[#allocation16_spill] sm:$0xff] %v9102_v2 }
 0x2c0   : > { %6858 = vmatmul.mubr.msk.bf16.vlgmr.msra.gmra.mrb[100].mxu1 %vm357_vm0, %v8796_v21 }
 0x2c1   : > { %6852 = vmatmul.mubr.msk.bf16.vlgmr.msra.gmra.mrb[100].mxu0 %vm357_vm0, %v8800_v48  ;;  %6868 = vmatpush3.bf16.xpose.msra.mxu1 %v2427_v10  ;;  %v6685_v43 = vpop.f32.mrb[40].mxu0  ;;  %v6723_v16 = vpop.f32.mrb[44].mxu1 }
 0x2c2   : > { %6862 = vmatpush3.bf16.xpose.msra.mxu0 %v2380_v27  ;;  %6869 = vmatprep.mubr.msk.bf16.mxu1 %vm7718_vm2, %v10614_v49  ;;  %v9123_v33 = vadd.f32 %v6685_v43, %v9012_v17  ;;  %v1798_v21 = vpop.f32.mrb[41].mxu0  ;;  %v9126_v38 = vadd.f32 %v6723_v16, %v8982_v12  ;;  %v2048_v8 = vpop.f32.mrb[45].mxu1 }
 0x2c3   : > { %6863 = vmatprep.mubr.msk.bf16.mxu0 %vm7718_vm2, %v10614_v49  ;;  %6879 = vmatprep.subr.bf16.mxu1 %v10614_v49  ;;  %v9132_v48 = vadd.f32 %v1798_v21, %v9012_v17  ;;  %v6686_v5 = vpop.f32.mrb[42].mxu0  ;;  %v9135_v10 = vadd.f32 %v2048_v8, %v8982_v12  ;;  %v6724_v27 = vpop.f32.mrb[46].mxu1 }
 0x2c4   : > { %10781 = vst [vmem:[#allocation17_spill] sm:$0xff] %v9123_v33  ;;  %10782 = vst [vmem:[#allocation18_spill] sm:$0xff] %v9126_v38  ;;  %6873 = vmatprep.subr.bf16.mxu0 %v10614_v49  ;;  %v9139_v43 = vadd.f32 %v6686_v5, %v9012_v17  ;;  %v1801_v16 = vpop.f32.mrb[43].mxu0  ;;  %v9142_v37 = vadd.f32 %v6724_v27, %v8982_v12  ;;  %v2051_v22 = vpop.f32.mrb[47].mxu1 }
 0x2c5   : > { %10783 = vst [vmem:[#allocation25_spill] sm:$0xff] %v9132_v48  ;;  %10784 = vst [vmem:[#allocation26_spill] sm:$0xff] %v9135_v10  ;;  %v9145_v0 = vadd.f32 %v1801_v16, %v9012_v17  ;;  %v9148_v21 = vadd.f32 %v2051_v22, %v8982_v12  ;;  %v2521_v16 = vsel %vm357_vm0, %v8872_v41, 0  ;;  %v2474_v22 = vsel %vm357_vm0, %v8874_v47, 0 }
 0x2c6   : > { %10785 = vst [vmem:[#allocation27_spill] sm:$0xff] %v9139_v43  ;;  %10786 = vst [vmem:[#allocation28_spill] sm:$0xff] %v9142_v37 }
 0x2c7   : > { %10787 = vst [vmem:[#allocation29_spill] sm:$0xff] %v9145_v0  ;;  %10788 = vst [vmem:[#allocation30_spill] sm:$0xff] %v9148_v21 }
 0x2c8   : > { %6870 = vmatmul.mubr.msk.bf16.vlgmr.msra.gmra.mrb[104].mxu1 %vm357_vm0, %v8826_v44 }
 0x2c9   : > { %6864 = vmatmul.mubr.msk.bf16.vlgmr.msra.gmra.mrb[104].mxu0 %vm357_vm0, %v8830_v42  ;;  %6880 = vmatpush3.bf16.xpose.msra.mxu1 %v2521_v16  ;;  %v6689_v8 = vpop.f32.mrb[44].mxu0  ;;  %v6727_v29 = vpop.f32.mrb[48].mxu1 }
 0x2ca   : > { %6874 = vmatpush3.bf16.xpose.msra.mxu0 %v2474_v22  ;;  %6881 = vmatprep.mubr.msk.bf16.mxu1 %vm7718_vm2, %v10614_v49  ;;  %v9169_v5 = vadd.f32 %v6689_v8, %v9012_v17  ;;  %v1814_v44 = vpop.f32.mrb[45].mxu0  ;;  %v9172_v27 = vadd.f32 %v6727_v29, %v8982_v12  ;;  %v2064_v41 = vpop.f32.mrb[49].mxu1 }
 0x2cb   : > { %6875 = vmatprep.mubr.msk.bf16.mxu0 %vm7718_vm2, %v10614_v49  ;;  %6891 = vmatprep.subr.bf16.mxu1 %v10614_v49  ;;  %v9178_v42 = vadd.f32 %v1814_v44, %v9012_v17  ;;  %v6690_v47 = vpop.f32.mrb[46].mxu0  ;;  %v9181_v16 = vadd.f32 %v2064_v41, %v8982_v12  ;;  %v6728_v22 = vpop.f32.mrb[50].mxu1 }
 0x2cc   : > { %10789 = vst [vmem:[#allocation31_spill] sm:$0xff] %v9169_v5  ;;  %10790 = vst [vmem:[#allocation32_spill] sm:$0xff] %v9172_v27  ;;  %6885 = vmatprep.subr.bf16.mxu0 %v10614_v49  ;;  %v9185_v8 = vadd.f32 %v6690_v47, %v9012_v17  ;;  %v1817_v29 = vpop.f32.mrb[47].mxu0  ;;  %v9188_v15 = vadd.f32 %v6728_v22, %v8982_v12  ;;  %v2067_v61 = vpop.f32.mrb[51].mxu1 }
 0x2cd   : > { %10791 = vst [vmem:[#allocation33_spill] sm:$0xff] %v9178_v42  ;;  %10792 = vst [vmem:[#allocation34_spill] sm:$0xff] %v9181_v16  ;;  %v9191_v39 = vadd.f32 %v1817_v29, %v9012_v17  ;;  %v9194_v44 = vadd.f32 %v2067_v61, %v8982_v12  ;;  %v2615_v29 = vsel %vm357_vm0, %v8902_v24, 0  ;;  %v2568_v61 = vsel %vm357_vm0, %v8904_v40, 0 }
 0x2ce   : > { %10793 = vst [vmem:[#allocation35_spill] sm:$0xff] %v9185_v8  ;;  %10794 = vst [vmem:[#allocation36_spill] sm:$0xff] %v9188_v15 }
 0x2cf   : > { %10795 = vst [vmem:[#allocation37_spill] sm:$0xff] %v9191_v39  ;;  %10796 = vst [vmem:[#allocation38_spill] sm:$0xff] %v9194_v44 }
 0x2d0   : > { %6882 = vmatmul.mubr.msk.bf16.vlgmr.msra.gmra.mrb[108].mxu1 %vm357_vm0, %v8856_v18 }
 0x2d1   : > { %6876 = vmatmul.mubr.msk.bf16.vlgmr.msra.gmra.mrb[108].mxu0 %vm357_vm0, %v8860_v34  ;;  %6892 = vmatpush3.bf16.xpose.msra.mxu1 %v2615_v29  ;;  %v6693_v41 = vpop.f32.mrb[48].mxu0  ;;  %v6731_v56 = vpop.f32.mrb[52].mxu1 }
 0x2d2   : > { %6886 = vmatpush3.bf16.xpose.msra.mxu0 %v2568_v61  ;;  %6893 = vmatprep.mubr.msk.bf16.mxu1 %vm7718_vm2, %v10614_v49  ;;  %v9215_v47 = vadd.f32 %v6693_v41, %v9012_v17  ;;  %v1830_v18 = vpop.f32.mrb[49].mxu0  ;;  %v9218_v22 = vadd.f32 %v6731_v56, %v8982_v12  ;;  %v2080_v24 = vpop.f32.mrb[53].mxu1 }
 0x2d3   : > { %6887 = vmatprep.mubr.msk.bf16.mxu0 %vm7718_vm2, %v10614_v49  ;;  %6903 = vmatprep.subr.bf16.mxu1 %v10614_v49  ;;  %v9224_v34 = vadd.f32 %v1830_v18, %v9012_v17  ;;  %v6694_v40 = vpop.f32.mrb[50].mxu0  ;;  %v9227_v29 = vadd.f32 %v2080_v24, %v8982_v12  ;;  %v6732_v61 = vpop.f32.mrb[54].mxu1 }
 0x2d4   : > { %10797 = vst [vmem:[#allocation39_spill] sm:$0xff] %v9215_v47  ;;  %10798 = vst [vmem:[#allocation40_spill] sm:$0xff] %v9218_v22  ;;  %6897 = vmatprep.subr.bf16.mxu0 %v10614_v49  ;;  %v9231_v41 = vadd.f32 %v6694_v40, %v9012_v17  ;;  %v1833_v56 = vpop.f32.mrb[51].mxu0  ;;  %v9234_v14 = vadd.f32 %v6732_v61, %v8982_v12  ;;  %v2083_v5 = vpop.f32.mrb[55].mxu1  ;;  %v10805_v40 = vmov 0.0  }
 0x2d5   : > { %10799 = vst [vmem:[#allocation41_spill] sm:$0xff] %v9224_v34  ;;  %10800 = vst [vmem:[#allocation42_spill] sm:$0xff] %v9227_v29  ;;  %v9237_v8 = vadd.f32 %v1833_v56, %v9012_v17  ;;  %v9240_v18 = vadd.f32 %v2083_v5, %v8982_v12  ;;  %v2709_v56 = vsel %vm357_vm0, %v8932_v23, 0  ;;  %v2662_v5 = vsel %vm357_vm0, %v8934_v46, 0 }
 0x2d6   : > { %10801 = vst [vmem:[#allocation43_spill] sm:$0xff] %v9231_v41  ;;  %10802 = vst [vmem:[#allocation44_spill] sm:$0xff] %v9234_v14 }
 0x2d7   : > { %10803 = vst [vmem:[#allocation45_spill] sm:$0xff] %v9237_v8  ;;  %10804 = vst [vmem:[#allocation46_spill] sm:$0xff] %v9240_v18 }
 0x2d8   : > { %6894 = vmatmul.mubr.msk.bf16.vlgmr.msra.gmra.mrb[112].mxu1 %vm357_vm0, %v8886_v13 }
 0x2d9   : > { %6888 = vmatmul.mubr.msk.bf16.vlgmr.msra.gmra.mrb[112].mxu0 %vm357_vm0, %v8890_v30  ;;  %6904 = vmatpush3.bf16.xpose.msra.mxu1 %v2709_v56  ;;  %v6697_v24 = vpop.f32.mrb[52].mxu0  ;;  %v6735_v49 = vpop.f32.mrb[56].mxu1 }
 0x2da   : > { %6898 = vmatpush3.bf16.xpose.msra.mxu0 %v2662_v5  ;;  %6905 = vmatprep.mubr.msk.bf16.mxu1 %vm7718_vm2, %v10805_v40  ;;  %v9261_v61 = vadd.f32 %v6697_v24, %v9012_v17  ;;  %v1846_v13 = vpop.f32.mrb[53].mxu0  ;;  %v9264_v47 = vadd.f32 %v6735_v49, %v8982_v12  ;;  %v2096_v23 = vpop.f32.mrb[57].mxu1 }
 0x2db   : > { %6899 = vmatprep.mubr.msk.bf16.mxu0 %vm7718_vm2, %v10805_v40  ;;  %6915 = vmatprep.subr.bf16.mxu1 %v10805_v40  ;;  %v9270_v30 = vadd.f32 %v1846_v13, %v9012_v17  ;;  %v6698_v46 = vpop.f32.mrb[54].mxu0  ;;  %v9273_v56 = vadd.f32 %v2096_v23, %v8982_v12  ;;  %v6736_v5 = vpop.f32.mrb[58].mxu1 }
 0x2dc   : > { %10806 = vst [vmem:[#allocation47_spill] sm:$0xff] %v9261_v61  ;;  %10807 = vst [vmem:[#allocation48_spill] sm:$0xff] %v9264_v47  ;;  %6909 = vmatprep.subr.bf16.mxu0 %v10805_v40  ;;  %v9277_v24 = vadd.f32 %v6698_v46, %v9012_v17  ;;  %v1849_v49 = vpop.f32.mrb[55].mxu0  ;;  %v9280_v41 = vadd.f32 %v6736_v5, %v8982_v12  ;;  %v2099_v34 = vpop.f32.mrb[59].mxu1 }
 0x2dd   : > { %10808 = vst [vmem:[#allocation49_spill] sm:$0xff] %v9270_v30  ;;  %10809 = vst [vmem:[#allocation50_spill] sm:$0xff] %v9273_v56  ;;  %v9283_v8 = vadd.f32 %v1849_v49, %v9012_v17  ;;  %v9286_v13 = vadd.f32 %v2099_v34, %v8982_v12  ;;  %v2803_v49 = vsel %vm357_vm0, %v8962_v7, 0  ;;  %v2756_v34 = vsel %vm357_vm0, %v8965_v31, 0 }
 0x2de   : > { %10810 = vst [vmem:[#allocation51_spill] sm:$0xff] %v9277_v24  ;;  %10811 = vst [vmem:[#allocation52_spill] sm:$0xff] %v9280_v41 }
 0x2df   : > { %10812 = vst [vmem:[#allocation53_spill] sm:$0xff] %v9283_v8  ;;  %10813 = vst [vmem:[#allocation54_spill] sm:$0xff] %v9286_v13 }
 0x2e0   : > { %6906 = vmatmul.mubr.msk.bf16.vlgmr.msra.gmra.mrb[116].mxu1 %vm357_vm0, %v8916_v58 }
 0x2e1   : > { %6900 = vmatmul.mubr.msk.bf16.vlgmr.msra.gmra.mrb[116].mxu0 %vm357_vm0, %v8920_v32  ;;  %6916 = vmatpush3.bf16.xpose.msra.mxu1 %v2803_v49  ;;  %v6701_v23 = vpop.f32.mrb[56].mxu0  ;;  %v6739_v42 = vpop.f32.mrb[60].mxu1 }
 0x2e2   : > { %6910 = vmatpush3.bf16.xpose.msra.mxu0 %v2756_v34  ;;  %6917 = vmatprep.mubr.msk.bf16.mxu1 %vm7718_vm2, %v10805_v40  ;;  %v9307_v46 = vadd.f32 %v6701_v23, %v9012_v17  ;;  %v1862_v58 = vpop.f32.mrb[57].mxu0  ;;  %v9310_v5 = vadd.f32 %v6739_v42, %v8982_v12  ;;  %v2112_v7 = vpop.f32.mrb[61].mxu1 }
 0x2e3   : > { %6911 = vmatprep.mubr.msk.bf16.mxu0 %vm7718_vm2, %v10805_v40  ;;  %6927 = vmatprep.subr.bf16.mxu1 %v10805_v40  ;;  %v9316_v32 = vadd.f32 %v1862_v58, %v9012_v17  ;;  %v6702_v31 = vpop.f32.mrb[58].mxu0  ;;  %v9319_v49 = vadd.f32 %v2112_v7, %v8982_v12  ;;  %v6740_v34 = vpop.f32.mrb[62].mxu1 }
 0x2e4   : > { %10814 = vst [vmem:[#allocation55_spill] sm:$0xff] %v9307_v46  ;;  %10815 = vst [vmem:[#allocation56_spill] sm:$0xff] %v9310_v5  ;;  %6921 = vmatprep.subr.bf16.mxu0 %v10805_v40  ;;  %v9323_v23 = vadd.f32 %v6702_v31, %v9012_v17  ;;  %v1865_v42 = vpop.f32.mrb[59].mxu0  ;;  %v9326_v61 = vadd.f32 %v6740_v34, %v8982_v12  ;;  %v2115_v24 = vpop.f32.mrb[63].mxu1 }
 0x2e5   : > { %10816 = vst [vmem:[#allocation57_spill] sm:$0xff] %v9316_v32  ;;  %10817 = vst [vmem:[#allocation58_spill] sm:$0xff] %v9319_v49  ;;  %v9329_v30 = vadd.f32 %v1865_v42, %v9012_v17  ;;  %v9332_v58 = vadd.f32 %v2115_v24, %v8982_v12  ;;  %v2897_v42 = vsel %vm357_vm0, %v9009_v4, 0  ;;  %v2850_v12 = vsel %vm357_vm0, %v9016_v53, 0 }
 0x2e6   : > { %10818 = vst [vmem:[#allocation59_spill] sm:$0xff] %v9323_v23  ;;  %10819 = vst [vmem:[#allocation60_spill] sm:$0xff] %v9326_v61 }
 0x2e7   : > { %10820 = vst [vmem:[#allocation61_spill] sm:$0xff] %v9329_v30  ;;  %10821 = vst [vmem:[#allocation62_spill] sm:$0xff] %v9332_v58 }
 0x2e8   : > { %6918 = vmatmul.mubr.msk.bf16.vlgmr.msra.gmra.mrb[120].mxu1 %vm357_vm0, %v8946_v25 }
 0x2e9   : > { %6912 = vmatmul.mubr.msk.bf16.vlgmr.msra.gmra.mrb[120].mxu0 %vm357_vm0, %v8950_v59  ;;  %6928 = vmatpush3.bf16.xpose.msra.mxu1 %v2897_v42  ;;  %v6705_v24 = vpop.f32.mrb[60].mxu0 }
 0x2ea   : > { %6922 = vmatpush3.bf16.xpose.msra.mxu0 %v2850_v12  ;;  %6929 = vmatprep.mubr.msk.bf16.mxu1 %vm7718_vm2, %v10805_v40  ;;  %v9353_v7 = vadd.f32 %v6705_v24, %v9012_v17  ;;  %v1878_v31 = vpop.f32.mrb[61].mxu0 }
 0x2eb   : > { %6923 = vmatprep.mubr.msk.bf16.mxu0 %vm7718_vm2, %v10805_v40  ;;  %6933 = vmatprep.subr.bf16.mxu0 %v10805_v40  ;;  %v9359_v25 = vadd.f32 %v1878_v31, %v9012_v17  ;;  %v6706_v59 = vpop.f32.mrb[62].mxu0  ;;  %v10826_v31 = vpack.c.bf16 %v9002_v3, %v8992_v28 }
 0x2ec   : > { %10822 = vst [vmem:[#allocation63_spill] sm:$0xff] %v9353_v7  ;;  %6939 = vmatprep.subr.bf16.mxu1 %v10805_v40  ;;  %v9363_v4 = vadd.f32 %v6706_v59, %v9012_v17  ;;  %v1881_v53 = vpop.f32.mrb[63].mxu0 }
 0x2ed   : > { %10823 = vst [vmem:[#allocation64_spill] sm:$0xff] %v9359_v25  ;;  %v9366_v42 = vadd.f32 %v1881_v53, %v9012_v17  ;;  %v10827_v17 = vpack.c.bf16 %v9007_v20, %v8997_v36 }
 0x2ee   : > { %10824 = vst [vmem:[#allocation65_spill] sm:$0xff] %v9363_v4 }
 0x2ef   : > { %10825 = vst [vmem:[#allocation66_spill] sm:$0xff] %v9366_v42 }
 0x2f0   : > { %6930 = vmatmul.mubr.msk.bf16.vlgmr.msra.gmra.mrb[124].mxu1 %vm357_vm0, %v8977_v63 }
 0x2f1   : > { %6924 = vmatmul.mubr.msk.bf16.vlgmr.msra.gmra.mrb[124].mxu0 %vm357_vm0, %v8984_v19  ;;  %6940 = vmatpush3.bf16.msra.mxu1 %v10826_v31 }
 0x2f2   : > { %6934 = vmatpush3.bf16.msra.mxu0 %v10827_v17  ;;  %6941 = vmatprep.mubr.msk.bf16.mxu1 %vm7718_vm2, %v10805_v40 }
 0x2f3   : > { %6951 = vmatprep.subr.bf16.mxu1 %v10805_v40  ;;  %6935 = vmatprep.mubr.msk.bf16.mxu0 %vm7718_vm2, %v10805_v40 }
 0x2f4   : > { %6945 = vmatprep.subr.bf16.mxu0 %v10805_v40 }
 0x317   : > { %v9388_v63 = vpop.f32.mrb[64].mxu1 }
 0x318   : > { %v9390_v19 = vpop.f32.mrb[64].mxu0  ;;  %v6751_v28 = vpop.f32.mrb[65].mxu1  ;;  %v3606_v36 = vsel %vm3599_vm3, %v9388_v63, -inf }
 0x319   : > { %3607 = vmax.xlane.f32.xlu0 %v3606_v36  ;;  %v6745_v3 = vpop.f32.mrb[65].mxu0  ;;  %v9394_v20 = vpop.f32.mrb[66].mxu1  ;;  %v3600_v12 = vsel %vm3599_vm3, %v9390_v19, -inf }
 0x31a   : > { %v9396_v59 = vpop.f32.mrb[66].mxu0  ;;  %v6752_v53 = vpop.f32.mrb[67].mxu1  ;;  %v3609_v31 = vsel %vm3599_vm3, %v9394_v20, -inf }
 0x31b   : > { %3610 = vmax.xlane.f32.xlu1 %v3609_v31  ;;  %v6746_v17 = vpop.f32.mrb[67].mxu0  ;;  %v3603_v28 = vsel %vm3599_vm3, %v9396_v59, -inf }
 0x31d   : > { %3601 = vmax.xlane.f32.xlu0 %v3600_v12 }
 0x31f   : > { %3604 = vmax.xlane.f32.xlu1 %v3603_v28 }
 0x327   : > { %v9404_v36 = vpop.f32.mrb[68].mxu1 }
 0x328   : > { %v9406_v3 = vpop.f32.mrb[68].mxu0  ;;  %v6763_v24 = vpop.f32.mrb[69].mxu1  ;;  %v3618_v53 = vsel %vm3599_vm3, %v9404_v36, -inf }
 0x329   : > { %v9410_v8 = vpop.f32.mrb[70].mxu1  ;;  %3619 = vmax.xlane.f32.xlu0 %v3618_v53  ;;  %v6757_v31 = vpop.f32.mrb[69].mxu0  ;;  %v3612_v7 = vsel %vm3599_vm3, %v9406_v3, -inf }
 0x32a   : > { %v9412_v17 = vpop.f32.mrb[70].mxu0  ;;  %v6764_v34 = vpop.f32.mrb[71].mxu1  ;;  %v3621_v12 = vsel %vm3599_vm3, %v9410_v8, -inf }
 0x32b   : > { %3622 = vmax.xlane.f32.xlu1 %v3621_v12  ;;  %v6758_v28 = vpop.f32.mrb[71].mxu0  ;;  %v3615_v24 = vsel %vm3599_vm3, %v9412_v17, -inf }
 0x32d   : > { %3613 = vmax.xlane.f32.xlu0 %v3612_v7 }
 0x32f   : > { %3616 = vmax.xlane.f32.xlu1 %v3615_v24 }
 0x337   : > { %v9420_v4 = vpop.f32.mrb[72].mxu1 }
 0x338   : > { %v9422_v53 = vpop.f32.mrb[72].mxu0  ;;  %v6775_v31 = vpop.f32.mrb[73].mxu1  ;;  %v3630_v34 = vsel %vm3599_vm3, %v9420_v4, -inf }
 0x339   : > { %v9426_v25 = vpop.f32.mrb[74].mxu1  ;;  %3631 = vmax.xlane.f32.xlu0 %v3630_v34  ;;  %v6769_v12 = vpop.f32.mrb[73].mxu0  ;;  %v3624_v46 = vsel %vm3599_vm3, %v9422_v53, -inf }
 0x33a   : > { %v9428_v28 = vpop.f32.mrb[74].mxu0  ;;  %v6776_v42 = vpop.f32.mrb[75].mxu1  ;;  %v3633_v7 = vsel %vm3599_vm3, %v9426_v25, -inf }
 0x33b   : > { %3634 = vmax.xlane.f32.xlu1 %v3633_v7  ;;  %v6770_v24 = vpop.f32.mrb[75].mxu0  ;;  %v3627_v31 = vsel %vm3599_vm3, %v9428_v28, -inf }
 0x33d   : > { %3625 = vmax.xlane.f32.xlu0 %v3624_v46 }
 0x33f   : > { %3628 = vmax.xlane.f32.xlu1 %v3627_v31 }
 0x347   : > { %v9436_v23 = vpop.f32.mrb[76].mxu1 }
 0x348   : > { %v9438_v34 = vpop.f32.mrb[76].mxu0  ;;  %v6787_v12 = vpop.f32.mrb[77].mxu1  ;;  %v3642_v42 = vsel %vm3599_vm3, %v9436_v23, -inf }
 0x349   : > { %v9442_v32 = vpop.f32.mrb[78].mxu1  ;;  %3643 = vmax.xlane.f32.xlu0 %v3642_v42  ;;  %v6781_v7 = vpop.f32.mrb[77].mxu0  ;;  %v3636_v39 = vsel %vm3599_vm3, %v9438_v34, -inf }
 0x34a   : > { %v9444_v24 = vpop.f32.mrb[78].mxu0  ;;  %v6788_v30 = vpop.f32.mrb[79].mxu1  ;;  %v3645_v46 = vsel %vm3599_vm3, %v9442_v32, -inf }
 0x34b   : > { %3646 = vmax.xlane.f32.xlu1 %v3645_v46  ;;  %v6782_v31 = vpop.f32.mrb[79].mxu0  ;;  %v3639_v12 = vsel %vm3599_vm3, %v9444_v24, -inf }
 0x34d   : > { %3637 = vmax.xlane.f32.xlu0 %v3636_v39 }
 0x34f   : > { %3640 = vmax.xlane.f32.xlu1 %v3639_v12 }
 0x357   : > { %v9452_v33 = vpop.f32.mrb[80].mxu1 }
 0x358   : > { %v9454_v42 = vpop.f32.mrb[80].mxu0  ;;  %v6799_v7 = vpop.f32.mrb[81].mxu1  ;;  %v3654_v30 = vsel %vm3599_vm3, %v9452_v33, -inf }
 0x359   : > { %v9458_v43 = vpop.f32.mrb[82].mxu1  ;;  %3655 = vmax.xlane.f32.xlu0 %v3654_v30  ;;  %v6793_v46 = vpop.f32.mrb[81].mxu0  ;;  %v3648_v0 = vsel %vm3599_vm3, %v9454_v42, -inf }
 0x35a   : > { %v9460_v31 = vpop.f32.mrb[82].mxu0  ;;  %v6800_v48 = vpop.f32.mrb[83].mxu1  ;;  %v3657_v39 = vsel %vm3599_vm3, %v9458_v43, -inf }
 0x35b   : > { %3658 = vmax.xlane.f32.xlu1 %v3657_v39  ;;  %v6794_v12 = vpop.f32.mrb[83].mxu0  ;;  %v3651_v7 = vsel %vm3599_vm3, %v9460_v31, -inf }
 0x35d   : > { %3649 = vmax.xlane.f32.xlu0 %v3648_v0 }
 0x35f   : > { %3652 = vmax.xlane.f32.xlu1 %v3651_v7 }
 0x367   : > { %v9468_v62 = vpop.f32.mrb[84].mxu1 }
 0x368   : > { %v9470_v30 = vpop.f32.mrb[84].mxu0  ;;  %v6811_v46 = vpop.f32.mrb[85].mxu1  ;;  %v3666_v48 = vsel %vm3599_vm3, %v9468_v62, -inf }
 0x369   : > { %v9474_v26 = vpop.f32.mrb[86].mxu1  ;;  %3667 = vmax.xlane.f32.xlu0 %v3666_v48  ;;  %v6805_v39 = vpop.f32.mrb[85].mxu0  ;;  %v3660_v52 = vsel %vm3599_vm3, %v9470_v30, -inf }
 0x36a   : > { %v9476_v12 = vpop.f32.mrb[86].mxu0  ;;  %v6812_v60 = vpop.f32.mrb[87].mxu1  ;;  %v3669_v0 = vsel %vm3599_vm3, %v9474_v26, -inf }
 0x36b   : > { %3670 = vmax.xlane.f32.xlu1 %v3669_v0  ;;  %v6806_v7 = vpop.f32.mrb[87].mxu0  ;;  %v3663_v46 = vsel %vm3599_vm3, %v9476_v12, -inf }
 0x36d   : > { %3661 = vmax.xlane.f32.xlu0 %v3660_v52 }
 0x36f   : > { %3664 = vmax.xlane.f32.xlu1 %v3663_v46 }
 0x377   : > { %v9484_v9 = vpop.f32.mrb[88].mxu1 }
 0x378   : > { %v9486_v48 = vpop.f32.mrb[88].mxu0  ;;  %v6823_v39 = vpop.f32.mrb[89].mxu1  ;;  %v3678_v60 = vsel %vm3599_vm3, %v9484_v9, -inf }
 0x379   : > { %v9490_v50 = vpop.f32.mrb[90].mxu1  ;;  %3679 = vmax.xlane.f32.xlu0 %v3678_v60  ;;  %v6817_v0 = vpop.f32.mrb[89].mxu0  ;;  %v3672_v35 = vsel %vm3599_vm3, %v9486_v48, -inf }
 0x37a   : > { %v9492_v7 = vpop.f32.mrb[90].mxu0  ;;  %v6824_v11 = vpop.f32.mrb[91].mxu1  ;;  %v3681_v52 = vsel %vm3599_vm3, %v9490_v50, -inf }
 0x37b   : > { %3682 = vmax.xlane.f32.xlu1 %v3681_v52  ;;  %v6818_v46 = vpop.f32.mrb[91].mxu0  ;;  %v3675_v39 = vsel %vm3599_vm3, %v9492_v7, -inf }
 0x37d   : > { %3673 = vmax.xlane.f32.xlu0 %v3672_v35 }
 0x37f   : > { %3676 = vmax.xlane.f32.xlu1 %v3675_v39 }
 0x383   : > { %v9500_v5 = vpop.f32.mrb[92].mxu1 }
 0x384   : > { %v9502_v60 = vpop.f32.mrb[92].mxu0  ;;  %v6835_v0 = vpop.f32.mrb[93].mxu1  ;;  %v3690_v11 = vsel %vm3599_vm3, %v9500_v5, -inf }
 0x385   : > { %v9506_v61 = vpop.f32.mrb[94].mxu1  ;;  %3691 = vmax.xlane.f32.xlu0 %v3690_v11  ;;  %v6829_v52 = vpop.f32.mrb[93].mxu0  ;;  %v3684_v58 = vsel %vm3599_vm3, %v9502_v60, -inf }
 0x386   : > { %v9508_v46 = vpop.f32.mrb[94].mxu0  ;;  %v6836_v49 = vpop.f32.mrb[95].mxu1  ;;  %v3693_v35 = vsel %vm3599_vm3, %v9506_v61, -inf }
 0x387   : > { %3694 = vmax.xlane.f32.xlu1 %v3693_v35  ;;  %v6830_v39 = vpop.f32.mrb[95].mxu0  ;;  %v3687_v0 = vsel %vm3599_vm3, %v9508_v46, -inf }
 0x389   : > { %3685 = vmax.xlane.f32.xlu0 %v3684_v58 }
 0x38b   : > { %v9516_v47 = vpop.f32.mrb[96].mxu1  ;;  %3688 = vmax.xlane.f32.xlu1 %v3687_v0 }
 0x38c   : > { %v9518_v11 = vpop.f32.mrb[96].mxu0  ;;  %v6847_v52 = vpop.f32.mrb[97].mxu1  ;;  %v3974_v49 = vsel %vm3599_vm3, %v9516_v47, -inf }
 0x38d   : > { %v9522_v41 = vpop.f32.mrb[98].mxu1  ;;  %3975 = vmax.xlane.f32.xlu0 %v3974_v49  ;;  %v6841_v35 = vpop.f32.mrb[97].mxu0  ;;  %v3968_v0 = vsel %vm3599_vm3, %v9518_v11, -inf }
 0x38e   : > { %v9524_v39 = vpop.f32.mrb[98].mxu0  ;;  %v6848_v56 = vpop.f32.mrb[99].mxu1  ;;  %v3977_v58 = vsel %vm3599_vm3, %v9522_v41, -inf }
 0x38f   : > { %3978 = vmax.xlane.f32.xlu1 %v3977_v58  ;;  %v6842_v13 = vpop.f32.mrb[99].mxu0  ;;  %v3971_v52 = vsel %vm3599_vm3, %v9524_v39, -inf }
 0x391   : > { %3969 = vmax.xlane.f32.xlu0 %v3968_v0 }
 0x393   : > { %v9532_v29 = vpop.f32.mrb[100].mxu1  ;;  %3972 = vmax.xlane.f32.xlu1 %v3971_v52 }
 0x394   : > { %v9534_v49 = vpop.f32.mrb[100].mxu0  ;;  %v6859_v35 = vpop.f32.mrb[101].mxu1  ;;  %v3986_v56 = vsel %vm3599_vm3, %v9532_v29, -inf }
 0x395   : > { %v9538_v18 = vpop.f32.mrb[102].mxu1  ;;  %3987 = vmax.xlane.f32.xlu0 %v3986_v56  ;;  %v6853_v13 = vpop.f32.mrb[101].mxu0  ;;  %v3980_v52 = vsel %vm3599_vm3, %v9534_v49, -inf }
 0x396   : > { %v9540_v58 = vpop.f32.mrb[102].mxu0  ;;  %v6860_v22 = vpop.f32.mrb[103].mxu1  ;;  %v3989_v0 = vsel %vm3599_vm3, %v9538_v18, -inf }
 0x397   : > { %3990 = vmax.xlane.f32.xlu1 %v3989_v0  ;;  %v6854_v14 = vpop.f32.mrb[103].mxu0  ;;  %v3983_v35 = vsel %vm3599_vm3, %v9540_v58, -inf }
 0x399   : > { %3981 = vmax.xlane.f32.xlu0 %v3980_v52 }
 0x39b   : > { %v9548_v16 = vpop.f32.mrb[104].mxu1  ;;  %3984 = vmax.xlane.f32.xlu1 %v3983_v35 }
 0x39c   : > { %v9550_v56 = vpop.f32.mrb[104].mxu0  ;;  %v6871_v13 = vpop.f32.mrb[105].mxu1  ;;  %v3998_v22 = vsel %vm3599_vm3, %v9548_v16, -inf }
 0x39d   : > { %v9554_v44 = vpop.f32.mrb[106].mxu1  ;;  %3999 = vmax.xlane.f32.xlu0 %v3998_v22  ;;  %v6865_v14 = vpop.f32.mrb[105].mxu0  ;;  %v3992_v35 = vsel %vm3599_vm3, %v9550_v56, -inf }
 0x39e   : > { %v9556_v0 = vpop.f32.mrb[106].mxu0  ;;  %v6872_v27 = vpop.f32.mrb[107].mxu1  ;;  %v4001_v52 = vsel %vm3599_vm3, %v9554_v44, -inf }
 0x39f   : > { %4002 = vmax.xlane.f32.xlu1 %v4001_v52  ;;  %v6866_v15 = vpop.f32.mrb[107].mxu0  ;;  %v3995_v13 = vsel %vm3599_vm3, %v9556_v0, -inf }
 0x3a1   : > { %3993 = vmax.xlane.f32.xlu0 %v3992_v35 }
 0x3a3   : > { %v9564_v10 = vpop.f32.mrb[108].mxu1  ;;  %3996 = vmax.xlane.f32.xlu1 %v3995_v13 }
 0x3a4   : > { %v9566_v22 = vpop.f32.mrb[108].mxu0  ;;  %v6883_v14 = vpop.f32.mrb[109].mxu1  ;;  %v4010_v27 = vsel %vm3599_vm3, %v9564_v10, -inf }
 0x3a5   : > { %v9570_v21 = vpop.f32.mrb[110].mxu1  ;;  %4011 = vmax.xlane.f32.xlu0 %v4010_v27  ;;  %v6877_v15 = vpop.f32.mrb[109].mxu0  ;;  %v4004_v13 = vsel %vm3599_vm3, %v9566_v22, -inf }
 0x3a6   : > { %v9572_v52 = vpop.f32.mrb[110].mxu0  ;;  %v6884_v38 = vpop.f32.mrb[111].mxu1  ;;  %v4013_v35 = vsel %vm3599_vm3, %v9570_v21, -inf }
 0x3a7   : > { %10828 = vst [vmem:[#allocation67_spill] sm:$0xff] %v9572_v52  ;;  %4014 = vmax.xlane.f32.xlu1 %v4013_v35  ;;  %v6878_v37 = vpop.f32.mrb[111].mxu0  ;;  %v4007_v14 = vsel %vm3599_vm3, %v9572_v52, -inf  ;;  %v3608_v1 = vpop.xlane.xlu0 %3607 }
 0x3a8   : > { %v3611_v27 = vpop.xlane.xlu1 %3610 }
 0x3a9   : > { %4005 = vmax.xlane.f32.xlu0 %v4004_v13 }
 0x3ab   : > { %v9580_v2 = vpop.f32.mrb[112].mxu1  ;;  %4008 = vmax.xlane.f32.xlu1 %v4007_v14 }
 0x3ac   : > { %10829 = vst [vmem:[#allocation68_spill] sm:$0xff] %v9580_v2  ;;  %v6895_v15 = vpop.f32.mrb[113].mxu1  ;;  %v4022_v38 = vsel %vm3599_vm3, %v9580_v2, -inf  ;;  %v9584_v54 = vpop.f32.mrb[112].mxu0 }
 0x3ad   : > { %10830 = vst [vmem:[#allocation69_spill] sm:$0xff] %v9584_v54  ;;  %v9586_v35 = vpop.f32.mrb[114].mxu1  ;;  %4023 = vmax.xlane.f32.xlu0 %v4022_v38  ;;  %v6889_v37 = vpop.f32.mrb[113].mxu0  ;;  %v4016_v14 = vsel %vm3599_vm3, %v9584_v54, -inf  ;;  %v3699_v54 = vsub.f32 %v9394_v20, %v3611_v27 }
 0x3ae   : > { %10831 = vst [vmem:[#allocation70_spill] sm:$0xff] %v9586_v35  ;;  %v6896_v45 = vpop.f32.mrb[115].mxu1  ;;  %v4025_v13 = vsel %vm3599_vm3, %v9586_v35, -inf  ;;  %v9590_v51 = vpop.f32.mrb[114].mxu0 }
 0x3af   : > { %10832 = vst [vmem:[#allocation71_spill] sm:$0xff] %v9590_v51  ;;  %4026 = vmax.xlane.f32.xlu1 %v4025_v13  ;;  %v6890_v6 = vpop.f32.mrb[115].mxu0  ;;  %v3602_v15 = vpop.xlane.xlu0 %3601  ;;  %v4019_v40 = vsel %vm3599_vm3, %v9590_v51, -inf  ;;  %v3698_v45 = vsub.f32 %v9388_v63, %v3608_v1 }
 0x3b0   : > { %v3605_v55 = vpop.xlane.xlu1 %3604 }
 0x3b1   : > { %4017 = vmax.xlane.f32.xlu0 %v4016_v14  ;;  %v3732_v63 = vmul.f32 1.442695, %v3698_v45  ;;  %v3697_v20 = vsub.f32 %v9396_v59, %v3605_v55 }
 0x3b3   : > { %v9596_v57 = vpop.f32.mrb[116].mxu1  ;;  %4020 = vmax.xlane.f32.xlu1 %v4019_v40  ;;  %7316 = vpow2.f32 %v3732_v63  ;;  %v3730_v55 = vmul.f32 1.442695, %v3697_v20 }
 0x3b4   : > { %10833 = vst [vmem:[#allocation72_spill] sm:$0xff] %v9596_v57  ;;  %v9599_v38 = vpop.f32.mrb[116].mxu0  ;;  %v6907_v37 = vpop.f32.mrb[117].mxu1  ;;  %v4034_v6 = vsel %vm3599_vm3, %v9596_v57, -inf }
 0x3b5   : > { %v9603_v13 = vpop.f32.mrb[118].mxu1  ;;  %4035 = vmax.xlane.f32.xlu0 %v4034_v6  ;;  %v6901_v14 = vpop.f32.mrb[117].mxu0  ;;  %v3696_v37 = vsub.f32 %v9390_v19, %v3602_v15  ;;  %v4028_v57 = vsel %vm3599_vm3, %v9599_v38, -inf  ;;  %v3734_v6 = vmul.f32 1.442695, %v3699_v54 }
 0x3b6   : > { %v9606_v35 = vpop.f32.mrb[118].mxu0  ;;  %v6908_v51 = vpop.f32.mrb[119].mxu1  ;;  %v4037_v40 = vsel %vm3599_vm3, %v9603_v13, -inf }
 0x3b7   : > { %v3620_v2 = vpop.xlane.xlu0 %3619  ;;  %4038 = vmax.xlane.f32.xlu1 %v4037_v40  ;;  %v6902_v1 = vpop.f32.mrb[119].mxu0  ;;  %v4031_v51 = vsel %vm3599_vm3, %v9606_v35, -inf  ;;  %v3728_v14 = vmul.f32 1.442695, %v3696_v37  ;;  %7318 = vpow2.f32 %v3734_v6 }
 0x3b8   : > { %v3623_v52 = vpop.xlane.xlu1 %3622  ;;  %v3702_v45 = vsub.f32 %v9404_v36, %v3620_v2 }
 0x3b9   : > { %4029 = vmax.xlane.f32.xlu0 %v4028_v57  ;;  %v3703_v54 = vsub.f32 %v9410_v8, %v3623_v52  ;;  %7320 = vpow2.f32 %v3728_v14 }
 0x3ba   : > { %v3740_v37 = vmul.f32 1.442695, %v3702_v45  ;;  %7322 = vpow2.f32 %v3730_v55 }
 0x3bb   : > { %v9616_v27 = vpop.f32.mrb[120].mxu1  ;;  %4032 = vmax.xlane.f32.xlu1 %v4031_v51  ;;  %v3614_v40 = vpop.xlane.xlu0 %3613  ;;  %v3742_v8 = vmul.f32 1.442695, %v3703_v54 }
 0x3bc   : > { %10834 = vst [vmem:[#allocation73_spill] sm:$0xff] %v9616_v27  ;;  %v6919_v19 = vpop.f32.mrb[121].mxu1  ;;  %v4046_v15 = vsel %vm3599_vm3, %v9616_v27, -inf  ;;  %v9621_v1 = vpop.f32.mrb[120].mxu0  ;;  %7324 = vpow2.f32 %v3740_v37 }
 0x3bd   : > { %v9623_v57 = vpop.f32.mrb[122].mxu1  ;;  %4047 = vmax.xlane.f32.xlu0 %v4046_v15  ;;  %v6913_v59 = vpop.f32.mrb[121].mxu0  ;;  %v3700_v19 = vsub.f32 %v9406_v3, %v3614_v40  ;;  %v4040_v6 = vsel %vm3599_vm3, %v9621_v1, -inf  ;;  %7326 = vpow2.f32 %v3742_v8 }
 0x3be   : > { %v6920_v51 = vpop.f32.mrb[123].mxu1  ;;  %v4049_v63 = vsel %vm3599_vm3, %v9623_v57, -inf  ;;  %v3617_v2 = vpop.xlane.xlu1 %3616 }
 0x3bf   : > { %v9628_v36 = vpop.f32.mrb[122].mxu0  ;;  %4050 = vmax.xlane.f32.xlu1 %v4049_v63  ;;  %v3701_v52 = vsub.f32 %v9412_v17, %v3617_v2  ;;  %v3736_v14 = vmul.f32 1.442695, %v3700_v19  ;;  %v9644_v54 = vpop.eup %7316 }
 0x3c0   : > { %v6914_v27 = vpop.f32.mrb[123].mxu0  ;;  %v4043_v20 = vsel %vm3599_vm3, %v9628_v36, -inf  ;;  %v3798_v8 = vsel %vm3599_vm3, %v9644_v54, 0.0 }
 0x3c1   : > { %4041 = vmax.xlane.f32.xlu0 %v4040_v6  ;;  %v3738_v17 = vmul.f32 1.442695, %v3701_v52  ;;  %v9650_v19 = vpop.eup %7318  ;;  %7328 = vpow2.f32 %v3736_v14 }
 0x3c3   : > { %v9636_v15 = vpop.f32.mrb[124].mxu1  ;;  %4044 = vmax.xlane.f32.xlu1 %v4043_v20  ;;  %v9656_v52 = vpop.eup %7320  ;;  %7330 = vpow2.f32 %v3738_v17 }
 0x3c4   : > { %v9638_v45 = vpop.f32.mrb[124].mxu0  ;;  %v6931_v3 = vpop.f32.mrb[125].mxu1 }
 0x3c5   : > { %v6925_v27 = vpop.f32.mrb[125].mxu0  ;;  %v9640_v40 = vpop.f32.mrb[126].mxu1  ;;  %v4052_v55 = vsel %vm3599_vm3, %v9638_v45, -inf }
 0x3c6   : > { %v6932_v59 = vpop.f32.mrb[127].mxu1  ;;  %4053 = vmax.xlane.f32.xlu0 %v4052_v55  ;;  %v9646_v51 = vpop.f32.mrb[126].mxu0 }
 0x3c7   : > { %v3632_v63 = vpop.xlane.xlu0 %3631  ;;  %v6926_v2 = vpop.f32.mrb[127].mxu0  ;;  %v4055_v37 = vsel %vm3599_vm3, %v9646_v51, -inf }
 0x3c8   : > { %v3706_v6 = vsub.f32 %v9420_v4, %v3632_v63  ;;  %v3635_v20 = vpop.xlane.xlu1 %3634  ;;  %4056 = vmax.xlane.f32.xlu1 %v4055_v37  ;;  %v3801_v2 = vsel %vm3599_vm3, %v9650_v19, 0.0  ;;  %v9660_v14 = vpop.eup %7322  ;;  %v3792_v37 = vsel %vm3599_vm3, %v9656_v52, 0.0 }
 0x3c9   : > { %v3707_v3 = vsub.f32 %v9426_v25, %v3635_v20  ;;  %v9666_v17 = vpop.eup %7324 }
 0x3ca   : > { %v3748_v27 = vmul.f32 1.442695, %v3706_v6  ;;  %3799 = vadd.xlane.f32.xlu0 %v3798_v8  ;;  %v9670_v8 = vpop.eup %7326 }
 0x3cb   : > { %v3750_v55 = vmul.f32 1.442695, %v3707_v3  ;;  %v3626_v59 = vpop.xlane.xlu0 %3625  ;;  %v3795_v3 = vsel %vm3599_vm3, %v9660_v14, 0.0 }
 0x3cc   : > { %7332 = vpow2.f32 %v3748_v27  ;;  %v3704_v4 = vsub.f32 %v9422_v53, %v3626_v59  ;;  %v3629_v63 = vpop.xlane.xlu1 %3628  ;;  %3802 = vadd.xlane.f32.xlu1 %v3801_v2  ;;  %v3810_v53 = vsel %vm3599_vm3, %v9666_v17, 0.0  ;;  %v3813_v27 = vsel %vm3599_vm3, %v9670_v8, 0.0 }
 0x3cd   : > { %v3705_v25 = vsub.f32 %v9428_v28, %v3629_v63  ;;  %7334 = vpow2.f32 %v3750_v55  ;;  %v9674_v28 = vpop.eup %7328 }
 0x3ce   : > { %v3744_v6 = vmul.f32 1.442695, %v3704_v4  ;;  %3793 = vadd.xlane.f32.xlu0 %v3792_v37  ;;  %10835 = vst [vmem:[#allocation74_spill] sm:$0xff] %v9674_v28  ;;  %v9678_v55 = vpop.eup %7330  ;;  %v3804_v59 = vsel %vm3599_vm3, %v9674_v28, 0.0 }
 0x3cf   : > { %v3746_v20 = vmul.f32 1.442695, %v3705_v25  ;;  %10836 = vst [vmem:[#allocation75_spill] sm:$0xff] %v9678_v55  ;;  %v3807_v25 = vsel %vm3599_vm3, %v9678_v55, 0.0 }
 0x3d0   : > { %7336 = vpow2.f32 %v3744_v6  ;;  %3796 = vadd.xlane.f32.xlu1 %v3795_v3 }
 0x3d1   : > { %7338 = vpow2.f32 %v3746_v20 }
 0x3d2   : > { %3811 = vadd.xlane.f32.xlu0 %v3810_v53 }
 0x3d4   : > { %3814 = vadd.xlane.f32.xlu1 %v3813_v27 }
 0x3d6   : > { %v9682_v2 = vpop.eup %7332  ;;  %3805 = vadd.xlane.f32.xlu0 %v3804_v59  ;;  %v3644_v4 = vpop.xlane.xlu0 %3643 }
 0x3d7   : > { %v3710_v63 = vsub.f32 %v9436_v23, %v3644_v4  ;;  %v9687_v37 = vpop.eup %7334  ;;  %v3822_v53 = vsel %vm3599_vm3, %v9682_v2, 0.0 }
 0x3d8   : > { %v3647_v6 = vpop.xlane.xlu1 %3646  ;;  %3808 = vadd.xlane.f32.xlu1 %v3807_v25  ;;  %v3825_v4 = vsel %vm3599_vm3, %v9687_v37, 0.0 }
 0x3d9   : > { %v3756_v20 = vmul.f32 1.442695, %v3710_v63  ;;  %v3711_v3 = vsub.f32 %v9442_v32, %v3647_v6 }
 0x3da   : > { %v9692_v27 = vpop.eup %7336  ;;  %3823 = vadd.xlane.f32.xlu0 %v3822_v53  ;;  %v3638_v59 = vpop.xlane.xlu0 %3637 }
 0x3db   : > { %7340 = vpow2.f32 %v3756_v20  ;;  %v3758_v28 = vmul.f32 1.442695, %v3711_v3  ;;  %v3708_v23 = vsub.f32 %v9438_v34, %v3638_v59  ;;  %v9697_v55 = vpop.eup %7338  ;;  %v3816_v6 = vsel %vm3599_vm3, %v9692_v27, 0.0 }
 0x3dc   : > { %v3641_v25 = vpop.xlane.xlu1 %3640  ;;  %3826 = vadd.xlane.f32.xlu1 %v3825_v4  ;;  %v3819_v34 = vsel %vm3599_vm3, %v9697_v55, 0.0 }
 0x3dd   : > { %7342 = vpow2.f32 %v3758_v28  ;;  %v3752_v32 = vmul.f32 1.442695, %v3708_v23  ;;  %v3709_v63 = vsub.f32 %v9444_v24, %v3641_v25 }
 0x3de   : > { %3817 = vadd.xlane.f32.xlu0 %v3816_v6 }
 0x3df   : > { %7344 = vpow2.f32 %v3752_v32  ;;  %v3754_v20 = vmul.f32 1.442695, %v3709_v63 }
 0x3e0   : > { %3820 = vadd.xlane.f32.xlu1 %v3819_v34 }
 0x3e1   : > { %7346 = vpow2.f32 %v3754_v20 }
 0x3e5   : > { %v9704_v3 = vpop.eup %7340 }
 0x3e6   : > { %10837 = vst [vmem:[#allocation76_spill] sm:$0xff] %v9704_v3  ;;  %v3656_v53 = vpop.xlane.xlu0 %3655  ;;  %v3834_v28 = vsel %vm3599_vm3, %v9704_v3, 0.0 }
 0x3e7   : > { %v9708_v59 = vpop.eup %7342  ;;  %v3714_v24 = vsub.f32 %v9452_v33, %v3656_v53  ;;  %3835 = vadd.xlane.f32.xlu0 %v3834_v28 }
 0x3e8   : > { %v3659_v23 = vpop.xlane.xlu1 %3658  ;;  %v3837_v4 = vsel %vm3599_vm3, %v9708_v59, 0.0 }
 0x3e9   : > { %v9713_v25 = vpop.eup %7344  ;;  %v3764_v32 = vmul.f32 1.442695, %v3714_v24  ;;  %v3715_v63 = vsub.f32 %v9458_v43, %v3659_v23  ;;  %3838 = vadd.xlane.f32.xlu1 %v3837_v4 }
 0x3ea   : > { %10838 = vst [vmem:[#allocation77_spill] sm:$0xff] %v9713_v25  ;;  %v3650_v6 = vpop.xlane.xlu0 %3649  ;;  %v3828_v20 = vsel %vm3599_vm3, %v9713_v25, 0.0 }
 0x3eb   : > { %v9718_v34 = vpop.eup %7346  ;;  %7348 = vpow2.f32 %v3764_v32  ;;  %v3766_v3 = vmul.f32 1.442695, %v3715_v63  ;;  %v3712_v33 = vsub.f32 %v9454_v42, %v3650_v6  ;;  %3829 = vadd.xlane.f32.xlu0 %v3828_v20 }
 0x3ec   : > { %v3653_v53 = vpop.xlane.xlu1 %3652  ;;  %v3831_v28 = vsel %vm3599_vm3, %v9718_v34, 0.0 }
 0x3ed   : > { %7350 = vpow2.f32 %v3766_v3  ;;  %v3760_v24 = vmul.f32 1.442695, %v3712_v33  ;;  %v3713_v43 = vsub.f32 %v9460_v31, %v3653_v53  ;;  %3832 = vadd.xlane.f32.xlu1 %v3831_v28 }
 0x3ef   : > { %7352 = vpow2.f32 %v3760_v24  ;;  %v3762_v23 = vmul.f32 1.442695, %v3713_v43 }
 0x3f1   : > { %7354 = vpow2.f32 %v3762_v23 }
 0x3f5   : > { %v9724_v4 = vpop.eup %7348 }
 0x3f6   : > { %v3668_v25 = vpop.xlane.xlu0 %3667  ;;  %v3846_v32 = vsel %vm3599_vm3, %v9724_v4, 0.0 }
 0x3f7   : > { %v9728_v42 = vpop.eup %7350  ;;  %3847 = vadd.xlane.f32.xlu0 %v3846_v32  ;;  %v3718_v63 = vsub.f32 %v9468_v62, %v3668_v25 }
 0x3f8   : > { %10839 = vst [vmem:[#allocation78_spill] sm:$0xff] %v9728_v42  ;;  %v3671_v6 = vpop.xlane.xlu1 %3670  ;;  %v3849_v3 = vsel %vm3599_vm3, %v9728_v42, 0.0 }
 0x3f9   : > { %v9733_v31 = vpop.eup %7352  ;;  %3850 = vadd.xlane.f32.xlu1 %v3849_v3  ;;  %v3719_v28 = vsub.f32 %v9474_v26, %v3671_v6  ;;  %v3772_v43 = vmul.f32 1.442695, %v3718_v63  ;;  %v4058_v3 = vsel %vm3599_vm3, %v9636_v15, -inf  ;;  %v4061_v26 = vsel %vm3599_vm3, %v9640_v40, -inf }
 0x3fa   : > { %10840 = vst [vmem:[#allocation79_spill] sm:$0xff] %v9733_v31  ;;  %v3662_v20 = vpop.xlane.xlu0 %3661  ;;  %v3840_v33 = vsel %vm3599_vm3, %v9733_v31, 0.0 }
 0x3fb   : > { %v9737_v53 = vpop.eup %7354  ;;  %v3716_v24 = vsub.f32 %v9470_v30, %v3662_v20  ;;  %3841 = vadd.xlane.f32.xlu0 %v3840_v33  ;;  %v3774_v31 = vmul.f32 1.442695, %v3719_v28 }
 0x3fc   : > { %v3665_v62 = vpop.xlane.xlu1 %3664  ;;  %v3843_v25 = vsel %vm3599_vm3, %v9737_v53, 0.0 }
 0x3fd   : > { %v3768_v23 = vmul.f32 1.442695, %v3716_v24  ;;  %v3717_v32 = vsub.f32 %v9476_v12, %v3665_v62  ;;  %3844 = vadd.xlane.f32.xlu1 %v3843_v25 }
 0x3ff   : > { %7356 = vpow2.f32 %v3768_v23  ;;  %v3770_v42 = vmul.f32 1.442695, %v3717_v32  ;;  %4059 = vmax.xlane.f32.xlu0 %v4058_v3 }
 0x400   : > { %7358 = vpow2.f32 %v3772_v43 }
 0x401   : > { %7360 = vpow2.f32 %v3770_v42  ;;  %4062 = vmax.xlane.f32.xlu1 %v4061_v26 }
 0x402   : > { %7362 = vpow2.f32 %v3774_v31 }
 0x406   : > { %v3680_v30 = vpop.xlane.xlu0 %3679 }
 0x407   : > { %v3722_v63 = vsub.f32 %v9484_v9, %v3680_v30 }
 0x408   : > { %v3683_v6 = vpop.xlane.xlu1 %3682 }
 0x409   : > { %v9749_v12 = vpop.eup %7356  ;;  %v3723_v43 = vsub.f32 %v9490_v50, %v3683_v6  ;;  %v3780_v31 = vmul.f32 1.442695, %v3722_v63 }
 0x40a   : > { %v9751_v20 = vpop.eup %7358  ;;  %v3674_v33 = vpop.xlane.xlu0 %3673  ;;  %v3852_v28 = vsel %vm3599_vm3, %v9749_v12, 0.0 }
 0x40b   : > { %v9755_v24 = vpop.eup %7360  ;;  %v3720_v42 = vsub.f32 %v9486_v48, %v3674_v33  ;;  %3853 = vadd.xlane.f32.xlu0 %v3852_v28  ;;  %v3858_v3 = vsel %vm3599_vm3, %v9751_v20, 0.0  ;;  %v3782_v26 = vmul.f32 1.442695, %v3723_v43 }
 0x40c   : > { %v3677_v62 = vpop.xlane.xlu1 %3676  ;;  %v3855_v9 = vsel %vm3599_vm3, %v9755_v24, 0.0  ;;  %v9761_v25 = vpop.eup %7362 }
 0x40d   : > { %v3776_v23 = vmul.f32 1.442695, %v3720_v42  ;;  %v3721_v32 = vsub.f32 %v9492_v7, %v3677_v62  ;;  %3856 = vadd.xlane.f32.xlu1 %v3855_v9  ;;  %v3861_v48 = vsel %vm3599_vm3, %v9761_v25, 0.0 }
 0x40f   : > { %7364 = vpow2.f32 %v3776_v23  ;;  %v3778_v50 = vmul.f32 1.442695, %v3721_v32  ;;  %3859 = vadd.xlane.f32.xlu0 %v3858_v3 }
 0x410   : > { %7366 = vpow2.f32 %v3780_v31 }
 0x411   : > { %7368 = vpow2.f32 %v3778_v50  ;;  %3862 = vadd.xlane.f32.xlu1 %v3861_v48 }
 0x412   : > { %v3692_v30 = vpop.xlane.xlu0 %3691  ;;  %7370 = vpow2.f32 %v3782_v26 }
 0x413   : > { %v3726_v63 = vsub.f32 %v9500_v5, %v3692_v30 }
 0x414   : > { %v3695_v6 = vpop.xlane.xlu1 %3694 }
 0x415   : > { %v3727_v33 = vsub.f32 %v9506_v61, %v3695_v6  ;;  %v3788_v43 = vmul.f32 1.442695, %v3726_v63 }
 0x416   : > { %v3686_v7 = vpop.xlane.xlu0 %3685 }
 0x417   : > { %v3724_v28 = vsub.f32 %v9502_v60, %v3686_v7  ;;  %v3790_v26 = vmul.f32 1.442695, %v3727_v33 }
 0x418   : > { %v3689_v42 = vpop.xlane.xlu1 %3688 }
 0x419   : > { %v9771_v62 = vpop.eup %7364  ;;  %v3784_v31 = vmul.f32 1.442695, %v3724_v28  ;;  %v3725_v9 = vsub.f32 %v9508_v46, %v3689_v42 }
 0x41a   : > { %v9774_v23 = vpop.eup %7366  ;;  %v3976_v32 = vpop.xlane.xlu0 %3975  ;;  %v3864_v3 = vsel %vm3599_vm3, %v9771_v62, 0.0 }
 0x41b   : > { %v9778_v5 = vpop.eup %7368  ;;  %7372 = vpow2.f32 %v3784_v31  ;;  %v3786_v61 = vmul.f32 1.442695, %v3725_v9  ;;  %3865 = vadd.xlane.f32.xlu0 %v3864_v3  ;;  %v4066_v60 = vsub.f32 %v9516_v47, %v3976_v32  ;;  %v3870_v63 = vsel %vm3599_vm3, %v9774_v23, 0.0 }
 0x41c   : > { %7374 = vpow2.f32 %v3788_v43  ;;  %v3979_v50 = vpop.xlane.xlu1 %3978  ;;  %v3867_v48 = vsel %vm3599_vm3, %v9778_v5, 0.0  ;;  %v9783_v46 = vpop.eup %7370 }
 0x41d   : > { %7376 = vpow2.f32 %v3786_v61  ;;  %3868 = vadd.xlane.f32.xlu1 %v3867_v48  ;;  %v4067_v6 = vsub.f32 %v9522_v41, %v3979_v50  ;;  %v4100_v33 = vmul.f32 1.442695, %v4066_v60  ;;  %v3873_v28 = vsel %vm3599_vm3, %v9783_v46, 0.0 }
 0x41e   : > { %v3970_v30 = vpop.xlane.xlu0 %3969  ;;  %7378 = vpow2.f32 %v3790_v26 }
 0x41f   : > { %v4064_v7 = vsub.f32 %v9518_v11, %v3970_v30  ;;  %3871 = vadd.xlane.f32.xlu0 %v3870_v63  ;;  %v4102_v9 = vmul.f32 1.442695, %v4067_v6 }
 0x420   : > { %v3973_v47 = vpop.xlane.xlu1 %3972 }
 0x421   : > { %v4096_v43 = vmul.f32 1.442695, %v4064_v7  ;;  %v4065_v42 = vsub.f32 %v9524_v39, %v3973_v47  ;;  %3874 = vadd.xlane.f32.xlu1 %v3873_v28 }
 0x422   : > { %v3988_v31 = vpop.xlane.xlu0 %3987 }
 0x423   : > { %7380 = vpow2.f32 %v4096_v43  ;;  %v4098_v32 = vmul.f32 1.442695, %v4065_v42  ;;  %v4070_v3 = vsub.f32 %v9532_v29, %v3988_v31 }
 0x424   : > { %7382 = vpow2.f32 %v4100_v33  ;;  %v3991_v41 = vpop.xlane.xlu1 %3990 }
 0x425   : > { %v9793_v26 = vpop.eup %7372  ;;  %7384 = vpow2.f32 %v4098_v32  ;;  %v4071_v39 = vsub.f32 %v9538_v18, %v3991_v41  ;;  %v4108_v30 = vmul.f32 1.442695, %v4070_v3 }
 0x426   : > { %v9795_v11 = vpop.eup %7374  ;;  %v3982_v61 = vpop.xlane.xlu0 %3981  ;;  %v3876_v60 = vsel %vm3599_vm3, %v9793_v26, 0.0  ;;  %7386 = vpow2.f32 %v4102_v9 }
 0x427   : > { %v9799_v50 = vpop.eup %7376  ;;  %v4068_v48 = vsub.f32 %v9534_v49, %v3982_v61  ;;  %3877 = vadd.xlane.f32.xlu0 %v3876_v60  ;;  %v3882_v28 = vsel %vm3599_vm3, %v9795_v11, 0.0  ;;  %v4110_v43 = vmul.f32 1.442695, %v4071_v39 }
 0x428   : > { %v3985_v29 = vpop.xlane.xlu1 %3984  ;;  %v3879_v63 = vsel %vm3599_vm3, %v9799_v50, 0.0  ;;  %v9805_v6 = vpop.eup %7378 }
 0x429   : > { %v4104_v7 = vmul.f32 1.442695, %v4068_v48  ;;  %v4069_v33 = vsub.f32 %v9540_v58, %v3985_v29  ;;  %3880 = vadd.xlane.f32.xlu1 %v3879_v63  ;;  %v3885_v31 = vsel %vm3599_vm3, %v9805_v6, 0.0 }
 0x42a   : > { %v4000_v47 = vpop.xlane.xlu0 %3999 }
 0x42b   : > { %7388 = vpow2.f32 %v4104_v7  ;;  %v4106_v18 = vmul.f32 1.442695, %v4069_v33  ;;  %3883 = vadd.xlane.f32.xlu0 %v3882_v28  ;;  %v4074_v49 = vsub.f32 %v9548_v16, %v4000_v47 }
 0x42c   : > { %7390 = vpow2.f32 %v4108_v30  ;;  %v4003_v42 = vpop.xlane.xlu1 %4002 }
 0x42d   : > { %v9813_v9 = vpop.eup %7380  ;;  %7392 = vpow2.f32 %v4106_v18  ;;  %3886 = vadd.xlane.f32.xlu1 %v3885_v31  ;;  %v4075_v61 = vsub.f32 %v9554_v44, %v4003_v42  ;;  %v4116_v60 = vmul.f32 1.442695, %v4074_v49 }
 0x42e   : > { %v9815_v58 = vpop.eup %7382  ;;  %v3994_v32 = vpop.xlane.xlu0 %3993  ;;  %v4160_v3 = vsel %vm3599_vm3, %v9813_v9, 0.0  ;;  %7394 = vpow2.f32 %v4110_v43 }
 0x42f   : > { %v9819_v41 = vpop.eup %7384  ;;  %v4072_v16 = vsub.f32 %v9550_v56, %v3994_v32  ;;  %4161 = vadd.xlane.f32.xlu0 %v4160_v3  ;;  %v4166_v33 = vsel %vm3599_vm3, %v9815_v58, 0.0  ;;  %v4118_v47 = vmul.f32 1.442695, %v4075_v61 }
 0x430   : > { %v3997_v39 = vpop.xlane.xlu1 %3996  ;;  %v4163_v48 = vsel %vm3599_vm3, %v9819_v41, 0.0  ;;  %v9825_v30 = vpop.eup %7386 }
 0x431   : > { %v4112_v29 = vmul.f32 1.442695, %v4072_v16  ;;  %v4073_v63 = vsub.f32 %v9556_v0, %v3997_v39  ;;  %4164 = vadd.xlane.f32.xlu1 %v4163_v48  ;;  %v4169_v43 = vsel %vm3599_vm3, %v9825_v30, 0.0  ;;  %v10841_v48 = vld [vmem:[#allocation67_spill] sm:$0xff] }
 0x432   : > { %v4012_v7 = vpop.xlane.xlu0 %4011 }
 0x433   : > { %7396 = vpow2.f32 %v4112_v29  ;;  %v4114_v44 = vmul.f32 1.442695, %v4073_v63  ;;  %4167 = vadd.xlane.f32.xlu0 %v4166_v33  ;;  %v4078_v56 = vsub.f32 %v9564_v10, %v4012_v7 }
 0x434   : > { %7398 = vpow2.f32 %v4116_v60  ;;  %v4015_v28 = vpop.xlane.xlu1 %4014 }
 0x435   : > { %v9833_v18 = vpop.eup %7388  ;;  %7400 = vpow2.f32 %v4114_v44  ;;  %4170 = vadd.xlane.f32.xlu1 %v4169_v43  ;;  %v4079_v32 = vsub.f32 %v9570_v21, %v4015_v28  ;;  %v4124_v3 = vmul.f32 1.442695, %v4078_v56 }
 0x436   : > { %v9835_v0 = vpop.eup %7390  ;;  %v4006_v49 = vpop.xlane.xlu0 %4005  ;;  %v4172_v42 = vsel %vm3599_vm3, %v9833_v18, 0.0  ;;  %7402 = vpow2.f32 %v4118_v47 }
 0x437   : > { %v9839_v31 = vpop.eup %7392  ;;  %v4076_v10 = vsub.f32 %v9566_v22, %v4006_v49  ;;  %4173 = vadd.xlane.f32.xlu0 %v4172_v42  ;;  %v4178_v7 = vsel %vm3599_vm3, %v9835_v0, 0.0  ;;  %v4126_v33 = vmul.f32 1.442695, %v4079_v32  ;;  %v10842_v22 = vld [vmem:[#allocation68_spill] sm:$0xff] }
 0x438   : > { %v4009_v61 = vpop.xlane.xlu1 %4008  ;;  %v4175_v16 = vsel %vm3599_vm3, %v9839_v31, 0.0  ;;  %v9845_v60 = vpop.eup %7394 }
 0x439   : > { %v4120_v39 = vmul.f32 1.442695, %v4076_v10  ;;  %v4077_v29 = vsub.f32 %v10841_v48, %v4009_v61  ;;  %4176 = vadd.xlane.f32.xlu1 %v4175_v16  ;;  %v4181_v56 = vsel %vm3599_vm3, %v9845_v60, 0.0  ;;  %v10844_v10 = vld [vmem:[#allocation70_spill] sm:$0xff]  ;;  %v10845_v61 = vld [vmem:[#allocation69_spill] sm:$0xff] }
 0x43a   : > { %v4024_v63 = vpop.xlane.xlu0 %4023 }
 0x43b   : > { %7404 = vpow2.f32 %v4120_v39  ;;  %v4122_v21 = vmul.f32 1.442695, %v4077_v29  ;;  %4179 = vadd.xlane.f32.xlu0 %v4178_v7  ;;  %v4082_v47 = vsub.f32 %v10842_v22, %v4024_v63 }
 0x43c   : > { %7406 = vpow2.f32 %v4124_v3  ;;  %v4027_v44 = vpop.xlane.xlu1 %4026 }
 0x43d   : > { %v9853_v28 = vpop.eup %7396  ;;  %7408 = vpow2.f32 %v4122_v21  ;;  %4182 = vadd.xlane.f32.xlu1 %v4181_v56  ;;  %v4083_v3 = vsub.f32 %v10844_v10, %v4027_v44  ;;  %v4132_v39 = vmul.f32 1.442695, %v4082_v47  ;;  %v10846_v21 = vld [vmem:[#allocation71_spill] sm:$0xff]  ;;  %v10847_v47 = vld [vmem:[#allocation72_spill] sm:$0xff] }
 0x43e   : > { %10843 = vst [vmem:[#allocation67_spill] sm:$0xff] %v9853_v28  ;;  %v9855_v43 = vpop.eup %7398  ;;  %v4018_v49 = vpop.xlane.xlu0 %4017  ;;  %v4184_v42 = vsel %vm3599_vm3, %v9853_v28, 0.0  ;;  %7410 = vpow2.f32 %v4126_v33 }
 0x43f   : > { %v9859_v32 = vpop.eup %7400  ;;  %v4080_v16 = vsub.f32 %v10845_v61, %v4018_v49  ;;  %4185 = vadd.xlane.f32.xlu0 %v4184_v42  ;;  %v4190_v33 = vsel %vm3599_vm3, %v9855_v43, 0.0  ;;  %v4134_v28 = vmul.f32 1.442695, %v4083_v3 }
 0x440   : > { %v4021_v48 = vpop.xlane.xlu1 %4020  ;;  %v4187_v29 = vsel %vm3599_vm3, %v9859_v32, 0.0  ;;  %v9865_v63 = vpop.eup %7402 }
 0x441   : > { %v4128_v7 = vmul.f32 1.442695, %v4080_v16  ;;  %v4081_v22 = vsub.f32 %v10846_v21, %v4021_v48  ;;  %4188 = vadd.xlane.f32.xlu1 %v4187_v29  ;;  %v4193_v10 = vsel %vm3599_vm3, %v9865_v63, 0.0 }
 0x442   : > { %v4036_v56 = vpop.xlane.xlu0 %4035 }
 0x443   : > { %7412 = vpow2.f32 %v4128_v7  ;;  %v4130_v44 = vmul.f32 1.442695, %v4081_v22  ;;  %4191 = vadd.xlane.f32.xlu0 %v4190_v33  ;;  %v4086_v49 = vsub.f32 %v10847_v47, %v4036_v56 }
 0x444   : > { %7414 = vpow2.f32 %v4132_v39  ;;  %v4039_v42 = vpop.xlane.xlu1 %4038 }
 0x445   : > { %v9873_v61 = vpop.eup %7404  ;;  %7416 = vpow2.f32 %v4130_v44  ;;  %4194 = vadd.xlane.f32.xlu1 %v4193_v10  ;;  %v4087_v39 = vsub.f32 %v9603_v13, %v4039_v42  ;;  %v4140_v21 = vmul.f32 1.442695, %v4086_v49 }
 0x446   : > { %10848 = vst [vmem:[#allocation68_spill] sm:$0xff] %v9873_v61  ;;  %v9875_v16 = vpop.eup %7406  ;;  %v4030_v48 = vpop.xlane.xlu0 %4029  ;;  %v4196_v3 = vsel %vm3599_vm3, %v9873_v61, 0.0  ;;  %7418 = vpow2.f32 %v4134_v28 }
 0x447   : > { %v9879_v29 = vpop.eup %7408  ;;  %v4084_v7 = vsub.f32 %v9599_v38, %v4030_v48  ;;  %4197 = vadd.xlane.f32.xlu0 %v4196_v3  ;;  %v4202_v28 = vsel %vm3599_vm3, %v9875_v16, 0.0  ;;  %v4142_v61 = vmul.f32 1.442695, %v4087_v39  ;;  %v10849_v38 = vld [vmem:[#allocation73_spill] sm:$0xff] }
 0x448   : > { %v4033_v22 = vpop.xlane.xlu1 %4032  ;;  %v4199_v56 = vsel %vm3599_vm3, %v9879_v29, 0.0  ;;  %v9885_v33 = vpop.eup %7410 }
 0x449   : > { %v4136_v44 = vmul.f32 1.442695, %v4084_v7  ;;  %v4085_v47 = vsub.f32 %v9606_v35, %v4033_v22  ;;  %4200 = vadd.xlane.f32.xlu1 %v4199_v56  ;;  %v4205_v48 = vsel %vm3599_vm3, %v9885_v33, 0.0 }
 0x44a   : > { %v4048_v10 = vpop.xlane.xlu0 %4047 }
 0x44b   : > { %7420 = vpow2.f32 %v4136_v44  ;;  %v4138_v13 = vmul.f32 1.442695, %v4085_v47  ;;  %4203 = vadd.xlane.f32.xlu0 %v4202_v28  ;;  %v4090_v49 = vsub.f32 %v10849_v38, %v4048_v10 }
 0x44c   : > { %7422 = vpow2.f32 %v4140_v21  ;;  %v4051_v42 = vpop.xlane.xlu1 %4050 }
 0x44d   : > { %v9893_v3 = vpop.eup %7412  ;;  %7424 = vpow2.f32 %v4138_v13  ;;  %4206 = vadd.xlane.f32.xlu1 %v4205_v48  ;;  %v4091_v21 = vsub.f32 %v9623_v57, %v4051_v42  ;;  %v4148_v44 = vmul.f32 1.442695, %v4090_v49 }
 0x44e   : > { %v9895_v35 = vpop.eup %7414  ;;  %v4042_v7 = vpop.xlane.xlu0 %4041  ;;  %v4208_v39 = vsel %vm3599_vm3, %v9893_v3, 0.0  ;;  %7426 = vpow2.f32 %v4142_v61 }
 0x44f   : > { %v9899_v22 = vpop.eup %7416  ;;  %v4088_v56 = vsub.f32 %v9621_v1, %v4042_v7  ;;  %4209 = vadd.xlane.f32.xlu0 %v4208_v39  ;;  %v4214_v48 = vsel %vm3599_vm3, %v9895_v35, 0.0  ;;  %v4150_v61 = vmul.f32 1.442695, %v4091_v21 }
 0x450   : > { %v4045_v47 = vpop.xlane.xlu1 %4044  ;;  %v4211_v10 = vsel %vm3599_vm3, %v9899_v22, 0.0  ;;  %v9905_v28 = vpop.eup %7418 }
 0x451   : > { %v4144_v13 = vmul.f32 1.442695, %v4088_v56  ;;  %v4089_v38 = vsub.f32 %v9628_v36, %v4045_v47  ;;  %4212 = vadd.xlane.f32.xlu1 %v4211_v10  ;;  %v4217_v42 = vsel %vm3599_vm3, %v9905_v28, 0.0 }
 0x453   : > { %7428 = vpow2.f32 %v4144_v13  ;;  %v4146_v57 = vmul.f32 1.442695, %v4089_v38  ;;  %4215 = vadd.xlane.f32.xlu0 %v4214_v48  ;;  %v4054_v1 = vpop.xlane.xlu0 %4053 }
 0x454   : > { %7430 = vpow2.f32 %v4148_v44  ;;  %v4092_v49 = vsub.f32 %v9638_v45, %v4054_v1 }
 0x455   : > { %v9913_v7 = vpop.eup %7420  ;;  %7432 = vpow2.f32 %v4146_v57  ;;  %4218 = vadd.xlane.f32.xlu1 %v4217_v42  ;;  %v4057_v36 = vpop.xlane.xlu1 %4056 }
 0x456   : > { %v9915_v39 = vpop.eup %7422  ;;  %v4152_v56 = vmul.f32 1.442695, %v4092_v49  ;;  %v4093_v21 = vsub.f32 %v9646_v51, %v4057_v36  ;;  %v4220_v47 = vsel %vm3599_vm3, %v9913_v7, 0.0  ;;  %7434 = vpow2.f32 %v4150_v61 }
 0x457   : > { %v9920_v10 = vpop.eup %7424  ;;  %4221 = vadd.xlane.f32.xlu0 %v4220_v47  ;;  %v3800_v45 = vpop.xlane.xlu0 %3799  ;;  %v4226_v51 = vsel %vm3599_vm3, %v9915_v39, 0.0 }
 0x458   : > { %7436 = vpow2.f32 %v4152_v56  ;;  %v4154_v44 = vmul.f32 1.442695, %v4093_v21  ;;  %v4223_v13 = vsel %vm3599_vm3, %v9920_v10, 0.0  ;;  %v9924_v38 = vpop.eup %7426 }
 0x459   : > { %10850 = vst [vmem:[#allocation70_spill] sm:$0xff] %v9924_v38  ;;  %7438 = vrcp.f32 %v3800_v45  ;;  %4224 = vadd.xlane.f32.xlu1 %v4223_v13  ;;  %v3803_v48 = vpop.xlane.xlu1 %3802  ;;  %v4229_v61 = vsel %vm3599_vm3, %v9924_v38, 0.0 }
 0x45a   : > { %7440 = vpow2.f32 %v4154_v44 }
 0x45b   : > { %7442 = vrcp.f32 %v3803_v48  ;;  %4227 = vadd.xlane.f32.xlu0 %v4226_v51  ;;  %v3794_v57 = vpop.xlane.xlu0 %3793 }
 0x45c   : > { %7444 = vrcp.f32 %v3794_v57 }
 0x45d   : > { %v9930_v1 = vpop.eup %7428  ;;  %4230 = vadd.xlane.f32.xlu1 %v4229_v61  ;;  %v3797_v49 = vpop.xlane.xlu1 %3796 }
 0x45e   : > { %10851 = vst [vmem:[#allocation69_spill] sm:$0xff] %v9930_v1  ;;  %v9932_v42 = vpop.eup %7430  ;;  %7446 = vrcp.f32 %v3797_v49  ;;  %v4232_v36 = vsel %vm3599_vm3, %v9930_v1, 0.0 }
 0x45f   : > { %10852 = vst [vmem:[#allocation71_spill] sm:$0xff] %v9932_v42  ;;  %v9936_v56 = vpop.eup %7432  ;;  %4233 = vadd.xlane.f32.xlu0 %v4232_v36  ;;  %v3812_v21 = vpop.xlane.xlu0 %3811  ;;  %v4238_v48 = vsel %vm3599_vm3, %v9932_v42, 0.0 }
 0x460   : > { %10853 = vst [vmem:[#allocation72_spill] sm:$0xff] %v9936_v56  ;;  %7448 = vrcp.f32 %v3812_v21  ;;  %v4235_v47 = vsel %vm3599_vm3, %v9936_v56, 0.0  ;;  %v9940_v45 = vpop.eup %7434 }
 0x461   : > { %10854 = vst [vmem:[#allocation73_spill] sm:$0xff] %v9940_v45  ;;  %4236 = vadd.xlane.f32.xlu1 %v4235_v47  ;;  %v3815_v44 = vpop.xlane.xlu1 %3814  ;;  %v4241_v49 = vsel %vm3599_vm3, %v9940_v45, 0.0 }
 0x462   : > { %v9942_v13 = vpop.eup %7436  ;;  %7450 = vrcp.f32 %v3815_v44 }
 0x463   : > { %10855 = vst [vmem:[#allocation80_spill] sm:$0xff] %v9942_v13  ;;  %v7439_v51 = vpop.eup %7438  ;;  %4239 = vadd.xlane.f32.xlu0 %v4238_v48  ;;  %v3806_v57 = vpop.xlane.xlu0 %3805  ;;  %v4244_v42 = vsel %vm3599_vm3, %v9942_v13, 0.0  ;;  %v10859_v13 = vmov 0.0  }
 0x464   : > { %v9946_v61 = vpop.eup %7440  ;;  %7452 = vrcp.f32 %v3806_v57  ;;  %v3922_v56 = vmul.f32 %v7439_v51, %v9644_v54 }
 0x465   : > { %v7443_v36 = vpop.eup %7442  ;;  %4242 = vadd.xlane.f32.xlu1 %v4241_v49  ;;  %v3809_v21 = vpop.xlane.xlu1 %3808  ;;  %v4247_v57 = vsel %vm3599_vm3, %v9946_v61, 0.0 }
 0x466   : > { %v7445_v47 = vpop.eup %7444  ;;  %v3923_v44 = vmul.f32 %v7443_v36, %v9650_v19  ;;  %7454 = vrcp.f32 %v3809_v21  ;;  %v10856_v19 = vld [vmem:[#allocation6_spill] sm:$0xff]  ;;  %v10857_v36 = vld [vmem:[#allocation21_spill] sm:$0xff] }
 0x467   : > { %4245 = vadd.xlane.f32.xlu0 %v4244_v42  ;;  %v3824_v48 = vpop.xlane.xlu0 %3823  ;;  %v3920_v49 = vmul.f32 %v7445_v47, %v9656_v52  ;;  %v10858_v42 = vpack.c.bf16 %v10856_v19, %v10857_v36  ;;  %v10860_v47 = vld [vmem:[#allocation8_spill] sm:$0xff]  ;;  %v10865_v36 = vld [vmem:[#allocation14_spill] sm:$0xff] }
 0x468   : > { %v7447_v1 = vpop.eup %7446  ;;  %7456 = vrcp.f32 %v3824_v48  ;;  %v3953_v45 = vpack.c.bf16 %v3923_v44, %v3922_v56  ;;  %v10861_v44 = vld [vmem:[#allocation23_spill] sm:$0xff] }
 0x469   : > { %v3921_v38 = vmul.f32 %v7447_v1, %v9660_v14  ;;  %4248 = vadd.xlane.f32.xlu1 %v4247_v57  ;;  %v3827_v54 = vpop.xlane.xlu1 %3826  ;;  %v10862_v57 = vpack.c.bf16 %v10860_v47, %v10861_v44  ;;  %v10868_v47 = vld [vmem:[#allocation16_spill] sm:$0xff] }
 0x46a   : > { %v7449_v51 = vpop.eup %7448  ;;  %7458 = vrcp.f32 %v3827_v54  ;;  %6942 = vmatmul.mubr.msk.bf16.vlgmr.msra.gmra.mrb[128].mxu1 %vm3599_vm3, %v3953_v45  ;;  %v10863_v54 = vld [vmem:[#allocation74_spill] sm:$0xff]  ;;  %v10869_v44 = vld [vmem:[#allocation12_spill] sm:$0xff] }
 0x46b   : > { %6952 = vmatpush3.bf16.msra.mxu1 %v10858_v42  ;;  %v3818_v21 = vpop.xlane.xlu0 %3817  ;;  %v3952_v48 = vpack.c.bf16 %v3921_v38, %v3920_v49  ;;  %6953 = vmatprep.mubr.msk.bf16.mxu1 %vm7718_vm2, %v10859_v13  ;;  %v3926_v52 = vmul.f32 %v7449_v51, %v9666_v17  ;;  %v10864_v51 = vld [vmem:[#allocation75_spill] sm:$0xff]  ;;  %v10866_v42 = vld [vmem:[#allocation10_spill] sm:$0xff] }
 0x46c   : > { %v7451_v56 = vpop.eup %7450  ;;  %7460 = vrcp.f32 %v3818_v21  ;;  %6963 = vmatprep.subr.bf16.mxu1 %v10859_v13  ;;  %v10867_v21 = vpack.c.bf16 %v10865_v36, %v10866_v42 }
 0x46d   : > { %v3927_v14 = vmul.f32 %v7451_v56, %v9670_v8  ;;  %v3821_v1 = vpop.xlane.xlu1 %3820  ;;  %6936 = vmatmul.mubr.msk.bf16.vlgmr.msra.gmra.mrb[128].mxu0 %vm3599_vm3, %v3952_v48 }
 0x46e   : > { %v7453_v45 = vpop.eup %7452  ;;  %7462 = vrcp.f32 %v3821_v1  ;;  %6946 = vmatpush3.bf16.msra.mxu0 %v10862_v57  ;;  %6947 = vmatprep.mubr.msk.bf16.mxu0 %vm7718_vm2, %v10859_v13  ;;  %v10870_v57 = vpack.c.bf16 %v10868_v47, %v10869_v44 }
 0x46f   : > { %v3955_v38 = vpack.c.bf16 %v3927_v14, %v3926_v52  ;;  %6957 = vmatprep.subr.bf16.mxu0 %v10859_v13  ;;  %v3924_v17 = vmul.f32 %v7453_v45, %v10863_v54 }
 0x470   : > { %v7455_v49 = vpop.eup %7454 }
 0x471   : > { %v3925_v8 = vmul.f32 %v7455_v49, %v10864_v51 }
 0x472   : > { %v7457_v19 = vpop.eup %7456  ;;  %6954 = vmatmul.mubr.msk.bf16.vlgmr.msra.gmra.mrb[132].mxu1 %vm3599_vm3, %v3955_v38 }
 0x473   : > { %6964 = vmatpush3.bf16.msra.mxu1 %v10867_v21  ;;  %v3954_v48 = vpack.c.bf16 %v3925_v8, %v3924_v17  ;;  %6965 = vmatprep.mubr.msk.bf16.mxu1 %vm7718_vm2, %v10859_v13  ;;  %v3930_v14 = vmul.f32 %v7457_v19, %v9682_v2  ;;  %v10871_v8 = vld [vmem:[#allocation28_spill] sm:$0xff]  ;;  %v10872_v19 = vld [vmem:[#allocation18_spill] sm:$0xff] }
 0x474   : > { %v7459_v56 = vpop.eup %7458  ;;  %v3836_v52 = vpop.xlane.xlu0 %3835  ;;  %6975 = vmatprep.subr.bf16.mxu1 %v10859_v13  ;;  %v10873_v36 = vpack.c.bf16 %v10871_v8, %v10872_v19  ;;  %v10875_v21 = vld [vmem:[#allocation26_spill] sm:$0xff] }
 0x475   : > { %v3931_v1 = vmul.f32 %v7459_v56, %v9687_v37  ;;  %7464 = vrcp.f32 %v3836_v52  ;;  %6948 = vmatmul.mubr.msk.bf16.vlgmr.msra.gmra.mrb[132].mxu0 %vm3599_vm3, %v3954_v48  ;;  %v10877_v52 = vld [vmem:[#allocation76_spill] sm:$0xff] }
 0x476   : > { %v7461_v45 = vpop.eup %7460  ;;  %6958 = vmatpush3.bf16.msra.mxu0 %v10870_v57  ;;  %v3839_v38 = vpop.xlane.xlu1 %3838  ;;  %6959 = vmatprep.mubr.msk.bf16.mxu0 %vm7718_vm2, %v10859_v13 }
 0x477   : > { %7466 = vrcp.f32 %v3839_v38  ;;  %v3957_v49 = vpack.c.bf16 %v3931_v1, %v3930_v14  ;;  %6969 = vmatprep.subr.bf16.mxu0 %v10859_v13  ;;  %v3928_v37 = vmul.f32 %v7461_v45, %v9692_v27  ;;  %v10874_v27 = vld [vmem:[#allocation30_spill] sm:$0xff]  ;;  %v10878_v38 = vld [vmem:[#allocation77_spill] sm:$0xff] }
 0x478   : > { %v7463_v54 = vpop.eup %7462  ;;  %v3830_v2 = vpop.xlane.xlu0 %3829 }
 0x479   : > { %v3929_v17 = vmul.f32 %v7463_v54, %v9697_v55  ;;  %7468 = vrcp.f32 %v3830_v2  ;;  %v10876_v55 = vpack.c.bf16 %v10874_v27, %v10875_v21 }
 0x47a   : > { %6966 = vmatmul.mubr.msk.bf16.vlgmr.msra.gmra.mrb[136].mxu1 %vm3599_vm3, %v3957_v49  ;;  %v3833_v51 = vpop.xlane.xlu1 %3832 }
 0x47b   : > { %6976 = vmatpush3.bf16.msra.mxu1 %v10873_v36  ;;  %7470 = vrcp.f32 %v3833_v51  ;;  %v3956_v42 = vpack.c.bf16 %v3929_v17, %v3928_v37  ;;  %6977 = vmatprep.mubr.msk.bf16.mxu1 %vm7718_vm2, %v10859_v13  ;;  %v10879_v37 = vld [vmem:[#allocation36_spill] sm:$0xff]  ;;  %v10883_v36 = vld [vmem:[#allocation34_spill] sm:$0xff] }
 0x47c   : > { %6987 = vmatprep.subr.bf16.mxu1 %v10859_v13  ;;  %v10880_v17 = vld [vmem:[#allocation32_spill] sm:$0xff] }
 0x47d   : > { %6960 = vmatmul.mubr.msk.bf16.vlgmr.msra.gmra.mrb[136].mxu0 %vm3599_vm3, %v3956_v42  ;;  %v10881_v51 = vpack.c.bf16 %v10879_v37, %v10880_v17  ;;  %v10887_v37 = vld [vmem:[#allocation44_spill] sm:$0xff] }
 0x47e   : > { %6970 = vmatpush3.bf16.msra.mxu0 %v10876_v55  ;;  %6971 = vmatprep.mubr.msk.bf16.mxu0 %vm7718_vm2, %v10859_v13  ;;  %v10888_v17 = vld [vmem:[#allocation40_spill] sm:$0xff] }
 0x47f   : > { %v7465_v48 = vpop.eup %7464  ;;  %6981 = vmatprep.subr.bf16.mxu0 %v10859_v13 }
 0x480   : > { %v3934_v14 = vmul.f32 %v7465_v48, %v10877_v52 }
 0x481   : > { %v7467_v56 = vpop.eup %7466 }
 0x482   : > { %v3935_v1 = vmul.f32 %v7467_v56, %v9708_v59 }
 0x483   : > { %v7469_v45 = vpop.eup %7468 }
 0x484   : > { %v3848_v47 = vpop.xlane.xlu0 %3847  ;;  %v3959_v44 = vpack.c.bf16 %v3935_v1, %v3934_v14  ;;  %v3932_v49 = vmul.f32 %v7469_v45, %v10878_v38 }
 0x485   : > { %v7471_v57 = vpop.eup %7470  ;;  %7472 = vrcp.f32 %v3848_v47  ;;  %v10885_v47 = vld [vmem:[#allocation78_spill] sm:$0xff] }
 0x486   : > { %v3933_v54 = vmul.f32 %v7471_v57, %v9718_v34  ;;  %v3851_v2 = vpop.xlane.xlu1 %3850  ;;  %6978 = vmatmul.mubr.msk.bf16.vlgmr.msra.gmra.mrb[140].mxu1 %vm3599_vm3, %v3959_v44  ;;  %v10882_v34 = vld [vmem:[#allocation38_spill] sm:$0xff] }
 0x487   : > { %7474 = vrcp.f32 %v3851_v2  ;;  %6988 = vmatpush3.bf16.msra.mxu1 %v10881_v51  ;;  %6989 = vmatprep.mubr.msk.bf16.mxu1 %vm7718_vm2, %v10859_v13  ;;  %v10884_v42 = vpack.c.bf16 %v10882_v34, %v10883_v36 }
 0x488   : > { %v3842_v59 = vpop.xlane.xlu0 %3841  ;;  %v3958_v8 = vpack.c.bf16 %v3933_v54, %v3932_v49  ;;  %6999 = vmatprep.subr.bf16.mxu1 %v10859_v13  ;;  %v10886_v54 = vld [vmem:[#allocation79_spill] sm:$0xff] }
 0x489   : > { %7476 = vrcp.f32 %v3842_v59 }
 0x48a   : > { %v3845_v19 = vpop.xlane.xlu1 %3844  ;;  %6972 = vmatmul.mubr.msk.bf16.vlgmr.msra.gmra.mrb[140].mxu0 %vm3599_vm3, %v3958_v8 }
 0x48b   : > { %7478 = vrcp.f32 %v3845_v19  ;;  %6982 = vmatpush3.bf16.msra.mxu0 %v10884_v42  ;;  %6983 = vmatprep.mubr.msk.bf16.mxu0 %vm7718_vm2, %v10859_v13  ;;  %v10891_v19 = vld [vmem:[#allocation42_spill] sm:$0xff] }
 0x48c   : > { %v4060_v27 = vpop.xlane.xlu0 %4059  ;;  %6993 = vmatprep.subr.bf16.mxu0 %v10859_v13 }
 0x48d   : > { %v4094_v21 = vsub.f32 %v9636_v15, %v4060_v27 }
 0x48e   : > { %v4063_v55 = vpop.xlane.xlu1 %4062 }
 0x48f   : > { %v7473_v48 = vpop.eup %7472  ;;  %v4156_v56 = vmul.f32 1.442695, %v4094_v21  ;;  %v4095_v52 = vsub.f32 %v9640_v40, %v4063_v55  ;;  %v10889_v40 = vpack.c.bf16 %v10887_v37, %v10888_v17 }
 0x490   : > { %v3938_v45 = vmul.f32 %v7473_v48, %v9724_v4 }
 0x491   : > { %v7475_v14 = vpop.eup %7474  ;;  %7480 = vpow2.f32 %v4156_v56  ;;  %v4158_v1 = vmul.f32 1.442695, %v4095_v52 }
 0x492   : > { %v3939_v44 = vmul.f32 %v7475_v14, %v10885_v47 }
 0x493   : > { %v7477_v57 = vpop.eup %7476  ;;  %7482 = vpow2.f32 %v4158_v1 }
 0x494   : > { %v3961_v38 = vpack.c.bf16 %v3939_v44, %v3938_v45  ;;  %v3936_v2 = vmul.f32 %v7477_v57, %v10886_v54  ;;  %v10893_v54 = vld [vmem:[#allocation54_spill] sm:$0xff] }
 0x495   : > { %v7479_v49 = vpop.eup %7478 }
 0x496   : > { %v3937_v15 = vmul.f32 %v7479_v49, %v9737_v53  ;;  %6990 = vmatmul.mubr.msk.bf16.vlgmr.msra.gmra.mrb[144].mxu1 %vm3599_vm3, %v3961_v38  ;;  %v10890_v53 = vld [vmem:[#allocation46_spill] sm:$0xff] }
 0x497   : > { %7000 = vmatpush3.bf16.msra.mxu1 %v10889_v40  ;;  %7001 = vmatprep.mubr.msk.bf16.mxu1 %vm7718_vm2, %v10859_v13  ;;  %v10892_v34 = vpack.c.bf16 %v10890_v53, %v10891_v19 }
 0x498   : > { %v3854_v4 = vpop.xlane.xlu0 %3853  ;;  %v3960_v51 = vpack.c.bf16 %v3937_v15, %v3936_v2  ;;  %7011 = vmatprep.subr.bf16.mxu1 %v10859_v13  ;;  %v10894_v2 = vld [vmem:[#allocation50_spill] sm:$0xff] }
 0x499   : > { %7484 = vrcp.f32 %v3854_v4  ;;  %v10895_v15 = vpack.c.bf16 %v10893_v54, %v10894_v2 }
 0x49a   : > { %v3857_v59 = vpop.xlane.xlu1 %3856  ;;  %6984 = vmatmul.mubr.msk.bf16.vlgmr.msra.gmra.mrb[144].mxu0 %vm3599_vm3, %v3960_v51 }
 0x49b   : > { %v10040_v8 = vpop.eup %7480  ;;  %7486 = vrcp.f32 %v3857_v59  ;;  %6994 = vmatpush3.bf16.msra.mxu0 %v10892_v34  ;;  %6995 = vmatprep.mubr.msk.bf16.mxu0 %vm7718_vm2, %v10859_v13 }
 0x49c   : > { %v3860_v36 = vpop.xlane.xlu0 %3859  ;;  %v4250_v42 = vsel %vm3599_vm3, %v10040_v8, 0.0  ;;  %7005 = vmatprep.subr.bf16.mxu0 %v10859_v13 }
 0x49d   : > { %v10050_v27 = vpop.eup %7482  ;;  %7488 = vrcp.f32 %v3860_v36  ;;  %4251 = vadd.xlane.f32.xlu0 %v4250_v42 }
 0x49e   : > { %v3863_v21 = vpop.xlane.xlu1 %3862  ;;  %v4253_v55 = vsel %vm3599_vm3, %v10050_v27, 0.0 }
 0x49f   : > { %7490 = vrcp.f32 %v3863_v21  ;;  %4254 = vadd.xlane.f32.xlu1 %v4253_v55 }
 0x4a3   : > { %v7485_v48 = vpop.eup %7484 }
 0x4a4   : > { %v3940_v52 = vmul.f32 %v7485_v48, %v9749_v12 }
 0x4a5   : > { %v7487_v56 = vpop.eup %7486 }
 0x4a6   : > { %v3941_v14 = vmul.f32 %v7487_v56, %v9755_v24 }
 0x4a7   : > { %v7489_v1 = vpop.eup %7488 }
 0x4a8   : > { %v3866_v45 = vpop.xlane.xlu0 %3865  ;;  %v3962_v47 = vpack.c.bf16 %v3941_v14, %v3940_v52  ;;  %v3942_v57 = vmul.f32 %v7489_v1, %v9751_v20  ;;  %v10896_v20 = vld [vmem:[#allocation52_spill] sm:$0xff]  ;;  %v10899_v52 = vld [vmem:[#allocation62_spill] sm:$0xff] }
 0x4a9   : > { %v7491_v44 = vpop.eup %7490  ;;  %7492 = vrcp.f32 %v3866_v45  ;;  %v10900_v14 = vld [vmem:[#allocation58_spill] sm:$0xff] }
 0x4aa   : > { %v3943_v38 = vmul.f32 %v7491_v44, %v9761_v25  ;;  %v3869_v49 = vpop.xlane.xlu1 %3868  ;;  %6996 = vmatmul.mubr.msk.bf16.vlgmr.msra.gmra.mrb[148].mxu0 %vm3599_vm3, %v3962_v47  ;;  %v10897_v25 = vld [vmem:[#allocation48_spill] sm:$0xff] }
 0x4ab   : > { %7494 = vrcp.f32 %v3869_v49  ;;  %7006 = vmatpush3.bf16.msra.mxu0 %v10895_v15  ;;  %7007 = vmatprep.mubr.msk.bf16.mxu0 %vm7718_vm2, %v10859_v13  ;;  %v10898_v17 = vpack.c.bf16 %v10896_v20, %v10897_v25  ;;  %v10903_v47 = vld [vmem:[#allocation56_spill] sm:$0xff] }
 0x4ac   : > { %v3872_v12 = vpop.xlane.xlu0 %3871  ;;  %v3963_v24 = vpack.c.bf16 %v3943_v38, %v3942_v57  ;;  %7017 = vmatprep.subr.bf16.mxu0 %v10859_v13 }
 0x4ad   : > { %7496 = vrcp.f32 %v3872_v12 }
 0x4ae   : > { %v3875_v37 = vpop.xlane.xlu1 %3874  ;;  %7002 = vmatmul.mubr.msk.bf16.vlgmr.msra.gmra.mrb[148].mxu1 %vm3599_vm3, %v3963_v24 }
 0x4af   : > { %7498 = vrcp.f32 %v3875_v37  ;;  %7012 = vmatpush3.bf16.msra.mxu1 %v10898_v17  ;;  %7013 = vmatprep.mubr.msk.bf16.mxu1 %vm7718_vm2, %v10859_v13 }
 0x4b0   : > { %7023 = vmatprep.subr.bf16.mxu1 %v10859_v13 }
 0x4b3   : > { %v7493_v40 = vpop.eup %7492 }
 0x4b4   : > { %v3878_v4 = vpop.xlane.xlu0 %3877  ;;  %v3944_v59 = vmul.f32 %v7493_v40, %v9771_v62  ;;  %v10901_v62 = vpack.c.bf16 %v10899_v52, %v10900_v14 }
 0x4b5   : > { %v7495_v51 = vpop.eup %7494  ;;  %7500 = vrcp.f32 %v3878_v4  ;;  %v10905_v4 = vld [vmem:[#allocation7_spill] sm:$0xff] }
 0x4b6   : > { %v3945_v53 = vmul.f32 %v7495_v51, %v9778_v5  ;;  %v3881_v19 = vpop.xlane.xlu1 %3880 }
 0x4b7   : > { %v7497_v34 = vpop.eup %7496  ;;  %7502 = vrcp.f32 %v3881_v19 }
 0x4b8   : > { %v3884_v36 = vpop.xlane.xlu0 %3883  ;;  %v3964_v42 = vpack.c.bf16 %v3945_v53, %v3944_v59  ;;  %v3946_v55 = vmul.f32 %v7497_v34, %v9774_v23 }
 0x4b9   : > { %v7499_v21 = vpop.eup %7498  ;;  %7504 = vrcp.f32 %v3884_v36  ;;  %v10908_v36 = vld [vmem:[#allocation24_spill] sm:$0xff] }
 0x4ba   : > { %v3947_v48 = vmul.f32 %v7499_v21, %v9783_v46  ;;  %v3887_v56 = vpop.xlane.xlu1 %3886  ;;  %7008 = vmatmul.mubr.msk.bf16.vlgmr.msra.gmra.mrb[152].mxu0 %vm3599_vm3, %v3964_v42  ;;  %v10902_v46 = vld [vmem:[#allocation60_spill] sm:$0xff] }
 0x4bb   : > { %7506 = vrcp.f32 %v3887_v56  ;;  %7018 = vmatpush3.bf16.msra.mxu0 %v10901_v62  ;;  %7019 = vmatprep.mubr.msk.bf16.mxu0 %vm7718_vm2, %v10859_v13  ;;  %v10904_v44 = vpack.c.bf16 %v10902_v46, %v10903_v47  ;;  %v10909_v42 = vld [vmem:[#allocation20_spill] sm:$0xff]  ;;  %v10911_v62 = vld [vmem:[#allocation15_spill] sm:$0xff] }
 0x4bc   : > { %v4162_v5 = vpop.xlane.xlu0 %4161  ;;  %v3965_v1 = vpack.c.bf16 %v3947_v48, %v3946_v55  ;;  %7029 = vmatprep.subr.bf16.mxu0 %v10859_v13  ;;  %v10910_v21 = vpack.c.bf16 %v10908_v36, %v10909_v42 }
 0x4bd   : > { %7508 = vrcp.f32 %v4162_v5  ;;  %v10912_v5 = vld [vmem:[#allocation11_spill] sm:$0xff] }
 0x4be   : > { %v4165_v45 = vpop.xlane.xlu1 %4164  ;;  %7014 = vmatmul.mubr.msk.bf16.vlgmr.msra.gmra.mrb[152].mxu1 %vm3599_vm3, %v3965_v1  ;;  %v10913_v1 = vpack.c.bf16 %v10911_v62, %v10912_v5 }
 0x4bf   : > { %v7501_v23 = vpop.eup %7500  ;;  %7510 = vrcp.f32 %v4165_v45  ;;  %7024 = vmatpush3.bf16.msra.mxu1 %v10904_v44  ;;  %7025 = vmatprep.mubr.msk.bf16.mxu1 %vm7718_vm2, %v10859_v13 }
 0x4c0   : > { %v4168_v57 = vpop.xlane.xlu0 %4167  ;;  %7035 = vmatprep.subr.bf16.mxu1 %v10859_v13  ;;  %v3948_v49 = vmul.f32 %v7501_v23, %v9793_v26  ;;  %v10906_v26 = vld [vmem:[#allocation22_spill] sm:$0xff] }
 0x4c1   : > { %v7503_v38 = vpop.eup %7502  ;;  %7512 = vrcp.f32 %v4168_v57  ;;  %v10907_v51 = vpack.c.bf16 %v10905_v4, %v10906_v26  ;;  %v10914_v57 = vld [vmem:[#allocation13_spill] sm:$0xff] }
 0x4c2   : > { %v3949_v54 = vmul.f32 %v7503_v38, %v9799_v50  ;;  %v4171_v2 = vpop.xlane.xlu1 %4170  ;;  %v10915_v38 = vld [vmem:[#allocation9_spill] sm:$0xff] }
 0x4c3   : > { %v7505_v15 = vpop.eup %7504  ;;  %7514 = vrcp.f32 %v4171_v2 }
 0x4c4   : > { %v4174_v12 = vpop.xlane.xlu0 %4173  ;;  %v3966_v24 = vpack.c.bf16 %v3949_v54, %v3948_v49  ;;  %v3950_v20 = vmul.f32 %v7505_v15, %v9795_v11  ;;  %v10916_v49 = vpack.c.bf16 %v10914_v57, %v10915_v38  ;;  %v10931_v38 = vld [vmem:[#allocation45_spill] sm:$0xff] }
 0x4c5   : > { %v7507_v37 = vpop.eup %7506  ;;  %7516 = vrcp.f32 %v4174_v12 }
 0x4c6   : > { %v3951_v25 = vmul.f32 %v7507_v37, %v9805_v6  ;;  %v4177_v17 = vpop.xlane.xlu1 %4176  ;;  %7020 = vmatmul.mubr.msk.bf16.vlgmr.msra.gmra.mrb[156].mxu0 %vm3599_vm3, %v3966_v24  ;;  %v10917_v37 = vld [vmem:[#allocation29_spill] sm:$0xff] }
 0x4c7   : > { %v7509_v40 = vpop.eup %7508  ;;  %7518 = vrcp.f32 %v4177_v17  ;;  %7030 = vmatpush3.bf16.msra.mxu0 %v10907_v51  ;;  %7031 = vmatprep.mubr.msk.bf16.mxu0 %vm7718_vm2, %v10859_v13 }
 0x4c8   : > { %v4180_v50 = vpop.xlane.xlu0 %4179  ;;  %v3967_v59 = vpack.c.bf16 %v3951_v25, %v3950_v20  ;;  %7041 = vmatprep.subr.bf16.mxu0 %v10859_v13  ;;  %v4288_v11 = vmul.f32 %v7509_v40, %v9813_v9  ;;  %v10918_v20 = vld [vmem:[#allocation25_spill] sm:$0xff] }
 0x4c9   : > { %v7511_v53 = vpop.eup %7510  ;;  %7520 = vrcp.f32 %v4180_v50  ;;  %v10919_v25 = vpack.c.bf16 %v10917_v37, %v10918_v20  ;;  %v10935_v37 = vld [vmem:[#allocation39_spill] sm:$0xff] }
 0x4ca   : > { %v4289_v6 = vmul.f32 %v7511_v53, %v9819_v41  ;;  %v4183_v19 = vpop.xlane.xlu1 %4182  ;;  %7026 = vmatmul.mubr.msk.bf16.vlgmr.msra.gmra.mrb[156].mxu1 %vm3599_vm3, %v3967_v59  ;;  %v10921_v59 = vld [vmem:[#allocation27_spill] sm:$0xff]  ;;  %v10922_v53 = vld [vmem:[#allocation17_spill] sm:$0xff] }
 0x4cb   : > { %v7513_v34 = vpop.eup %7512  ;;  %7522 = vrcp.f32 %v4183_v19  ;;  %7036 = vmatpush3.bf16.msra.mxu1 %v10910_v21  ;;  %7037 = vmatprep.mubr.msk.bf16.mxu1 %vm7718_vm2, %v10859_v13 }
 0x4cc   : > { %v4186_v55 = vpop.xlane.xlu0 %4185  ;;  %v4320_v48 = vpack.c.bf16 %v4289_v6, %v4288_v11  ;;  %7047 = vmatprep.subr.bf16.mxu1 %v10859_v13  ;;  %v4290_v9 = vmul.f32 %v7513_v34, %v9815_v58  ;;  %v10923_v11 = vpack.c.bf16 %v10921_v59, %v10922_v53 }
 0x4cd   : > { %v7515_v56 = vpop.eup %7514  ;;  %7524 = vrcp.f32 %v4186_v55  ;;  %v10924_v55 = vld [vmem:[#allocation37_spill] sm:$0xff] }
 0x4ce   : > { %v4291_v41 = vmul.f32 %v7515_v56, %v9825_v30  ;;  %v4189_v52 = vpop.xlane.xlu1 %4188  ;;  %7032 = vmatmul.mubr.msk.bf16.vlgmr.msra.gmra.mrb[160].mxu0 %vm3599_vm3, %v4320_v48  ;;  %v10925_v48 = vld [vmem:[#allocation33_spill] sm:$0xff] }
 0x4cf   : > { %v7517_v14 = vpop.eup %7516  ;;  %7526 = vrcp.f32 %v4189_v52  ;;  %7042 = vmatpush3.bf16.msra.mxu0 %v10913_v1  ;;  %7043 = vmatprep.mubr.msk.bf16.mxu0 %vm7718_vm2, %v10859_v13  ;;  %v10926_v56 = vpack.c.bf16 %v10924_v55, %v10925_v48  ;;  %v10928_v1 = vld [vmem:[#allocation35_spill] sm:$0xff] }
 0x4d0   : > { %v4192_v45 = vpop.xlane.xlu0 %4191  ;;  %v4321_v23 = vpack.c.bf16 %v4291_v41, %v4290_v9  ;;  %7053 = vmatprep.subr.bf16.mxu0 %v10859_v13  ;;  %v4292_v58 = vmul.f32 %v7517_v14, %v9833_v18 }
 0x4d1   : > { %v7519_v46 = vpop.eup %7518  ;;  %7528 = vrcp.f32 %v4192_v45  ;;  %v10929_v45 = vld [vmem:[#allocation31_spill] sm:$0xff] }
 0x4d2   : > { %v4293_v30 = vmul.f32 %v7519_v46, %v9839_v31  ;;  %v4195_v47 = vpop.xlane.xlu1 %4194  ;;  %7038 = vmatmul.mubr.msk.bf16.vlgmr.msra.gmra.mrb[160].mxu1 %vm3599_vm3, %v4321_v23  ;;  %v10930_v23 = vpack.c.bf16 %v10928_v1, %v10929_v45  ;;  %v10949_v45 = vld [vmem:[#allocation59_spill] sm:$0xff] }
 0x4d3   : > { %v7521_v44 = vpop.eup %7520  ;;  %7530 = vrcp.f32 %v4195_v47  ;;  %7048 = vmatpush3.bf16.msra.mxu1 %v10916_v49  ;;  %7049 = vmatprep.mubr.msk.bf16.mxu1 %vm7718_vm2, %v10859_v13  ;;  %v10932_v49 = vld [vmem:[#allocation41_spill] sm:$0xff] }
 0x4d4   : > { %v4198_v54 = vpop.xlane.xlu0 %4197  ;;  %v4322_v2 = vpack.c.bf16 %v4293_v30, %v4292_v58  ;;  %7059 = vmatprep.subr.bf16.mxu1 %v10859_v13  ;;  %v4294_v18 = vmul.f32 %v7521_v44, %v9835_v0  ;;  %v10920_v0 = vld [vmem:[#allocation67_spill] sm:$0xff] }
 0x4d5   : > { %v7523_v15 = vpop.eup %7522  ;;  %7532 = vrcp.f32 %v4198_v54  ;;  %v10933_v54 = vpack.c.bf16 %v10931_v38, %v10932_v49  ;;  %v10954_v49 = vld [vmem:[#allocation66_spill] sm:$0xff] }
 0x4d6   : > { %v4295_v31 = vmul.f32 %v7523_v15, %v9845_v60  ;;  %v4201_v12 = vpop.xlane.xlu1 %4200  ;;  %7044 = vmatmul.mubr.msk.bf16.vlgmr.msra.gmra.mrb[164].mxu0 %vm3599_vm3, %v4322_v2 }
 0x4d7   : > { %v7525_v24 = vpop.eup %7524  ;;  %7534 = vrcp.f32 %v4201_v12  ;;  %7054 = vmatpush3.bf16.msra.mxu0 %v10919_v25  ;;  %7055 = vmatprep.mubr.msk.bf16.mxu0 %vm7718_vm2, %v10859_v13 }
 0x4d8   : > { %v4204_v17 = vpop.xlane.xlu0 %4203  ;;  %v4323_v40 = vpack.c.bf16 %v4295_v31, %v4294_v18  ;;  %7065 = vmatprep.subr.bf16.mxu0 %v10859_v13  ;;  %v4296_v60 = vmul.f32 %v7525_v24, %v10920_v0  ;;  %v10934_v24 = vld [vmem:[#allocation43_spill] sm:$0xff] }
 0x4d9   : > { %v7527_v4 = vpop.eup %7526  ;;  %7536 = vrcp.f32 %v4204_v17  ;;  %v10936_v20 = vpack.c.bf16 %v10934_v24, %v10935_v37  ;;  %v10959_v24 = vld [vmem:[#allocation63_spill] sm:$0xff] }
 0x4da   : > { %v4297_v26 = vmul.f32 %v7527_v4, %v9859_v32  ;;  %v4207_v51 = vpop.xlane.xlu1 %4206  ;;  %7050 = vmatmul.mubr.msk.bf16.vlgmr.msra.gmra.mrb[164].mxu1 %vm3599_vm3, %v4323_v40 }
 0x4db   : > { %v7529_v50 = vpop.eup %7528  ;;  %7538 = vrcp.f32 %v4207_v51  ;;  %7060 = vmatpush3.bf16.msra.mxu1 %v10923_v11  ;;  %7061 = vmatprep.mubr.msk.bf16.mxu1 %vm7718_vm2, %v10859_v13 }
 0x4dc   : > { %v4210_v6 = vpop.xlane.xlu0 %4209  ;;  %v4324_v19 = vpack.c.bf16 %v4297_v26, %v4296_v60  ;;  %7071 = vmatprep.subr.bf16.mxu1 %v10859_v13  ;;  %v4298_v32 = vmul.f32 %v7529_v50, %v9855_v43  ;;  %v10927_v43 = vld [vmem:[#allocation68_spill] sm:$0xff]  ;;  %v10937_v60 = vld [vmem:[#allocation53_spill] sm:$0xff] }
 0x4dd   : > { %v7531_v34 = vpop.eup %7530  ;;  %7540 = vrcp.f32 %v4210_v6  ;;  %v10938_v26 = vld [vmem:[#allocation49_spill] sm:$0xff] }
 0x4de   : > { %v4299_v36 = vmul.f32 %v7531_v34, %v9865_v63  ;;  %v4213_v42 = vpop.xlane.xlu1 %4212  ;;  %7056 = vmatmul.mubr.msk.bf16.vlgmr.msra.gmra.mrb[168].mxu0 %vm3599_vm3, %v4324_v19  ;;  %v10939_v51 = vpack.c.bf16 %v10937_v60, %v10938_v26  ;;  %v10940_v19 = vld [vmem:[#allocation51_spill] sm:$0xff] }
 0x4df   : > { %v7533_v21 = vpop.eup %7532  ;;  %7542 = vrcp.f32 %v4213_v42  ;;  %7066 = vmatpush3.bf16.msra.mxu0 %v10926_v56  ;;  %7067 = vmatprep.mubr.msk.bf16.mxu0 %vm7718_vm2, %v10859_v13  ;;  %v10941_v34 = vld [vmem:[#allocation47_spill] sm:$0xff] }
 0x4e0   : > { %v4216_v9 = vpop.xlane.xlu0 %4215  ;;  %v4325_v41 = vpack.c.bf16 %v4299_v36, %v4298_v32  ;;  %7077 = vmatprep.subr.bf16.mxu0 %v10859_v13  ;;  %v4300_v63 = vmul.f32 %v7533_v21, %v10927_v43  ;;  %v10942_v32 = vpack.c.bf16 %v10940_v19, %v10941_v34 }
 0x4e1   : > { %v7535_v52 = vpop.eup %7534  ;;  %7544 = vrcp.f32 %v4216_v9  ;;  %v10944_v9 = vld [vmem:[#allocation61_spill] sm:$0xff] }
 0x4e2   : > { %v4301_v14 = vmul.f32 %v7535_v52, %v9879_v29  ;;  %v4219_v62 = vpop.xlane.xlu1 %4218  ;;  %7062 = vmatmul.mubr.msk.bf16.vlgmr.msra.gmra.mrb[168].mxu1 %vm3599_vm3, %v4325_v41  ;;  %v10945_v41 = vld [vmem:[#allocation57_spill] sm:$0xff] }
 0x4e3   : > { %v7537_v5 = vpop.eup %7536  ;;  %7546 = vrcp.f32 %v4219_v62  ;;  %7072 = vmatpush3.bf16.msra.mxu1 %v10930_v23  ;;  %7073 = vmatprep.mubr.msk.bf16.mxu1 %vm7718_vm2, %v10859_v13  ;;  %v10946_v52 = vpack.c.bf16 %v10944_v9, %v10945_v41  ;;  %v10948_v62 = vld [vmem:[#allocation72_spill] sm:$0xff]  ;;  %v10950_v23 = vld [vmem:[#allocation55_spill] sm:$0xff] }
 0x4e4   : > { %v4222_v46 = vpop.xlane.xlu0 %4221  ;;  %v4326_v58 = vpack.c.bf16 %v4301_v14, %v4300_v63  ;;  %7083 = vmatprep.subr.bf16.mxu1 %v10859_v13  ;;  %v4302_v29 = vmul.f32 %v7537_v5, %v9875_v16  ;;  %v10947_v14 = vld [vmem:[#allocation69_spill] sm:$0xff] }
 0x4e5   : > { %v7539_v30 = vpop.eup %7538  ;;  %7548 = vrcp.f32 %v4222_v46  ;;  %v10951_v46 = vpack.c.bf16 %v10949_v45, %v10950_v23 }
 0x4e6   : > { %v4303_v47 = vmul.f32 %v7539_v30, %v9885_v33  ;;  %v4225_v44 = vpop.xlane.xlu1 %4224  ;;  %7068 = vmatmul.mubr.msk.bf16.vlgmr.msra.gmra.mrb[172].mxu0 %vm3599_vm3, %v4326_v58 }
 0x4e7   : > { %v7541_v57 = vpop.eup %7540  ;;  %7550 = vrcp.f32 %v4225_v44  ;;  %7078 = vmatpush3.bf16.msra.mxu0 %v10933_v54  ;;  %7079 = vmatprep.mubr.msk.bf16.mxu0 %vm7718_vm2, %v10859_v13  ;;  %v10953_v44 = vld [vmem:[#allocation73_spill] sm:$0xff]  ;;  %v10955_v54 = vld [vmem:[#allocation64_spill] sm:$0xff] }
 0x4e8   : > { %v4228_v2 = vpop.xlane.xlu0 %4227  ;;  %v4327_v15 = vpack.c.bf16 %v4303_v47, %v4302_v29  ;;  %7089 = vmatprep.subr.bf16.mxu0 %v10859_v13  ;;  %v4304_v16 = vmul.f32 %v7541_v57, %v9893_v3  ;;  %v10952_v29 = vld [vmem:[#allocation71_spill] sm:$0xff] }
 0x4e9   : > { %v7543_v18 = vpop.eup %7542  ;;  %7552 = vrcp.f32 %v4228_v2  ;;  %v10956_v2 = vpack.c.bf16 %v10954_v49, %v10955_v54 }
 0x4ea   : > { %v4305_v33 = vmul.f32 %v7543_v18, %v9899_v22  ;;  %v4231_v31 = vpop.xlane.xlu1 %4230  ;;  %7074 = vmatmul.mubr.msk.bf16.vlgmr.msra.gmra.mrb[172].mxu1 %vm3599_vm3, %v4327_v15 }
 0x4eb   : > { %v7545_v12 = vpop.eup %7544  ;;  %7554 = vrcp.f32 %v4231_v31  ;;  %7084 = vmatpush3.bf16.msra.mxu1 %v10936_v20  ;;  %7085 = vmatprep.mubr.msk.bf16.mxu1 %vm7718_vm2, %v10859_v13 }
 0x4ec   : > { %v4234_v25 = vpop.xlane.xlu0 %4233  ;;  %v4328_v17 = vpack.c.bf16 %v4305_v33, %v4304_v16  ;;  %7095 = vmatprep.subr.bf16.mxu1 %v10859_v13  ;;  %v4306_v3 = vmul.f32 %v7545_v12, %v9895_v35  ;;  %v10957_v16 = vld [vmem:[#allocation80_spill] sm:$0xff]  ;;  %v10958_v12 = vld [vmem:[#allocation65_spill] sm:$0xff] }
 0x4ed   : > { %v7547_v40 = vpop.eup %7546  ;;  %7556 = vrcp.f32 %v4234_v25  ;;  %v10960_v37 = vpack.c.bf16 %v10958_v12, %v10959_v24 }
 0x4ee   : > { %v4307_v22 = vmul.f32 %v7547_v40, %v9905_v28  ;;  %v4237_v4 = vpop.xlane.xlu1 %4236  ;;  %7080 = vmatmul.mubr.msk.bf16.vlgmr.msra.gmra.mrb[176].mxu0 %vm3599_vm3, %v4328_v17 }
 0x4ef   : > { %v7549_v0 = vpop.eup %7548  ;;  %7558 = vrcp.f32 %v4237_v4  ;;  %7090 = vmatpush3.bf16.msra.mxu0 %v10939_v51  ;;  %7091 = vmatprep.mubr.msk.bf16.mxu0 %vm7718_vm2, %v10859_v13 }
 0x4f0   : > { %v4240_v50 = vpop.xlane.xlu0 %4239  ;;  %v4329_v59 = vpack.c.bf16 %v4307_v22, %v4306_v3  ;;  %7101 = vmatprep.subr.bf16.mxu0 %v10859_v13  ;;  %v4308_v35 = vmul.f32 %v7549_v0, %v9913_v7 }
 0x4f1   : > { %v7551_v53 = vpop.eup %7550  ;;  %7560 = vrcp.f32 %v4240_v50 }
 0x4f2   : > { %v4309_v28 = vmul.f32 %v7551_v53, %v9920_v10  ;;  %v4243_v11 = vpop.xlane.xlu1 %4242  ;;  %7086 = vmatmul.mubr.msk.bf16.vlgmr.msra.gmra.mrb[176].mxu1 %vm3599_vm3, %v4329_v59  ;;  %v10943_v10 = vld [vmem:[#allocation70_spill] sm:$0xff] }
 0x4f3   : > { %v7553_v6 = vpop.eup %7552  ;;  %7562 = vrcp.f32 %v4243_v11  ;;  %7096 = vmatpush3.bf16.msra.mxu1 %v10942_v32  ;;  %7097 = vmatprep.mubr.msk.bf16.mxu1 %vm7718_vm2, %v10859_v13 }
 0x4f4   : > { %v4246_v36 = vpop.xlane.xlu0 %4245  ;;  %v4330_v42 = vpack.c.bf16 %v4309_v28, %v4308_v35  ;;  %7107 = vmatprep.subr.bf16.mxu1 %v10859_v13  ;;  %v4310_v7 = vmul.f32 %v7553_v6, %v9915_v39 }
 0x4f5   : > { %v7555_v21 = vpop.eup %7554  ;;  %7564 = vrcp.f32 %v4246_v36 }
 0x4f6   : > { %v4311_v55 = vmul.f32 %v7555_v21, %v10943_v10  ;;  %v4249_v48 = vpop.xlane.xlu1 %4248  ;;  %7092 = vmatmul.mubr.msk.bf16.vlgmr.msra.gmra.mrb[180].mxu0 %vm3599_vm3, %v4330_v42 }
 0x4f7   : > { %v7557_v56 = vpop.eup %7556  ;;  %7566 = vrcp.f32 %v4249_v48  ;;  %7102 = vmatpush3.bf16.msra.mxu0 %v10946_v52  ;;  %7103 = vmatprep.mubr.msk.bf16.mxu0 %vm7718_vm2, %v10859_v13 }
 0x4f8   : > { %v4331_v43 = vpack.c.bf16 %v4311_v55, %v4310_v7  ;;  %7113 = vmatprep.subr.bf16.mxu0 %v10859_v13  ;;  %v4312_v39 = vmul.f32 %v7557_v56, %v10947_v14 }
 0x4f9   : > { %v7559_v63 = vpop.eup %7558 }
 0x4fa   : > { %v4313_v5 = vmul.f32 %v7559_v63, %v10948_v62  ;;  %7098 = vmatmul.mubr.msk.bf16.vlgmr.msra.gmra.mrb[180].mxu1 %vm3599_vm3, %v4331_v43 }
 0x4fb   : > { %v7561_v1 = vpop.eup %7560  ;;  %7108 = vmatpush3.bf16.msra.mxu1 %v10951_v46  ;;  %7109 = vmatprep.mubr.msk.bf16.mxu1 %vm7718_vm2, %v10859_v13 }
 0x4fc   : > { %v4332_v58 = vpack.c.bf16 %v4313_v5, %v4312_v39  ;;  %7119 = vmatprep.subr.bf16.mxu1 %v10859_v13  ;;  %v4314_v47 = vmul.f32 %v7561_v1, %v10952_v29 }
 0x4fd   : > { %v7563_v30 = vpop.eup %7562 }
 0x4fe   : > { %v4315_v57 = vmul.f32 %v7563_v30, %v10953_v44  ;;  %7104 = vmatmul.mubr.msk.bf16.vlgmr.msra.gmra.mrb[184].mxu0 %vm3599_vm3, %v4332_v58 }
 0x4ff   : > { %v7565_v38 = vpop.eup %7564  ;;  %7114 = vmatpush3.bf16.msra.mxu0 %v10956_v2  ;;  %7115 = vmatprep.mubr.msk.bf16.mxu0 %vm7718_vm2, %v10859_v13 }
 0x500   : > { %v4333_v15 = vpack.c.bf16 %v4315_v57, %v4314_v47  ;;  %v4316_v33 = vmul.f32 %v7565_v38, %v10957_v16 }
 0x501   : > { %v7567_v18 = vpop.eup %7566 }
 0x502   : > { %v4317_v31 = vmul.f32 %v7567_v18, %v9946_v61  ;;  %7110 = vmatmul.mubr.msk.bf16.vlgmr.msra.gmra.mrb[184].mxu1 %vm3599_vm3, %v4333_v15 }
 0x503   : > { %7120 = vmatpush3.bf16.msra.mxu1 %v10960_v37  ;;  %7121 = vmatprep.mubr.msk.bf16.mxu1 %vm7718_vm2, %v10859_v13 }
 0x504   : > { %v4334_v20 = vpack.c.bf16 %v4317_v31, %v4316_v33 }
 0x506   : > { %7116 = vmatmul.mubr.msk.bf16.vlgmr.msra.gmra.mrb[188].mxu0 %vm3599_vm3, %v4334_v20 }
 0x52a   : > { %v4252_v25 = vpop.xlane.xlu0 %4251 }
 0x52b   : > { %7568 = vrcp.f32 %v4252_v25 }
 0x52c   : > { %v4255_v17 = vpop.xlane.xlu1 %4254 }
 0x52d   : > { %7570 = vrcp.f32 %v4255_v17 }
 0x535   : > { %v7569_v40 = vpop.eup %7568 }
 0x536   : > { %v4318_v61 = vmul.f32 %v7569_v40, %v10040_v8 }
 0x537   : > { %v7571_v3 = vpop.eup %7570 }
 0x538   : > { %v4319_v22 = vmul.f32 %v7571_v3, %v10050_v27 }
 0x53a   : > { %v4335_v4 = vpack.c.bf16 %v4319_v22, %v4318_v61 }
 0x53c   : > { %7122 = vmatmul.mubr.msk.bf16.vlgmr.msra.gmra.mrb[188].mxu1 %vm3599_vm3, %v4335_v4 }
 0x53d   : > { %v10238_v0 = vpop.f32.mrb[128].mxu1 }
 0x53e   : > { %v6943_v60 = vpop.f32.mrb[129].mxu1 }
 0x53f   : > { %v10240_v13 = vpop.f32.mrb[130].mxu1 }
 0x540   : > { %v6944_v26 = vpop.f32.mrb[131].mxu1  ;;  %v4373_v51 = vpop.f32.mrb[128].mxu0 }
 0x541   : > { %v6937_v50 = vpop.f32.mrb[129].mxu0 }
 0x542   : > { %v10242_v59 = vpop.f32.mrb[130].mxu0  ;;  %v10961_v50 = vld [vmem:[#allocation19_spill] sm:$0xff] }
 0x543   : > { %v6938_v53 = vpop.f32.mrb[131].mxu0 }
 0x544   : > { %v5778_v53 = vsub.s32 4, %v10961_v50 }
 0x545   : > { %v10244_v35 = vpop.f32.mrb[132].mxu1 }
 0x546   : > { %v6955_v28 = vpop.f32.mrb[133].mxu1 }
 0x547   : > { %v10246_v8 = vpop.f32.mrb[134].mxu1 }
 0x548   : > { %v6956_v27 = vpop.f32.mrb[135].mxu1  ;;  %v10248_v11 = vpop.f32.mrb[132].mxu0 }
 0x549   : > { %v6949_v6 = vpop.f32.mrb[133].mxu0 }
 0x54a   : > { %v10250_v19 = vpop.f32.mrb[134].mxu0 }
 0x54b   : > { %v6950_v34 = vpop.f32.mrb[135].mxu0 }
 0x54d   : > { %v10252_v32 = vpop.f32.mrb[136].mxu1 }
 0x54e   : > { %v6967_v36 = vpop.f32.mrb[137].mxu1 }
 0x54f   : > { %v10254_v42 = vpop.f32.mrb[138].mxu1 }
 0x550   : > { %v6968_v21 = vpop.f32.mrb[139].mxu1  ;;  %v10256_v7 = vpop.f32.mrb[136].mxu0 }
 0x551   : > { %v6961_v10 = vpop.f32.mrb[137].mxu0  ;;  %v7636_v21 = vld [vmem:[%s10573_s3] sm:$0x1f] }
 0x552   : > { %v10258_v55 = vpop.f32.mrb[138].mxu0  ;;  %v10305_v10 = vrot.slane %v7636_v21, %v5778_v53 }
 0x553   : > { %v6962_v48 = vpop.f32.mrb[139].mxu0 }
 0x559   : > { %v10260_v56 = vpop.f32.mrb[140].mxu1 }
 0x55a   : > { %v6979_v9 = vpop.f32.mrb[141].mxu1 }
 0x55b   : > { %v10262_v41 = vpop.f32.mrb[142].mxu1 }
 0x55c   : > { %v6980_v52 = vpop.f32.mrb[143].mxu1 }
 0x55d   : > { %v10264_v43 = vpop.f32.mrb[140].mxu0 }
 0x55e   : > { %v6973_v63 = vpop.f32.mrb[141].mxu0 }
 0x55f   : > { %v10266_v14 = vpop.f32.mrb[142].mxu0 }
 0x560   : > { %v6974_v39 = vpop.f32.mrb[143].mxu0 }
 0x569   : > { %v10268_v62 = vpop.f32.mrb[144].mxu1 }
 0x56a   : > { %v6991_v5 = vpop.f32.mrb[145].mxu1 }
 0x56b   : > { %v10270_v1 = vpop.f32.mrb[146].mxu1 }
 0x56c   : > { %v6992_v45 = vpop.f32.mrb[147].mxu1 }
 0x56d   : > { %v10272_v23 = vpop.f32.mrb[144].mxu0 }
 0x56e   : > { %v6985_v46 = vpop.f32.mrb[145].mxu0 }
 0x56f   : > { %v10274_v58 = vpop.f32.mrb[146].mxu0 }
 0x570   : > { %v6986_v30 = vpop.f32.mrb[147].mxu0 }
 0x57d   : > { %v10276_v29 = vpop.f32.mrb[148].mxu0 }
 0x57e   : > { %v6997_v47 = vpop.f32.mrb[149].mxu0 }
 0x57f   : > { %v10278_v44 = vpop.f32.mrb[150].mxu0 }
 0x580   : > { %v6998_v57 = vpop.f32.mrb[151].mxu0 }
 0x581   : > { %v10280_v38 = vpop.f32.mrb[148].mxu1 }
 0x582   : > { %v7003_v49 = vpop.f32.mrb[149].mxu1 }
 0x583   : > { %v10282_v54 = vpop.f32.mrb[150].mxu1 }
 0x584   : > { %v7004_v2 = vpop.f32.mrb[151].mxu1 }
 0x58d   : > { %v10284_v15 = vpop.f32.mrb[152].mxu0 }
 0x58e   : > { %v7009_v18 = vpop.f32.mrb[153].mxu0 }
 0x58f   : > { %v10286_v16 = vpop.f32.mrb[154].mxu0 }
 0x590   : > { %v7010_v33 = vpop.f32.mrb[155].mxu0 }
 0x591   : > { %v10288_v31 = vpop.f32.mrb[152].mxu1 }
 0x592   : > { %v7015_v12 = vpop.f32.mrb[153].mxu1 }
 0x593   : > { %v10290_v24 = vpop.f32.mrb[154].mxu1 }
 0x594   : > { %v7016_v37 = vpop.f32.mrb[155].mxu1 }
 0x599   : > { %v10292_v20 = vpop.f32.mrb[156].mxu0 }
 0x59a   : > { %v7021_v25 = vpop.f32.mrb[157].mxu0 }
 0x59b   : > { %v10294_v17 = vpop.f32.mrb[158].mxu0 }
 0x59c   : > { %v7022_v40 = vpop.f32.mrb[159].mxu0 }
 0x59d   : > { %v10296_v3 = vpop.f32.mrb[156].mxu1 }
 0x59e   : > { %v7027_v61 = vpop.f32.mrb[157].mxu1 }
 0x59f   : > { %v10298_v22 = vpop.f32.mrb[158].mxu1 }
 0x5a0   : > { %v7028_v4 = vpop.f32.mrb[159].mxu1 }
 0x5a1   : > { %v5077_v60 = vpop.f32.mrb[160].mxu0 }
 0x5a2   : > { %v5744_v26 = vmul.f32 %v5077_v60, %v4373_v51  ;;  %v7033_v28 = vpop.f32.mrb[161].mxu0 }
 0x5a3   : > { %v5080_v27 = vpop.f32.mrb[162].mxu0 }
 0x5a4   : > { %v5745_v6 = vmul.f32 %v5080_v27, %v10242_v59  ;;  %v7034_v34 = vpop.f32.mrb[163].mxu0  ;;  %v5780_v59 = vmul.f32 %v10305_v10, %v5744_v26 }
 0x5a5   : > { %v5121_v36 = vpop.f32.mrb[160].mxu1 }
 0x5a6   : > { %v5746_v48 = vmul.f32 %v5121_v36, %v10238_v0  ;;  %v7039_v9 = vpop.f32.mrb[161].mxu1  ;;  %v5781_v0 = vmul.f32 %v10305_v10, %v5745_v6  ;;  %v5812_v37 = vsel %vm357_vm0, %v5780_v59, 0.0 }
 0x5a7   : > { %v5124_v52 = vpop.f32.mrb[162].mxu1 }
 0x5a8   : > { %v5782_v51 = vmul.f32 %v10305_v10, %v5746_v48  ;;  %v5747_v63 = vmul.f32 %v5124_v52, %v10240_v13  ;;  %v7040_v39 = vpop.f32.mrb[163].mxu1  ;;  %v5815_v4 = vsel %vm357_vm0, %v5781_v0, 0.0 }
 0x5a9   : > { %v5165_v5 = vpop.f32.mrb[164].mxu0 }
 0x5aa   : > { %v5783_v45 = vmul.f32 %v10305_v10, %v5747_v63  ;;  %v5748_v46 = vmul.f32 %v5165_v5, %v10248_v11  ;;  %v7045_v30 = vpop.f32.mrb[165].mxu0  ;;  %v5818_v47 = vsel %vm357_vm0, %v5782_v51, 0.0 }
 0x5ab   : > { %5819 = vadd.xlane.f32.xlu0 %v5818_v47  ;;  %v5168_v57 = vpop.f32.mrb[166].mxu0 }
 0x5ac   : > { %v5749_v49 = vmul.f32 %v5168_v57, %v10250_v19  ;;  %v7046_v2 = vpop.f32.mrb[167].mxu0  ;;  %v5821_v13 = vsel %vm357_vm0, %v5783_v45, 0.0  ;;  %v5784_v60 = vmul.f32 %v10305_v10, %v5748_v46 }
 0x5ad   : > { %5822 = vadd.xlane.f32.xlu1 %v5821_v13  ;;  %v5209_v18 = vpop.f32.mrb[164].mxu1 }
 0x5ae   : > { %v5750_v33 = vmul.f32 %v5209_v18, %v10244_v35  ;;  %v7051_v12 = vpop.f32.mrb[165].mxu1  ;;  %v5785_v6 = vmul.f32 %v10305_v10, %v5749_v49  ;;  %v5824_v52 = vsel %vm357_vm0, %v5784_v60, 0.0 }
 0x5af   : > { %5813 = vadd.xlane.f32.xlu0 %v5812_v37  ;;  %v5212_v11 = vpop.f32.mrb[166].mxu1 }
 0x5b0   : > { %v5786_v25 = vmul.f32 %v10305_v10, %v5750_v33  ;;  %v5751_v40 = vmul.f32 %v5212_v11, %v10246_v8  ;;  %v7052_v61 = vpop.f32.mrb[167].mxu1  ;;  %v5827_v5 = vsel %vm357_vm0, %v5785_v6, 0.0 }
 0x5b1   : > { %5816 = vadd.xlane.f32.xlu1 %v5815_v4  ;;  %v5253_v19 = vpop.f32.mrb[168].mxu0 }
 0x5b2   : > { %v5787_v26 = vmul.f32 %v10305_v10, %v5751_v40  ;;  %v5752_v35 = vmul.f32 %v5253_v19, %v10256_v7  ;;  %v7057_v53 = vpop.f32.mrb[169].mxu0  ;;  %v5830_v28 = vsel %vm357_vm0, %v5786_v25, 0.0 }
 0x5b3   : > { %5831 = vadd.xlane.f32.xlu0 %v5830_v28  ;;  %v5256_v27 = vpop.f32.mrb[170].mxu0 }
 0x5b4   : > { %v5753_v8 = vmul.f32 %v5256_v27, %v10258_v55  ;;  %v7058_v34 = vpop.f32.mrb[171].mxu0  ;;  %v5833_v36 = vsel %vm357_vm0, %v5787_v26, 0.0  ;;  %v5788_v59 = vmul.f32 %v10305_v10, %v5752_v35 }
 0x5b5   : > { %5834 = vadd.xlane.f32.xlu1 %v5833_v36  ;;  %v5297_v21 = vpop.f32.mrb[168].mxu1 }
 0x5b6   : > { %v5754_v48 = vmul.f32 %v5297_v21, %v10252_v32  ;;  %v7063_v9 = vpop.f32.mrb[169].mxu1  ;;  %v5789_v57 = vmul.f32 %v10305_v10, %v5753_v8  ;;  %v5836_v33 = vsel %vm357_vm0, %v5788_v59, 0.0 }
 0x5b7   : > { %5825 = vadd.xlane.f32.xlu0 %v5824_v52  ;;  %v5300_v7 = vpop.f32.mrb[170].mxu1 }
 0x5b8   : > { %v5790_v51 = vmul.f32 %v10305_v10, %v5754_v48  ;;  %v5755_v63 = vmul.f32 %v5300_v7, %v10254_v42  ;;  %v7064_v39 = vpop.f32.mrb[171].mxu1  ;;  %v5839_v25 = vsel %vm357_vm0, %v5789_v57, 0.0 }
 0x5b9   : > { %5828 = vadd.xlane.f32.xlu1 %v5827_v5  ;;  %v5341_v55 = vpop.f32.mrb[172].mxu0 }
 0x5ba   : > { %v5791_v45 = vmul.f32 %v10305_v10, %v5755_v63  ;;  %v5756_v32 = vmul.f32 %v5341_v55, %v10264_v43  ;;  %v7069_v46 = vpop.f32.mrb[173].mxu0  ;;  %v5842_v30 = vsel %vm357_vm0, %v5790_v51, 0.0 }
 0x5bb   : > { %5843 = vadd.xlane.f32.xlu0 %v5842_v30  ;;  %v5344_v47 = vpop.f32.mrb[174].mxu0 }
 0x5bc   : > { %v5757_v42 = vmul.f32 %v5344_v47, %v10266_v14  ;;  %v7070_v0 = vpop.f32.mrb[175].mxu0  ;;  %v5845_v49 = vsel %vm357_vm0, %v5791_v45, 0.0  ;;  %v5792_v40 = vmul.f32 %v10305_v10, %v5756_v32 }
 0x5bd   : > { %5846 = vadd.xlane.f32.xlu1 %v5845_v49  ;;  %v5385_v2 = vpop.f32.mrb[172].mxu1 }
 0x5be   : > { %v5758_v13 = vmul.f32 %v5385_v2, %v10260_v56  ;;  %v7075_v18 = vpop.f32.mrb[173].mxu1  ;;  %v5793_v26 = vmul.f32 %v10305_v10, %v5757_v42  ;;  %v5848_v8 = vsel %vm357_vm0, %v5792_v40, 0.0 }
 0x5bf   : > { %5837 = vadd.xlane.f32.xlu0 %v5836_v33  ;;  %v5388_v43 = vpop.f32.mrb[174].mxu1 }
 0x5c0   : > { %v5794_v12 = vmul.f32 %v10305_v10, %v5758_v13  ;;  %v5759_v37 = vmul.f32 %v5388_v43, %v10262_v41  ;;  %v7076_v11 = vpop.f32.mrb[175].mxu1  ;;  %v5851_v48 = vsel %vm357_vm0, %v5793_v26, 0.0 }
 0x5c1   : > { %5840 = vadd.xlane.f32.xlu1 %v5839_v25  ;;  %v5429_v14 = vpop.f32.mrb[176].mxu0 }
 0x5c2   : > { %v5795_v61 = vmul.f32 %v10305_v10, %v5759_v37  ;;  %v5760_v56 = vmul.f32 %v5429_v14, %v10272_v23  ;;  %v7081_v4 = vpop.f32.mrb[177].mxu0  ;;  %v5854_v19 = vsel %vm357_vm0, %v5794_v12, 0.0 }
 0x5c3   : > { %5855 = vadd.xlane.f32.xlu0 %v5854_v19  ;;  %v5432_v60 = vpop.f32.mrb[178].mxu0 }
 0x5c4   : > { %v5761_v41 = vmul.f32 %v5432_v60, %v10274_v58  ;;  %v7082_v35 = vpop.f32.mrb[179].mxu0  ;;  %v5857_v53 = vsel %vm357_vm0, %v5795_v61, 0.0  ;;  %v5796_v9 = vmul.f32 %v10305_v10, %v5760_v56 }
 0x5c5   : > { %5858 = vadd.xlane.f32.xlu1 %v5857_v53  ;;  %v5473_v28 = vpop.f32.mrb[176].mxu1 }
 0x5c6   : > { %v5762_v27 = vmul.f32 %v5473_v28, %v10268_v62  ;;  %v7087_v6 = vpop.f32.mrb[177].mxu1  ;;  %v5797_v39 = vmul.f32 %v10305_v10, %v5761_v41  ;;  %v5860_v46 = vsel %vm357_vm0, %v5796_v9, 0.0 }
 0x5c7   : > { %5849 = vadd.xlane.f32.xlu0 %v5848_v8  ;;  %v5476_v23 = vpop.f32.mrb[178].mxu1 }
 0x5c8   : > { %v5798_v34 = vmul.f32 %v10305_v10, %v5762_v27  ;;  %v5763_v36 = vmul.f32 %v5476_v23, %v10270_v1  ;;  %v7088_v21 = vpop.f32.mrb[179].mxu1  ;;  %v5863_v42 = vsel %vm357_vm0, %v5797_v39, 0.0 }
 0x5c9   : > { %5852 = vadd.xlane.f32.xlu1 %v5851_v48  ;;  %v5517_v58 = vpop.f32.mrb[180].mxu0 }
 0x5ca   : > { %v5799_v52 = vmul.f32 %v10305_v10, %v5763_v36  ;;  %v5764_v62 = vmul.f32 %v5517_v58, %v10276_v29  ;;  %v7093_v7 = vpop.f32.mrb[181].mxu0  ;;  %v5866_v51 = vsel %vm357_vm0, %v5798_v34, 0.0 }
 0x5cb   : > { %5867 = vadd.xlane.f32.xlu0 %v5866_v51  ;;  %v5520_v63 = vpop.f32.mrb[182].mxu0 }
 0x5cc   : > { %v5765_v1 = vmul.f32 %v5520_v63, %v10278_v44  ;;  %v7094_v5 = vpop.f32.mrb[183].mxu0  ;;  %v5869_v55 = vsel %vm357_vm0, %v5799_v52, 0.0  ;;  %v5800_v0 = vmul.f32 %v10305_v10, %v5764_v62 }
 0x5cd   : > { %5870 = vadd.xlane.f32.xlu1 %v5869_v55  ;;  %v5561_v59 = vpop.f32.mrb[180].mxu1 }
 0x5ce   : > { %v5766_v45 = vmul.f32 %v5561_v59, %v10280_v38  ;;  %v7099_v32 = vpop.f32.mrb[181].mxu1  ;;  %v5801_v33 = vmul.f32 %v10305_v10, %v5765_v1  ;;  %v5872_v14 = vsel %vm357_vm0, %v5800_v0, 0.0  ;;  %v10962_v59 = vlaneseq }
 0x5cf   : > { %5861 = vadd.xlane.f32.xlu0 %v5860_v46  ;;  %v5564_v29 = vpop.f32.mrb[182].mxu1 }
 0x5d0   : > { %v5802_v30 = vmul.f32 %v10305_v10, %v5766_v45  ;;  %v5767_v47 = vmul.f32 %v5564_v29, %v10282_v54  ;;  %v7100_v57 = vpop.f32.mrb[183].mxu1  ;;  %v5875_v4 = vsel %vm357_vm0, %v5801_v33, 0.0  ;;  %v5975_v45 = vand.u32 127, %v10962_v59 }
 0x5d1   : > { %5864 = vadd.xlane.f32.xlu1 %v5863_v42  ;;  %v5605_v44 = vpop.f32.mrb[184].mxu0 }
 0x5d2   : > { %v5803_v49 = vmul.f32 %v10305_v10, %v5767_v47  ;;  %v5768_v38 = vmul.f32 %v5605_v44, %v10284_v15  ;;  %v7105_v2 = vpop.f32.mrb[185].mxu0  ;;  %v5878_v13 = vsel %vm357_vm0, %v5802_v30, 0.0  ;;  %v10402_v30 = vstv %s5908_s12 }
 0x5d3   : > { %5879 = vadd.xlane.f32.xlu0 %v5878_v13  ;;  %v5608_v18 = vpop.f32.mrb[186].mxu0  ;;  %v10413_v2 = vsub.s32 %v5975_v45, %v10961_v50 }
 0x5d4   : > { %v5769_v54 = vmul.f32 %v5608_v18, %v10286_v16  ;;  %v7106_v43 = vpop.f32.mrb[187].mxu0  ;;  %v5881_v12 = vsel %vm357_vm0, %v5803_v49, 0.0  ;;  %v5804_v19 = vmul.f32 %v10305_v10, %v5768_v38 }
 0x5d5   : > { %5882 = vadd.xlane.f32.xlu1 %v5881_v12  ;;  %v5649_v37 = vpop.f32.mrb[184].mxu1 }
 0x5d6   : > { %v5770_v11 = vmul.f32 %v5649_v37, %v10288_v31  ;;  %v7111_v25 = vpop.f32.mrb[185].mxu1  ;;  %v5805_v53 = vmul.f32 %v10305_v10, %v5769_v54  ;;  %v5884_v8 = vsel %vm357_vm0, %v5804_v19, 0.0 }
 0x5d7   : > { %5873 = vadd.xlane.f32.xlu0 %v5872_v14  ;;  %v5652_v15 = vpop.f32.mrb[186].mxu1 }
 0x5d8   : > { %v5806_v40 = vmul.f32 %v10305_v10, %v5770_v11  ;;  %v5771_v61 = vmul.f32 %v5652_v15, %v10290_v24  ;;  %v7112_v56 = vpop.f32.mrb[187].mxu1  ;;  %v5887_v23 = vsel %vm357_vm0, %v5805_v53, 0.0 }
 0x5d9   : > { %5876 = vadd.xlane.f32.xlu1 %v5875_v4  ;;  %v5693_v16 = vpop.f32.mrb[188].mxu0 }
 0x5da   : > { %v5807_v60 = vmul.f32 %v10305_v10, %v5771_v61  ;;  %v5772_v31 = vmul.f32 %v5693_v16, %v10292_v20  ;;  %v7117_v26 = vpop.f32.mrb[189].mxu0  ;;  %v5890_v41 = vsel %vm357_vm0, %v5806_v40, 0.0 }
 0x5db   : > { %5891 = vadd.xlane.f32.xlu0 %v5890_v41  ;;  %v5696_v35 = vpop.f32.mrb[190].mxu0 }
 0x5dc   : > { %v5773_v24 = vmul.f32 %v5696_v35, %v10294_v17  ;;  %v7118_v28 = vpop.f32.mrb[191].mxu0  ;;  %v5893_v27 = vsel %vm357_vm0, %v5807_v60, 0.0  ;;  %v5808_v6 = vmul.f32 %v10305_v10, %v5772_v31 }
 0x5dd   : > { %5894 = vadd.xlane.f32.xlu1 %v5893_v27 }
 0x5de   : > { %v5809_v20 = vmul.f32 %v10305_v10, %v5773_v24  ;;  %v5896_v34 = vsel %vm357_vm0, %v5808_v6, 0.0 }
 0x5df   : > { %5885 = vadd.xlane.f32.xlu0 %v5884_v8 }
 0x5e0   : > { %v5899_v36 = vsel %vm357_vm0, %v5809_v20, 0.0 }
 0x5e1   : > { %5888 = vadd.xlane.f32.xlu1 %v5887_v23 }
 0x5e3   : > { %5897 = vadd.xlane.f32.xlu0 %v5896_v34 }
 0x5e5   : > { %5900 = vadd.xlane.f32.xlu1 %v5899_v36 }
 0x60f   : > { %v5737_v17 = vpop.f32.mrb[188].mxu1 }
 0x610   : > { %v5774_v21 = vmul.f32 %v5737_v17, %v10296_v3  ;;  %v7123_v48 = vpop.f32.mrb[189].mxu1 }
 0x611   : > { %v5740_v58 = vpop.f32.mrb[190].mxu1 }
 0x612   : > { %v5810_v9 = vmul.f32 %v10305_v10, %v5774_v21  ;;  %v5775_v52 = vmul.f32 %v5740_v58, %v10298_v22  ;;  %v7124_v62 = vpop.f32.mrb[191].mxu1  ;;  %v5980_v22 = vadd.s32 4294967288, %v5975_v45 }
 0x614   : > { %v5811_v7 = vmul.f32 %v10305_v10, %v5775_v52  ;;  %v5902_v51 = vsel %vm357_vm0, %v5810_v9, 0.0  ;;  %v10407_v42 = vsub.s32 %v5980_v22, %v10961_v50 }
 0x615   : > { %5903 = vadd.xlane.f32.xlu0 %v5902_v51 }
 0x616   : > { %v5905_v63 = vsel %vm357_vm0, %v5811_v7, 0.0 }
 0x617   : > { %5906 = vadd.xlane.f32.xlu1 %v5905_v63 }
 0x638   : > { %v5820_v39 = vpop.xlane.xlu0 %5819 }
 0x639   : > { %v5912_v13 = vadd.f32 %v10402_v30, %v5820_v39 }
 0x63a   : > { %v5823_v1 = vpop.xlane.xlu1 %5822 }
 0x63b   : > { %v5913_v44 = vadd.f32 %v10402_v30, %v5823_v1  ;;  %v5990_v15 = vrot.slane %v5912_v13, %v10413_v2 }
 0x63c   : > { %v5814_v5 = vpop.xlane.xlu0 %5813 }
 0x63d   : > { %v5910_v0 = vadd.f32 %v10402_v30, %v5814_v5  ;;  %v5994_v43 = vrot.slane %v5913_v44, %v10407_v42 }
 0x63e   : > { %v5817_v55 = vpop.xlane.xlu1 %5816 }
 0x63f   : > { %v5911_v10 = vadd.f32 %v10402_v30, %v5817_v55  ;;  %v5979_v12 = vrot.slane %v5910_v0, %v10413_v2  ;;  %v5995_v19 = vsel %vm5985_vm4, %v5994_v43, %v5990_v15 }
 0x640   : > { %v5832_v3 = vpop.xlane.xlu0 %5831 }
 0x641   : > { %v5984_v18 = vrot.slane %v5911_v10, %v10407_v42  ;;  %v5916_v61 = vadd.f32 %v10402_v30, %v5832_v3 }
 0x642   : > { %v5835_v32 = vpop.xlane.xlu1 %5834 }
 0x643   : > { %v5917_v37 = vadd.f32 %v10402_v30, %v5835_v32  ;;  %v5986_v40 = vsel %vm5985_vm4, %v5984_v18, %v5979_v12  ;;  %v6008_v53 = vrot.slane %v5916_v61, %v10413_v2 }
 0x644   : > { %v5826_v46 = vpop.xlane.xlu0 %5825  ;;  %v6123_v41 = vsel %vm6122_vm5, %v5995_v19, %v5986_v40 }
 0x645   : > { %v5914_v38 = vadd.f32 %v10402_v30, %v5826_v46  ;;  %v6012_v60 = vrot.slane %v5917_v37, %v10407_v42 }
 0x646   : > { %v5829_v29 = vpop.xlane.xlu1 %5828 }
 0x647   : > { %v5915_v57 = vadd.f32 %v10402_v30, %v5829_v29  ;;  %v5999_v25 = vrot.slane %v5914_v38, %v10413_v2  ;;  %v6013_v23 = vsel %vm5985_vm4, %v6012_v60, %v6008_v53 }
 0x648   : > { %v5844_v47 = vpop.xlane.xlu0 %5843 }
 0x649   : > { %v6003_v54 = vrot.slane %v5915_v57, %v10407_v42  ;;  %v5920_v28 = vadd.f32 %v10402_v30, %v5844_v47 }
 0x64a   : > { %v5847_v49 = vpop.xlane.xlu1 %5846 }
 0x64b   : > { %v6004_v4 = vsel %vm5985_vm4, %v6003_v54, %v5999_v25  ;;  %v5921_v31 = vadd.f32 %v10402_v30, %v5847_v49  ;;  %v6026_v58 = vrot.slane %v5920_v28, %v10413_v2 }
 0x64c   : > { %v5838_v33 = vpop.xlane.xlu0 %5837  ;;  %v6125_v24 = vsel %vm6124_vm6, %v6004_v4, %v6123_v41 }
 0x64d   : > { %v5918_v50 = vadd.f32 %v10402_v30, %v5838_v33  ;;  %v6030_v34 = vrot.slane %v5921_v31, %v10407_v42  ;;  %v6127_v21 = vsel %vm6126_vm7, %v6013_v23, %v6125_v24 }
 0x64e   : > { %v5841_v11 = vpop.xlane.xlu1 %5840 }
 0x64f   : > { %v5919_v14 = vadd.f32 %v10402_v30, %v5841_v11  ;;  %v6017_v35 = vrot.slane %v5918_v50, %v10413_v2  ;;  %v6031_v63 = vsel %vm5985_vm4, %v6030_v34, %v6026_v58 }
 0x650   : > { %v5856_v56 = vpop.xlane.xlu0 %5855 }
 0x651   : > { %v6021_v16 = vrot.slane %v5919_v14, %v10407_v42  ;;  %v5924_v36 = vadd.f32 %v10402_v30, %v5856_v56 }
 0x652   : > { %v5859_v26 = vpop.xlane.xlu1 %5858 }
 0x653   : > { %v5925_v27 = vadd.f32 %v10402_v30, %v5859_v26  ;;  %v6022_v8 = vsel %vm5985_vm4, %v6021_v16, %v6017_v35  ;;  %v6044_v39 = vrot.slane %v5924_v36, %v10413_v2 }
 0x654   : > { %v5850_v6 = vpop.xlane.xlu0 %5849  ;;  %v6129_v9 = vsel %vm6128_vm8, %v6022_v8, %v6127_v21 }
 0x655   : > { %v5922_v20 = vadd.f32 %v10402_v30, %v5850_v6  ;;  %v6048_v52 = vrot.slane %v5925_v27, %v10407_v42  ;;  %v6131_v55 = vsel %vm6130_vm9, %v6031_v63, %v6129_v9 }
 0x656   : > { %v5853_v17 = vpop.xlane.xlu1 %5852 }
 0x657   : > { %v5923_v48 = vadd.f32 %v10402_v30, %v5853_v17  ;;  %v6035_v7 = vrot.slane %v5922_v20, %v10413_v2  ;;  %v6049_v3 = vsel %vm5985_vm4, %v6048_v52, %v6044_v39 }
 0x658   : > { %v5868_v62 = vpop.xlane.xlu0 %5867 }
 0x659   : > { %v6039_v51 = vrot.slane %v5923_v48, %v10407_v42  ;;  %v5928_v44 = vadd.f32 %v10402_v30, %v5868_v62 }
 0x65a   : > { %v5871_v1 = vpop.xlane.xlu1 %5870 }
 0x65b   : > { %v6040_v5 = vsel %vm5985_vm4, %v6039_v51, %v6035_v7  ;;  %v5929_v10 = vadd.f32 %v10402_v30, %v5871_v1  ;;  %v6062_v37 = vrot.slane %v5928_v44, %v10413_v2 }
 0x65c   : > { %v6133_v59 = vsel %vm6132_vm10, %v6040_v5, %v6131_v55  ;;  %v5862_v45 = vpop.xlane.xlu0 %5861 }
 0x65d   : > { %v6135_v32 = vsel %vm6134_vm11, %v6049_v3, %v6133_v59  ;;  %v5926_v47 = vadd.f32 %v10402_v30, %v5862_v45  ;;  %v6066_v18 = vrot.slane %v5929_v10, %v10407_v42 }
 0x65e   : > { %v5865_v46 = vpop.xlane.xlu1 %5864  ;;  %6145 = vst.msk [vmem:[%s10460_s15] sm:$0xff] %vm3599_vm3, %v6135_v32 }
 0x65f   : > { %v5927_v22 = vadd.f32 %v10402_v30, %v5865_v46  ;;  %v6053_v33 = vrot.slane %v5926_v47, %v10413_v2  ;;  %v6067_v40 = vsel %vm5985_vm4, %v6066_v18, %v6062_v37 }
 0x660   : > { %v5880_v29 = vpop.xlane.xlu0 %5879 }
 0x661   : > { %v6057_v0 = vrot.slane %v5927_v22, %v10407_v42  ;;  %v5932_v54 = vadd.f32 %v10402_v30, %v5880_v29 }
 0x662   : > { %v5883_v57 = vpop.xlane.xlu1 %5882 }
 0x663   : > { %v5933_v49 = vadd.f32 %v10402_v30, %v5883_v57  ;;  %v6058_v11 = vsel %vm5985_vm4, %v6057_v0, %v6053_v33  ;;  %v6080_v61 = vrot.slane %v5932_v54, %v10413_v2 }
 0x664   : > { %v5874_v38 = vpop.xlane.xlu0 %5873  ;;  %v6136_v4 = vsel %vm6122_vm5, %v6067_v40, %v6058_v11 }
 0x665   : > { %v5930_v13 = vadd.f32 %v10402_v30, %v5874_v38  ;;  %v6084_v25 = vrot.slane %v5933_v49, %v10407_v42 }
 0x666   : > { %v5877_v43 = vpop.xlane.xlu1 %5876 }
 0x667   : > { %v5931_v12 = vadd.f32 %v10402_v30, %v5877_v43  ;;  %v6071_v14 = vrot.slane %v5930_v13, %v10413_v2  ;;  %v6085_v19 = vsel %vm5985_vm4, %v6084_v25, %v6080_v61 }
 0x668   : > { %v5892_v50 = vpop.xlane.xlu0 %5891 }
 0x669   : > { %v6075_v15 = vrot.slane %v5931_v12, %v10407_v42  ;;  %v5936_v53 = vadd.f32 %v10402_v30, %v5892_v50 }
 0x66a   : > { %v5895_v56 = vpop.xlane.xlu1 %5894 }
 0x66b   : > { %v6076_v16 = vsel %vm5985_vm4, %v6075_v15, %v6071_v14  ;;  %v5937_v31 = vadd.f32 %v10402_v30, %v5895_v56  ;;  %v6098_v34 = vrot.slane %v5936_v53, %v10413_v2 }
 0x66c   : > { %v6137_v60 = vsel %vm6124_vm6, %v6076_v16, %v6136_v4  ;;  %v5886_v26 = vpop.xlane.xlu0 %5885 }
 0x66d   : > { %v5934_v41 = vadd.f32 %v10402_v30, %v5886_v26  ;;  %v6138_v35 = vsel %vm6126_vm7, %v6085_v19, %v6137_v60  ;;  %v6102_v27 = vrot.slane %v5937_v31, %v10407_v42 }
 0x66e   : > { %v5889_v24 = vpop.xlane.xlu1 %5888 }
 0x66f   : > { %v5935_v28 = vadd.f32 %v10402_v30, %v5889_v24  ;;  %v6089_v8 = vrot.slane %v5934_v41, %v10413_v2  ;;  %v6103_v48 = vsel %vm5985_vm4, %v6102_v27, %v6098_v34 }
 0x670   : > { %v5898_v6 = vpop.xlane.xlu0 %5897 }
 0x671   : > { %v6093_v20 = vrot.slane %v5935_v28, %v10407_v42  ;;  %v5938_v23 = vadd.f32 %v10402_v30, %v5898_v6 }
 0x672   : > { %v5901_v36 = vpop.xlane.xlu1 %5900 }
 0x673   : > { %v6094_v17 = vsel %vm5985_vm4, %v6093_v20, %v6089_v8  ;;  %v5939_v21 = vadd.f32 %v10402_v30, %v5901_v36  ;;  %v6107_v9 = vrot.slane %v5938_v23, %v10413_v2 }
 0x674   : > { %v6139_v58 = vsel %vm6128_vm8, %v6094_v17, %v6138_v35 }
 0x675   : > { %v6111_v52 = vrot.slane %v5939_v21, %v10407_v42  ;;  %v6140_v62 = vsel %vm6130_vm9, %v6103_v48, %v6139_v58 }
 0x677   : > { %v6112_v7 = vsel %vm5985_vm4, %v6111_v52, %v6107_v9 }
 0x678   : > { %v6141_v51 = vsel %vm6132_vm10, %v6112_v7, %v6140_v62 }
 0x6a2   : > { %v5904_v63 = vpop.xlane.xlu0 %5903 }
 0x6a3   : > { %v5940_v39 = vadd.f32 %v10402_v30, %v5904_v63 }
 0x6a4   : > { %v5907_v1 = vpop.xlane.xlu1 %5906 }
 0x6a5   : > { %v5941_v5 = vadd.f32 %v10402_v30, %v5907_v1  ;;  %v6116_v55 = vrot.slane %v5940_v39, %v10413_v2 }
 0x6a7   : > { %v6120_v3 = vrot.slane %v5941_v5, %v10407_v42 }
 0x6a9   : > { %v6121_v59 = vsel %vm5985_vm4, %v6120_v3, %v6116_v55 }
 0x6aa   : > { %v6142_v30 = vsel %vm6134_vm11, %v6121_v59, %v6141_v51 }
 0x6ab   : > { %6146 = vst.msk [vmem:[%s10460_s15 + $0x8] sm:$0xff] %vm3599_vm3, %v6142_v30 }
 0x6ac   : > { %7650 = shalt.err (!%p7647_p5)
}
 0x6ad   : > { %s7651_s9 = scalar_lea.hbm %s10514_s4, 256  ;;  %s7655_s12 = scalar_lea.hbm %s10575_s5, 512 }
 0x6ae   : > { %p7652_p6 = scmp.ne.s32.totalorder %s10514_s4, %s7651_s9  ;;  %p7656_p10 = scmp.lt.u32.totalorder %s10514_s4, %s10575_s5 }
 0x6af   : > { %p7657_p11 = scmp.lt.u32.totalorder %s7655_s12, %s7651_s9  ;;  %p7659_p13 = scmp.lt.u32.totalorder %s7651_s9, %s10514_s4 }
 0x6b0   : > { %p7653_p7 = pnand %p7652_p6, %p7795_p4 }
 0x6b1   : > { %p7658_p12 = por %p7657_p11, %p7656_p10 }
 0x6b2   : > { %p7654_p9 = pneg %p7653_p7 }
 0x6b3   : > { %p7660_p0 = por %p7659_p13, %p7658_p12 }
 0x6b5   : > { %p7661_p1 = pnand %p7660_p0, %p7654_p9 }
 0x6b7   : > { %7664 = shalt.err (!%p7661_p1)
}
 0x6b8   : > { %s7720_s15 = smov 128   ;;  %s7721_s16 = smov 8  }
 0x6b9   : > { %7129 = dma.vmem_to_hbm [thread:$0]  (%p7795_p4), %s10516_s17, 256, %s10514_s4, %s10524_s23, %s7720_s15, %s7720_s15, %s7721_s16  }
 0x6ba PF: > { %p7135_p2 = scmp.ge.s32.totalorder %s7715_s25, 2  ;;  %s6178_s18 = sand.u32 1, %s7695_s20  }
 0x6bb   : > { %s6179_s19 = scalar_lea.sflag [#allocation4], %s6178_s18 }
 0x6bc   : > { %p7132_p3 = pnand %p7135_p2, %p7802_p8 }
 0x6be   : > { %7690 = dma.done.wait (!%p7132_p3), %s6179_s19, 256  }
 0x6bf   : > { %7692 = vsyncadd (!%p7132_p3), %s6179_s19, 4294967040  ;;  %s19_s25 = sadd.s32 1, %s7715_s25   ;;  %s10963_s20 = smov %s7699_s21 }
 0x6c0   : > { %p16_p5 = scmp.ge.s32.totalorder %s19_s25, 4   ;;  %s10964_s21 = smov %s7703_s22 }
 0x6c1   : > { %s10965_s22 = smov %s7808_s7  ;;  %s10966_s23 = smov %s7711_s24 }
 0x6c2   : > { %s10967_s24 = smov %s10969_s27  ;;  %18 = sbr.rel (!%p16_p5) target bundleno = 6 (0x6), region = 81 }
 0x6c9   :  { %6184 = vsyncpa [#allocation4], 1 }
 0x6ca   :  { %6186 = vsyncpa [#allocation4 + $0x1], 1 }

</bundles_post_ra>
